<compile_context>
chip_gen: v7x
topology: tpu7x:2x2x1
jax: 0.10.0
libtpu: 0.0.40
codegen_flags: <defaults>
</compile_context>

<pallas_src>
import jax
import jax.numpy as jnp
from jax.experimental import pallas as pl
from jax.experimental.pallas import tpu as pltpu

H = W = 28            # spatial size required by the module (10*14*14 flatten)
C1, C2 = 4, 10        # conv output channels
KH = KW = 3
HID, OUT = 144, 36    # 12*12, 6*6
EPS = 1e-5


# ------------------------------ fused kernel -----------------------------------

def fused_model_kernel(x_ref, w1b_ref, g1_ref, bt1_ref, bd1_ref, bu1_ref,
                       w2b_ref, g2_ref, bt2_ref, bd2_ref, bu2_ref,
                       selh_ref, selw_ref, lw1_ref, lb1_ref, lw2_ref, lb2_ref,
                       out_ref):
    R = x_ref.shape[0]                 # n * H (samples stacked along rows)
    n = R // H
    inv_cnt = 1.0 / float(R * W)       # 1 / (n*H*W): BN count per channel

    # masks that re-zero the first/last row of every sample (rows are sample-stacked,
    # so a plain row shift would leak across sample boundaries without them)
    ridx = jax.lax.broadcasted_iota(jnp.int32, (R, 1), 0)
    m_first = (ridx % H != 0).astype(jnp.float32)
    m_last = (ridx % H != H - 1).astype(jnp.float32)

    def row_bands(a):
        # returns (rows h-1, rows h+1) with zero rows at each sample's border
        z = jnp.zeros((1, a.shape[1]), a.dtype)
        prev = jnp.concatenate([z, a[:-1, :]], axis=0) * m_first
        nxt = jnp.concatenate([a[1:, :], z], axis=0) * m_last
        return prev, nxt

    def bn_relu(y, bd, bu, gamma, beta):
        # exact train-mode BatchNorm over (N,H,W) per channel (channels = 28-lane blocks),
        # centered two-pass variance (biased), then affine + ReLU.  The 28-lane block
        # reduction + broadcast is done with tiny 0/1 matmuls (bd: [L,C], bu: [C,L]).
        s = jnp.sum(y, axis=0, keepdims=True)                                  # [1, L]
        mean = jnp.dot(jnp.dot(s, bd, preferred_element_type=jnp.float32), bu,
                       preferred_element_type=jnp.float32) * inv_cnt
        yc = y - mean
        q = jnp.sum(yc * yc, axis=0, keepdims=True)
        var = jnp.dot(jnp.dot(q, bd, preferred_element_type=jnp.float32), bu,
                      preferred_element_type=jnp.float32) * inv_cnt
        scale = jax.lax.rsqrt(var + EPS) * gamma
        return jnp.maximum(yc * scale + beta, 0.0)

    # ---- conv1 (1->4) as one banded matmul, + bn1 + relu ------------------------
    x = x_ref[...]                                                             # [R, 28]
    p0, p2 = row_bands(x)
    P1 = jnp.concatenate([p0, x, p2], axis=1)                                  # [R, 84]
    y1 = bn_relu(jnp.dot(P1, w1b_ref[...], preferred_element_type=jnp.float32),
                 bd1_ref[...], bu1_ref[...], g1_ref[...], bt1_ref[...])        # [R, 112]

    # ---- conv2 (4->10) as one banded matmul, + bn2 + relu -----------------------
    q0, q2 = row_bands(y1)
    P2 = jnp.concatenate([q0, y1, q2], axis=1)                                 # [R, 336]
    y2 = bn_relu(jnp.dot(P2, w2b_ref[...], preferred_element_type=jnp.float32),
                 bd2_ref[...], bu2_ref[...], g2_ref[...], bt2_ref[...])        # [R, 280]

    # ---- 2x2 / stride-2 max pool --------------------------------------------------
    # Pairwise max with shifted copies; positions that mix channels / samples are at
    # odd w / odd h and are never picked by the stride-2 selections (H, W even).
    sw = jnp.concatenate([y2[:, 1:], y2[:, -1:]], axis=1)
    mw = jnp.maximum(y2, sw)
    sh = jnp.concatenate([mw[1:, :], mw[-1:, :]], axis=0)
    mm = jnp.maximum(mw, sh)                                                   # [R, 280]

    ph = jnp.dot(selh_ref[...], mm, preferred_element_type=jnp.float32)        # [n*14, 280]
    pw = jnp.dot(ph, selw_ref[...], preferred_element_type=jnp.float32)        # [n*14, 140]
    # rows of pw are i-major: row = i*n + s  ->  batched 14-slice lane concat
    flat = jnp.concatenate([pw[i * n:(i + 1) * n, :] for i in range(14)],
                           axis=1)                                             # [n, 1960]

    # ---- lin1 + relu, lin2 + relu (flatten permutation folded into lw1) ----------
    h1 = jnp.maximum(jnp.dot(flat, lw1_ref[...],
                             preferred_element_type=jnp.float32) + lb1_ref[...], 0.0)
    h2 = jnp.maximum(jnp.dot(h1, lw2_ref[...],
                             preferred_element_type=jnp.float32) + lb2_ref[...], 0.0)
    out_ref[...] = h2.astype(out_ref.dtype)


# ------------------------------- params / wrapper -------------------------------

def init_params(key):
    ks = jax.random.split(key, 6)

    def u(k, shape, fan_in):
        bound = 1.0 / jnp.sqrt(jnp.float32(fan_in))
        return jax.random.uniform(k, shape, jnp.float32, -bound, bound)

    w1_t = u(ks[0], (C1, 1, KH, KW), 1 * KH * KW)          # torch conv1 weight [co,ci,kh,kw]
    w2_t = u(ks[1], (C2, C1, KH, KW), C1 * KH * KW)        # torch conv2 weight
    lw1_t = u(ks[2], (HID, C2 * 14 * 14), C2 * 14 * 14)    # torch lin1 weight [out, in]
    lb1 = u(ks[3], (1, HID), C2 * 14 * 14)
    lw2_t = u(ks[4], (OUT, HID), HID)                      # torch lin2 weight
    lb2 = u(ks[5], (1, OUT), HID)

    # Banded (block-Toeplitz) conv weights: the kw shift and horizontal zero-padding
    # of the 3x3 convs live entirely inside these matrices.
    uu = jnp.arange(W)
    band = uu[:, None] - uu[None, :] + 1                                   # = kw if in [0,3)
    sel3 = (band[None, :, :] == jnp.arange(KW)[:, None, None]).astype(jnp.float32)  # [kw,u,w]
    w1big = jnp.einsum('ohk,kuw->huow', w1_t[:, 0], sel3).reshape(KH * W, C1 * W)      # [84,112]
    w2big = jnp.einsum('oihk,kuw->hiuow', w2_t, sel3).reshape(KH * C1 * W, C2 * W)     # [336,280]

    # 28-lane block reduction / broadcast matrices for BN channel statistics.
    def blk(cn):
        d = (jnp.arange(cn * W)[:, None] // W == jnp.arange(cn)[None, :]).astype(jnp.float32)
        return d, d.T
    bd1, bu1 = blk(C1)
    bd2, bu2 = blk(C2)

    # BN affine params (PyTorch defaults: weight=1, bias=0), lane-replicated per block.
    g1 = jnp.ones((1, C1 * W), jnp.float32)
    bt1 = jnp.zeros((1, C1 * W), jnp.float32)
    g2 = jnp.ones((1, C2 * W), jnp.float32)
    bt2 = jnp.zeros((1, C2 * W), jnp.float32)

    # Stride-2 lane pick: lane c*28+2j -> c*14+j.
    m = jnp.arange(C2 * 14)
    src = (m // 14) * W + 2 * (m % 14)
    selw = (jnp.arange(C2 * W)[:, None] == src[None, :]).astype(jnp.float32)           # [280,140]

    # Fold the NCHW-flatten permutation into lin1: kernel flat order is (i, c, j).
    lw1k = (lw1_t.reshape(HID, C2, 14, 14)
                 .transpose(2, 1, 3, 0)
                 .reshape(14 * C2 * 14, HID))                                          # [1960,144]

    return dict(
        w1big=w1big, w2big=w2big,
        g1=g1, bt1=bt1, bd1=bd1, bu1=bu1,
        g2=g2, bt2=bt2, bd2=bd2, bu2=bu2,
        selw=selw,
        lw1=lw1k, lb1=lb1,
        lw2=lw2_t.T, lb2=lb2,
    )


def model_forward(x_nchw, params):
    n = x_nchw.shape[0]
    assert x_nchw.shape[1:] == (1, H, W), x_nchw.shape
    assert H % 2 == 0 and W % 2 == 0
    x2d = x_nchw.reshape(n * H, W)                     # Cin == 1: samples stacked on rows

    # Row-selection matrix: picks row s*28+2i and orders output rows i-major (i*n + s),
    # so the flatten is a single batched lane concat.  (For large batch you would add a
    # batch grid instead; n here is tiny so one gridless call keeps BN stats exact.)
    p = jnp.arange(n * 14)
    s, i = p % n, p // n
    selh = (jnp.arange(n * H)[None, :] == (s * H + 2 * i)[:, None]).astype(jnp.float32)

    vmem = pl.BlockSpec(memory_space=pltpu.MemorySpace.VMEM)
    args = (x2d,
            params["w1big"], params["g1"], params["bt1"], params["bd1"], params["bu1"],
            params["w2big"], params["g2"], params["bt2"], params["bd2"], params["bu2"],
            selh, params["selw"],
            params["lw1"], params["lb1"], params["lw2"], params["lb2"])

    return pl.pallas_call(
        fused_model_kernel,
        out_shape=jax.ShapeDtypeStruct((n, OUT), jnp.float32),
        in_specs=[vmem] * len(args),
        out_specs=vmem,
    )(*args)


# ------------------------------------ main ---------------------------------------

if __name__ == "__main__":
    key = jax.random.PRNGKey(0)
    k_param, k_input = jax.random.split(key)

    params = init_params(k_param)
    # spatial must be 28x28 so that 10*14*14 matches the flatten in the module
    x = jax.random.normal(k_input, (2, 1, H, W), jnp.float32)

    fwd = jax.jit(model_forward)
    out = jax.block_until_ready(fwd(x, params))

    assert out.shape == (2, OUT), out.shape
    assert out.dtype == jnp.float32
    print("KERNEL_OK")
</pallas_src>

<mosaic_0001>
module attributes {stable_mosaic.version = 11 : i64} {
  func.func @fused_model_kernel(%arg0: memref<56x28xf32, #tpu.memory_space<vmem>>, %arg1: memref<84x112xf32, #tpu.memory_space<vmem>>, %arg2: memref<1x112xf32, #tpu.memory_space<vmem>>, %arg3: memref<1x112xf32, #tpu.memory_space<vmem>>, %arg4: memref<112x4xf32, #tpu.memory_space<vmem>>, %arg5: memref<4x112xf32, #tpu.memory_space<vmem>>, %arg6: memref<336x280xf32, #tpu.memory_space<vmem>>, %arg7: memref<1x280xf32, #tpu.memory_space<vmem>>, %arg8: memref<1x280xf32, #tpu.memory_space<vmem>>, %arg9: memref<280x10xf32, #tpu.memory_space<vmem>>, %arg10: memref<10x280xf32, #tpu.memory_space<vmem>>, %arg11: memref<28x56xf32, #tpu.memory_space<vmem>>, %arg12: memref<280x140xf32, #tpu.memory_space<vmem>>, %arg13: memref<1960x144xf32, #tpu.memory_space<vmem>>, %arg14: memref<1x144xf32, #tpu.memory_space<vmem>>, %arg15: memref<144x36xf32, #tpu.memory_space<vmem>>, %arg16: memref<1x36xf32, #tpu.memory_space<vmem>>, %arg17: memref<2x36xf32, #tpu.memory_space<vmem>>) attributes {dimension_semantics = [], scalar_prefetch = 0 : i64, scratch_operands = 0 : i64, tpu.core_type = #tpu.core_type<tc>} {
    %0 = tpu.iota {dimensions = array<i32: 0>} : vector<56x1xi32>
    %c28_i32 = arith.constant 28 : i32
    %c0_i32 = arith.constant 0 : i32
    %1 = arith.cmpi eq, %c28_i32, %c0_i32 : i32
    %c1_i32 = arith.constant 1 : i32
    %2 = arith.select %1, %c1_i32, %c28_i32 : i32
    %3 = vector.broadcast %2 : i32 to vector<56x1xi32>
    %4 = arith.remsi %0, %3 : vector<56x1xi32>
    %c0_i32_0 = arith.constant 0 : i32
    %5 = vector.broadcast %c0_i32_0 : i32 to vector<56x1xi32>
    %6 = arith.cmpi ne, %4, %5 : vector<56x1xi32>
    %c0_i32_1 = arith.constant 0 : i32
    %7 = vector.broadcast %c0_i32_1 : i32 to vector<56x1xi32>
    %8 = arith.cmpi slt, %4, %7 : vector<56x1xi32>
    %c0_i32_2 = arith.constant 0 : i32
    %9 = arith.cmpi slt, %2, %c0_i32_2 : i32
    %10 = vector.broadcast %9 : i1 to vector<56x1xi1>
    %11 = vector.broadcast %10 : vector<56x1xi1> to vector<56x1xi1>
    %12 = arith.xori %8, %11 : vector<56x1xi1>
    %13 = arith.andi %12, %6 : vector<56x1xi1>
    %14 = vector.broadcast %2 : i32 to vector<56x1xi32>
    %15 = arith.addi %4, %14 : vector<56x1xi32>
    %16 = arith.select %13, %15, %4 : vector<56x1xi1>, vector<56x1xi32>
    %c0_i32_3 = arith.constant 0 : i32
    %17 = vector.broadcast %c0_i32_3 : i32 to vector<56x1xi32>
    %18 = arith.cmpi ne, %16, %17 : vector<56x1xi32>
    %19 = arith.extui %18 : vector<56x1xi1> to vector<56x1xi32>
    %20 = arith.sitofp %19 : vector<56x1xi32> to vector<56x1xf32>
    %c28_i32_4 = arith.constant 28 : i32
    %c0_i32_5 = arith.constant 0 : i32
    %21 = arith.cmpi eq, %c28_i32_4, %c0_i32_5 : i32
    %c1_i32_6 = arith.constant 1 : i32
    %22 = arith.select %21, %c1_i32_6, %c28_i32_4 : i32
    %23 = vector.broadcast %22 : i32 to vector<56x1xi32>
    %24 = arith.remsi %0, %23 : vector<56x1xi32>
    %c0_i32_7 = arith.constant 0 : i32
    %25 = vector.broadcast %c0_i32_7 : i32 to vector<56x1xi32>
    %26 = arith.cmpi ne, %24, %25 : vector<56x1xi32>
    %c0_i32_8 = arith.constant 0 : i32
    %27 = vector.broadcast %c0_i32_8 : i32 to vector<56x1xi32>
    %28 = arith.cmpi slt, %24, %27 : vector<56x1xi32>
    %c0_i32_9 = arith.constant 0 : i32
    %29 = arith.cmpi slt, %22, %c0_i32_9 : i32
    %30 = vector.broadcast %29 : i1 to vector<56x1xi1>
    %31 = vector.broadcast %30 : vector<56x1xi1> to vector<56x1xi1>
    %32 = arith.xori %28, %31 : vector<56x1xi1>
    %33 = arith.andi %32, %26 : vector<56x1xi1>
    %34 = vector.broadcast %22 : i32 to vector<56x1xi32>
    %35 = arith.addi %24, %34 : vector<56x1xi32>
    %36 = arith.select %33, %35, %24 : vector<56x1xi1>, vector<56x1xi32>
    %c27_i32 = arith.constant 27 : i32
    %37 = vector.broadcast %c27_i32 : i32 to vector<56x1xi32>
    %38 = arith.cmpi ne, %36, %37 : vector<56x1xi32>
    %39 = arith.extui %38 : vector<56x1xi1> to vector<56x1xi32>
    %40 = arith.sitofp %39 : vector<56x1xi32> to vector<56x1xf32>
    %c0 = arith.constant 0 : index
    %c0_10 = arith.constant 0 : index
    %41 = vector.load %arg0[%c0, %c0_10] : memref<56x28xf32, #tpu.memory_space<vmem>>, vector<56x28xf32>
    %cst = arith.constant 0.000000e+00 : f32
    %42 = vector.broadcast %cst : f32 to vector<1x28xf32>
    %43 = vector.extract_strided_slice %41 {offsets = [0, 0], sizes = [55, 28], strides = [1, 1]} : vector<56x28xf32> to vector<55x28xf32>
    %44 = tpu.concatenate %42, %43 in 0 : vector<1x28xf32>, vector<55x28xf32> -> vector<56x28xf32>
    %45 = vector.broadcast %20 : vector<56x1xf32> to vector<56x28xf32>
    %46 = arith.mulf %44, %45 : vector<56x28xf32>
    %47 = vector.extract_strided_slice %41 {offsets = [1, 0], sizes = [55, 28], strides = [1, 1]} : vector<56x28xf32> to vector<55x28xf32>
    %48 = tpu.concatenate %47, %42 in 0 : vector<55x28xf32>, vector<1x28xf32> -> vector<56x28xf32>
    %49 = vector.broadcast %40 : vector<56x1xf32> to vector<56x28xf32>
    %50 = arith.mulf %48, %49 : vector<56x28xf32>
    %51 = tpu.concatenate %46, %41, %50 in 1 : vector<56x28xf32>, vector<56x28xf32>, vector<56x28xf32> -> vector<56x84xf32>
    %c0_11 = arith.constant 0 : index
    %c0_12 = arith.constant 0 : index
    %52 = vector.load %arg1[%c0_11, %c0_12] : memref<84x112xf32, #tpu.memory_space<vmem>>, vector<84x112xf32>
    %cst_13 = arith.constant dense<0.000000e+00> : vector<56x112xf32>
    %53 = tpu.matmul %51, %52, %cst_13 {dimension_numbers = #tpu.dot_dimension_numbers<[1], [0], [0], [1], [0, 0, 1, 1], [], []>} : vector<56x84xf32>, vector<84x112xf32>, vector<56x112xf32> -> vector<56x112xf32>
    %c0_14 = arith.constant 0 : index
    %c0_15 = arith.constant 0 : index
    %54 = vector.load %arg4[%c0_14, %c0_15] : memref<112x4xf32, #tpu.memory_space<vmem>>, vector<112x4xf32>
    %c0_16 = arith.constant 0 : index
    %c0_17 = arith.constant 0 : index
    %55 = vector.load %arg5[%c0_16, %c0_17] : memref<4x112xf32, #tpu.memory_space<vmem>>, vector<4x112xf32>
    %c0_18 = arith.constant 0 : index
    %c0_19 = arith.constant 0 : index
    %56 = vector.load %arg2[%c0_18, %c0_19] : memref<1x112xf32, #tpu.memory_space<vmem>>, vector<1x112xf32>
    %c0_20 = arith.constant 0 : index
    %c0_21 = arith.constant 0 : index
    %57 = vector.load %arg3[%c0_20, %c0_21] : memref<1x112xf32, #tpu.memory_space<vmem>>, vector<1x112xf32>
    %cst_22 = arith.constant dense<0.000000e+00> : vector<112xf32>
    %58 = vector.multi_reduction <add>, %53, %cst_22 [0] : vector<56x112xf32> to vector<112xf32>
    %59 = vector.shape_cast %58 : vector<112xf32> to vector<1x112xf32>
    %cst_23 = arith.constant dense<0.000000e+00> : vector<1x4xf32>
    %60 = tpu.matmul %59, %54, %cst_23 {dimension_numbers = #tpu.dot_dimension_numbers<[1], [0], [0], [1], [0, 0, 1, 1], [], []>} : vector<1x112xf32>, vector<112x4xf32>, vector<1x4xf32> -> vector<1x4xf32>
    %cst_24 = arith.constant dense<0.000000e+00> : vector<1x112xf32>
    %61 = tpu.matmul %60, %55, %cst_24 {dimension_numbers = #tpu.dot_dimension_numbers<[1], [0], [0], [1], [0, 0, 1, 1], [], []>} : vector<1x4xf32>, vector<4x112xf32>, vector<1x112xf32> -> vector<1x112xf32>
    %cst_25 = arith.constant 6.37755089E-4 : f32
    %62 = vector.broadcast %cst_25 : f32 to vector<1x112xf32>
    %63 = arith.mulf %61, %62 : vector<1x112xf32>
    %64 = vector.broadcast %63 : vector<1x112xf32> to vector<56x112xf32>
    %65 = arith.subf %53, %64 : vector<56x112xf32>
    %66 = arith.mulf %65, %65 : vector<56x112xf32>
    %cst_26 = arith.constant dense<0.000000e+00> : vector<112xf32>
    %67 = vector.multi_reduction <add>, %66, %cst_26 [0] : vector<56x112xf32> to vector<112xf32>
    %68 = vector.shape_cast %67 : vector<112xf32> to vector<1x112xf32>
    %cst_27 = arith.constant dense<0.000000e+00> : vector<1x4xf32>
    %69 = tpu.matmul %68, %54, %cst_27 {dimension_numbers = #tpu.dot_dimension_numbers<[1], [0], [0], [1], [0, 0, 1, 1], [], []>} : vector<1x112xf32>, vector<112x4xf32>, vector<1x4xf32> -> vector<1x4xf32>
    %cst_28 = arith.constant dense<0.000000e+00> : vector<1x112xf32>
    %70 = tpu.matmul %69, %55, %cst_28 {dimension_numbers = #tpu.dot_dimension_numbers<[1], [0], [0], [1], [0, 0, 1, 1], [], []>} : vector<1x4xf32>, vector<4x112xf32>, vector<1x112xf32> -> vector<1x112xf32>
    %cst_29 = arith.constant 6.37755089E-4 : f32
    %71 = vector.broadcast %cst_29 : f32 to vector<1x112xf32>
    %72 = arith.mulf %70, %71 : vector<1x112xf32>
    %cst_30 = arith.constant 9.99999974E-6 : f32
    %73 = vector.broadcast %cst_30 : f32 to vector<1x112xf32>
    %74 = arith.addf %72, %73 : vector<1x112xf32>
    %75 = math.rsqrt %74 : vector<1x112xf32>
    %76 = arith.mulf %75, %56 : vector<1x112xf32>
    %77 = vector.broadcast %76 : vector<1x112xf32> to vector<56x112xf32>
    %78 = arith.mulf %65, %77 : vector<56x112xf32>
    %79 = vector.broadcast %57 : vector<1x112xf32> to vector<56x112xf32>
    %80 = arith.addf %78, %79 : vector<56x112xf32>
    %cst_31 = arith.constant 0.000000e+00 : f32
    %81 = vector.broadcast %cst_31 : f32 to vector<56x112xf32>
    %82 = arith.maximumf %80, %81 : vector<56x112xf32>
    %cst_32 = arith.constant 0.000000e+00 : f32
    %83 = vector.broadcast %cst_32 : f32 to vector<1x112xf32>
    %84 = vector.extract_strided_slice %82 {offsets = [0, 0], sizes = [55, 112], strides = [1, 1]} : vector<56x112xf32> to vector<55x112xf32>
    %85 = tpu.concatenate %83, %84 in 0 : vector<1x112xf32>, vector<55x112xf32> -> vector<56x112xf32>
    %86 = vector.broadcast %20 : vector<56x1xf32> to vector<56x112xf32>
    %87 = arith.mulf %85, %86 : vector<56x112xf32>
    %88 = vector.extract_strided_slice %82 {offsets = [1, 0], sizes = [55, 112], strides = [1, 1]} : vector<56x112xf32> to vector<55x112xf32>
    %89 = tpu.concatenate %88, %83 in 0 : vector<55x112xf32>, vector<1x112xf32> -> vector<56x112xf32>
    %90 = vector.broadcast %40 : vector<56x1xf32> to vector<56x112xf32>
    %91 = arith.mulf %89, %90 : vector<56x112xf32>
    %92 = tpu.concatenate %87, %82, %91 in 1 : vector<56x112xf32>, vector<56x112xf32>, vector<56x112xf32> -> vector<56x336xf32>
    %c0_33 = arith.constant 0 : index
    %c0_34 = arith.constant 0 : index
    %93 = vector.load %arg6[%c0_33, %c0_34] : memref<336x280xf32, #tpu.memory_space<vmem>>, vector<336x280xf32>
    %cst_35 = arith.constant dense<0.000000e+00> : vector<56x280xf32>
    %94 = tpu.matmul %92, %93, %cst_35 {dimension_numbers = #tpu.dot_dimension_numbers<[1], [0], [0], [1], [0, 0, 1, 1], [], []>} : vector<56x336xf32>, vector<336x280xf32>, vector<56x280xf32> -> vector<56x280xf32>
    %c0_36 = arith.constant 0 : index
    %c0_37 = arith.constant 0 : index
    %95 = vector.load %arg9[%c0_36, %c0_37] : memref<280x10xf32, #tpu.memory_space<vmem>>, vector<280x10xf32>
    %c0_38 = arith.constant 0 : index
    %c0_39 = arith.constant 0 : index
    %96 = vector.load %arg10[%c0_38, %c0_39] : memref<10x280xf32, #tpu.memory_space<vmem>>, vector<10x280xf32>
    %c0_40 = arith.constant 0 : index
    %c0_41 = arith.constant 0 : index
    %97 = vector.load %arg7[%c0_40, %c0_41] : memref<1x280xf32, #tpu.memory_space<vmem>>, vector<1x280xf32>
    %c0_42 = arith.constant 0 : index
    %c0_43 = arith.constant 0 : index
    %98 = vector.load %arg8[%c0_42, %c0_43] : memref<1x280xf32, #tpu.memory_space<vmem>>, vector<1x280xf32>
    %cst_44 = arith.constant dense<0.000000e+00> : vector<280xf32>
    %99 = vector.multi_reduction <add>, %94, %cst_44 [0] : vector<56x280xf32> to vector<280xf32>
    %100 = vector.shape_cast %99 : vector<280xf32> to vector<1x280xf32>
    %cst_45 = arith.constant dense<0.000000e+00> : vector<1x10xf32>
    %101 = tpu.matmul %100, %95, %cst_45 {dimension_numbers = #tpu.dot_dimension_numbers<[1], [0], [0], [1], [0, 0, 1, 1], [], []>} : vector<1x280xf32>, vector<280x10xf32>, vector<1x10xf32> -> vector<1x10xf32>
    %cst_46 = arith.constant dense<0.000000e+00> : vector<1x280xf32>
    %102 = tpu.matmul %101, %96, %cst_46 {dimension_numbers = #tpu.dot_dimension_numbers<[1], [0], [0], [1], [0, 0, 1, 1], [], []>} : vector<1x10xf32>, vector<10x280xf32>, vector<1x280xf32> -> vector<1x280xf32>
    %cst_47 = arith.constant 6.37755089E-4 : f32
    %103 = vector.broadcast %cst_47 : f32 to vector<1x280xf32>
    %104 = arith.mulf %102, %103 : vector<1x280xf32>
    %105 = vector.broadcast %104 : vector<1x280xf32> to vector<56x280xf32>
    %106 = arith.subf %94, %105 : vector<56x280xf32>
    %107 = arith.mulf %106, %106 : vector<56x280xf32>
    %cst_48 = arith.constant dense<0.000000e+00> : vector<280xf32>
    %108 = vector.multi_reduction <add>, %107, %cst_48 [0] : vector<56x280xf32> to vector<280xf32>
    %109 = vector.shape_cast %108 : vector<280xf32> to vector<1x280xf32>
    %cst_49 = arith.constant dense<0.000000e+00> : vector<1x10xf32>
    %110 = tpu.matmul %109, %95, %cst_49 {dimension_numbers = #tpu.dot_dimension_numbers<[1], [0], [0], [1], [0, 0, 1, 1], [], []>} : vector<1x280xf32>, vector<280x10xf32>, vector<1x10xf32> -> vector<1x10xf32>
    %cst_50 = arith.constant dense<0.000000e+00> : vector<1x280xf32>
    %111 = tpu.matmul %110, %96, %cst_50 {dimension_numbers = #tpu.dot_dimension_numbers<[1], [0], [0], [1], [0, 0, 1, 1], [], []>} : vector<1x10xf32>, vector<10x280xf32>, vector<1x280xf32> -> vector<1x280xf32>
    %cst_51 = arith.constant 6.37755089E-4 : f32
    %112 = vector.broadcast %cst_51 : f32 to vector<1x280xf32>
    %113 = arith.mulf %111, %112 : vector<1x280xf32>
    %cst_52 = arith.constant 9.99999974E-6 : f32
    %114 = vector.broadcast %cst_52 : f32 to vector<1x280xf32>
    %115 = arith.addf %113, %114 : vector<1x280xf32>
    %116 = math.rsqrt %115 : vector<1x280xf32>
    %117 = arith.mulf %116, %97 : vector<1x280xf32>
    %118 = vector.broadcast %117 : vector<1x280xf32> to vector<56x280xf32>
    %119 = arith.mulf %106, %118 : vector<56x280xf32>
    %120 = vector.broadcast %98 : vector<1x280xf32> to vector<56x280xf32>
    %121 = arith.addf %119, %120 : vector<56x280xf32>
    %cst_53 = arith.constant 0.000000e+00 : f32
    %122 = vector.broadcast %cst_53 : f32 to vector<56x280xf32>
    %123 = arith.maximumf %121, %122 : vector<56x280xf32>
    %124 = vector.extract_strided_slice %123 {offsets = [0, 1], sizes = [56, 279], strides = [1, 1]} : vector<56x280xf32> to vector<56x279xf32>
    %125 = vector.extract_strided_slice %123 {offsets = [0, 279], sizes = [56, 1], strides = [1, 1]} : vector<56x280xf32> to vector<56x1xf32>
    %126 = tpu.concatenate %124, %125 in 1 : vector<56x279xf32>, vector<56x1xf32> -> vector<56x280xf32>
    %127 = arith.maximumf %123, %126 : vector<56x280xf32>
    %128 = vector.extract_strided_slice %127 {offsets = [1, 0], sizes = [55, 280], strides = [1, 1]} : vector<56x280xf32> to vector<55x280xf32>
    %129 = vector.extract_strided_slice %127 {offsets = [55, 0], sizes = [1, 280], strides = [1, 1]} : vector<56x280xf32> to vector<1x280xf32>
    %130 = tpu.concatenate %128, %129 in 0 : vector<55x280xf32>, vector<1x280xf32> -> vector<56x280xf32>
    %131 = arith.maximumf %127, %130 : vector<56x280xf32>
    %c0_54 = arith.constant 0 : index
    %c0_55 = arith.constant 0 : index
    %132 = vector.load %arg11[%c0_54, %c0_55] : memref<28x56xf32, #tpu.memory_space<vmem>>, vector<28x56xf32>
    %cst_56 = arith.constant dense<0.000000e+00> : vector<28x280xf32>
    %133 = tpu.matmul %132, %131, %cst_56 {dimension_numbers = #tpu.dot_dimension_numbers<[1], [0], [0], [1], [0, 0, 1, 1], [], []>} : vector<28x56xf32>, vector<56x280xf32>, vector<28x280xf32> -> vector<28x280xf32>
    %c0_57 = arith.constant 0 : index
    %c0_58 = arith.constant 0 : index
    %134 = vector.load %arg12[%c0_57, %c0_58] : memref<280x140xf32, #tpu.memory_space<vmem>>, vector<280x140xf32>
    %cst_59 = arith.constant dense<0.000000e+00> : vector<28x140xf32>
    %135 = tpu.matmul %133, %134, %cst_59 {dimension_numbers = #tpu.dot_dimension_numbers<[1], [0], [0], [1], [0, 0, 1, 1], [], []>} : vector<28x280xf32>, vector<280x140xf32>, vector<28x140xf32> -> vector<28x140xf32>
    %136 = vector.extract_strided_slice %135 {offsets = [0, 0], sizes = [2, 140], strides = [1, 1]} : vector<28x140xf32> to vector<2x140xf32>
    %137 = vector.extract_strided_slice %135 {offsets = [2, 0], sizes = [2, 140], strides = [1, 1]} : vector<28x140xf32> to vector<2x140xf32>
    %138 = vector.extract_strided_slice %135 {offsets = [4, 0], sizes = [2, 140], strides = [1, 1]} : vector<28x140xf32> to vector<2x140xf32>
    %139 = vector.extract_strided_slice %135 {offsets = [6, 0], sizes = [2, 140], strides = [1, 1]} : vector<28x140xf32> to vector<2x140xf32>
    %140 = vector.extract_strided_slice %135 {offsets = [8, 0], sizes = [2, 140], strides = [1, 1]} : vector<28x140xf32> to vector<2x140xf32>
    %141 = vector.extract_strided_slice %135 {offsets = [10, 0], sizes = [2, 140], strides = [1, 1]} : vector<28x140xf32> to vector<2x140xf32>
    %142 = vector.extract_strided_slice %135 {offsets = [12, 0], sizes = [2, 140], strides = [1, 1]} : vector<28x140xf32> to vector<2x140xf32>
    %143 = vector.extract_strided_slice %135 {offsets = [14, 0], sizes = [2, 140], strides = [1, 1]} : vector<28x140xf32> to vector<2x140xf32>
    %144 = vector.extract_strided_slice %135 {offsets = [16, 0], sizes = [2, 140], strides = [1, 1]} : vector<28x140xf32> to vector<2x140xf32>
    %145 = vector.extract_strided_slice %135 {offsets = [18, 0], sizes = [2, 140], strides = [1, 1]} : vector<28x140xf32> to vector<2x140xf32>
    %146 = vector.extract_strided_slice %135 {offsets = [20, 0], sizes = [2, 140], strides = [1, 1]} : vector<28x140xf32> to vector<2x140xf32>
    %147 = vector.extract_strided_slice %135 {offsets = [22, 0], sizes = [2, 140], strides = [1, 1]} : vector<28x140xf32> to vector<2x140xf32>
    %148 = vector.extract_strided_slice %135 {offsets = [24, 0], sizes = [2, 140], strides = [1, 1]} : vector<28x140xf32> to vector<2x140xf32>
    %149 = vector.extract_strided_slice %135 {offsets = [26, 0], sizes = [2, 140], strides = [1, 1]} : vector<28x140xf32> to vector<2x140xf32>
    %150 = tpu.concatenate %136, %137, %138, %139, %140, %141, %142, %143, %144, %145, %146, %147, %148, %149 in 1 : vector<2x140xf32>, vector<2x140xf32>, vector<2x140xf32>, vector<2x140xf32>, vector<2x140xf32>, vector<2x140xf32>, vector<2x140xf32>, vector<2x140xf32>, vector<2x140xf32>, vector<2x140xf32>, vector<2x140xf32>, vector<2x140xf32>, vector<2x140xf32>, vector<2x140xf32> -> vector<2x1960xf32>
    %c0_60 = arith.constant 0 : index
    %c0_61 = arith.constant 0 : index
    %151 = vector.load %arg13[%c0_60, %c0_61] : memref<1960x144xf32, #tpu.memory_space<vmem>>, vector<1960x144xf32>
    %cst_62 = arith.constant dense<0.000000e+00> : vector<2x144xf32>
    %152 = tpu.matmul %150, %151, %cst_62 {dimension_numbers = #tpu.dot_dimension_numbers<[1], [0], [0], [1], [0, 0, 1, 1], [], []>} : vector<2x1960xf32>, vector<1960x144xf32>, vector<2x144xf32> -> vector<2x144xf32>
    %c0_63 = arith.constant 0 : index
    %c0_64 = arith.constant 0 : index
    %153 = vector.load %arg14[%c0_63, %c0_64] : memref<1x144xf32, #tpu.memory_space<vmem>>, vector<1x144xf32>
    %154 = vector.broadcast %153 : vector<1x144xf32> to vector<2x144xf32>
    %155 = arith.addf %152, %154 : vector<2x144xf32>
    %cst_65 = arith.constant 0.000000e+00 : f32
    %156 = vector.broadcast %cst_65 : f32 to vector<2x144xf32>
    %157 = arith.maximumf %155, %156 : vector<2x144xf32>
    %c0_66 = arith.constant 0 : index
    %c0_67 = arith.constant 0 : index
    %158 = vector.load %arg15[%c0_66, %c0_67] : memref<144x36xf32, #tpu.memory_space<vmem>>, vector<144x36xf32>
    %cst_68 = arith.constant dense<0.000000e+00> : vector<2x36xf32>
    %159 = tpu.matmul %157, %158, %cst_68 {dimension_numbers = #tpu.dot_dimension_numbers<[1], [0], [0], [1], [0, 0, 1, 1], [], []>} : vector<2x144xf32>, vector<144x36xf32>, vector<2x36xf32> -> vector<2x36xf32>
    %c0_69 = arith.constant 0 : index
    %c0_70 = arith.constant 0 : index
    %160 = vector.load %arg16[%c0_69, %c0_70] : memref<1x36xf32, #tpu.memory_space<vmem>>, vector<1x36xf32>
    %161 = vector.broadcast %160 : vector<1x36xf32> to vector<2x36xf32>
    %162 = arith.addf %159, %161 : vector<2x36xf32>
    %cst_71 = arith.constant 0.000000e+00 : f32
    %163 = vector.broadcast %cst_71 : f32 to vector<2x36xf32>
    %164 = arith.maximumf %162, %163 : vector<2x36xf32>
    %c0_72 = arith.constant 0 : index
    %c0_73 = arith.constant 0 : index
    %165 = vector.load %arg17[%c0_72, %c0_73] : memref<2x36xf32, #tpu.memory_space<vmem>>, vector<2x36xf32>
    tpu.vector_store %arg17[%c0_72, %c0_73], %164 {strides = array<i32>} : memref<2x36xf32, #tpu.memory_space<vmem>>, vector<2x36xf32>,
    return
  }
}

</mosaic_0001>

<bundles_post_ra>
// kernel: model_forward.1
= control target key start
LH: loop header
LB: loop body
LE: loop exit
PB: predicated region body
PF: predicated region fallthrough
CT: control target
= control target key end

     0   :  { %s9800_s0 = inlined_call_operand.vmem [shape: f32[56,28], index: 0, kind: input, shape index: {}]   ;;  %s9801_s1 = inlined_call_operand.vmem [shape: f32[84,112], index: 1, kind: input, shape index: {}]   ;;  %s9802_s2 = inlined_call_operand.vmem [shape: f32[1,112], index: 2, kind: input, shape index: {}]   ;;  %s9803_s3 = inlined_call_operand.vmem [shape: f32[1,112], index: 3, kind: input, shape index: {}]   ;;  %s9804_s4 = inlined_call_operand.vmem [shape: f32[112,4], index: 4, kind: input, shape index: {}]   ;;  %s9805_s5 = inlined_call_operand.vmem [shape: f32[4,112], index: 5, kind: input, shape index: {}]   ;;  %s9806_s6 = inlined_call_operand.vmem [shape: f32[336,280], index: 6, kind: input, shape index: {}]   ;;  %s9807_s7 = inlined_call_operand.vmem [shape: f32[1,280], index: 7, kind: input, shape index: {}]   ;;  %s9808_s8 = inlined_call_operand.vmem [shape: f32[1,280], index: 8, kind: input, shape index: {}]   ;;  %s9809_s9 = inlined_call_operand.vmem [shape: f32[280,10], index: 9, kind: input, shape index: {}]   ;;  %s9810_s10 = inlined_call_operand.vmem [shape: f32[10,280], index: 10, kind: input, shape index: {}]   ;;  %s9811_s11 = inlined_call_operand.vmem [shape: f32[28,56], index: 11, kind: input, shape index: {}]   ;;  %s9812_s12 = inlined_call_operand.vmem [shape: f32[280,140], index: 12, kind: input, shape index: {}]   ;;  %s9813_s13 = inlined_call_operand.vmem [shape: f32[1960,144], index: 13, kind: input, shape index: {}]   ;;  %s9814_s14 = inlined_call_operand.vmem [shape: f32[1,144], index: 14, kind: input, shape index: {}]   ;;  %s9815_s15 = inlined_call_operand.vmem [shape: f32[144,36], index: 15, kind: input, shape index: {}]   ;;  %s9816_s16 = inlined_call_operand.vmem [shape: f32[1,36], index: 16, kind: input, shape index: {}]   ;;  %s9817_s17 = inlined_call_operand.hbm [shape: f32[2,36], index: 17, kind: output, shape index: {}]  }
   0x1   :  { %9820 = sst [smem:[#allocation5_spill]] %s9800_s0 }
   0x2   :  { %9821 = sst [smem:[#allocation6_spill]] %s9801_s1 }
   0x3   :  { %s9822_s26 = sld [smem:[#allocation5_spill]]  ;;  %v57_v2 = vlaneseq  ;;  %s6072_s29 = smov 28   ;;  %vm283_vm0 = vcmask 1046528   ;;  %v6073_v15 = vmov 0  }
   0x5   :  { %v6198_v3 = vshrl.u32 %v57_v2, 7 }
   0x7   :  { %v6202_v5 = vmul.u32.u64.low 2454267026, %v6198_v3  ;;  %v6203_v6 = vmul.u32.u64.high 2454267026, %v6198_v3, %v6202_v5  ;;  %v59_v7 = vadd.s32 8, %v6198_v3  ;;  %v60_v10 = vadd.s32 16, %v6198_v3 }
   0x8   :  { %v6214_v11 = vadd.s32 24, %v6198_v3  ;;  %v6220_v14 = vadd.s32 32, %v6198_v3 }
   0x9   :  { %v6187_v0 = vld [vmem:[%s9822_s26] sm:$0xff]  ;;  %v6192_v1 = vld [vmem:[%s9822_s26 + $0x8] sm:$0xff]  ;;  %v6209_v8 = vld [vmem:[%s9822_s26 + $0x10] sm:$0xff]  ;;  %vm71_vm1 = vc.u32 %v6202_v5, 2454267026 }
   0xa   :  { %312 = vrot.lane.b32.xlu0 %v6187_v0, %s6072_s29  ;;  %314 = vrot.lane.b32.xlu1 %v6192_v1, %s6072_s29  ;;  %v284_v4 = vrot.slane %v6187_v0, 1  ;;  %v285_v9 = vrot.slane %v6192_v1, 1  ;;  %v6216_v12 = vmul.u32.u64.low 2454267026, %v59_v7  ;;  %v6217_v13 = vmul.u32.u64.high 2454267026, %v59_v7, %v6216_v12 }
   0xb   :  { %v72_v16 = vsel %vm71_vm1, 1, %v6073_v15  ;;  %v287_v17 = vrot.slane %v6209_v8, 1  ;;  %v6224_v18 = vmul.u32.u64.low 2454267026, %v60_v10  ;;  %v6225_v19 = vmul.u32.u64.high 2454267026, %v60_v10, %v6224_v18 }
   0xc   :  { %v73_v20 = vadd.s32 %v6203_v6, %v72_v16  ;;  %vm85_vm2 = vc.u32 %v6216_v12, 2454267026  ;;  %v6229_v21 = vmul.u32.u64.low 2454267026, %v6214_v11  ;;  %v6230_v22 = vmul.u32.u64.high 2454267026, %v6214_v11, %v6229_v21 }
   0xd   :  { %22 = vsyncpa [#allocation3], 0  ;;  %v86_v23 = vsel %vm85_vm2, 1, %v6073_v15  ;;  %vm99_vm3 = vc.u32 %v6224_v18, 2454267026  ;;  %v6242_v29 = vld [vmem:[%s9822_s26 + $0x18] sm:$0xff]  ;;  %v286_v30 = vsel %vm283_vm0, %v284_v4, %v285_v9  ;;  %v288_v52 = vsel %vm283_vm0, %v285_v9, %v287_v17 }
   0xe   :  { %v6234_v24 = vmul.u32.u64.low 2454267026, %v6220_v14  ;;  %v6235_v25 = vmul.u32.u64.high 2454267026, %v6220_v14, %v6234_v24  ;;  %v74_v26 = vshrl.u32 %v73_v20, 4  ;;  %v87_v27 = vadd.s32 %v6217_v13, %v86_v23  ;;  %v6250_v33 = vld [vmem:[%s9822_s26 + $0x20] sm:$0xff]  ;;  %s6075_s21 = smov 56   ;;  %s9823_s27 = sld [smem:[#allocation6_spill]] }
   0xf   :  { %v100_v28 = vsel %vm99_vm3, 1, %v6073_v15  ;;  %vm113_vm4 = vc.u32 %v6229_v21, 2454267026  ;;  %v289_v39 = vrot.slane %v6242_v29, 1  ;;  %v6257_v41 = vadd.s32 40, %v6198_v3  ;;  %s6079_s30 = smov 96  }
  0x10   :  { %v101_v31 = vadd.s32 %v6225_v19, %v100_v28  ;;  %v114_v32 = vsel %vm113_vm4, 1, %v6073_v15  ;;  %vm127_vm5 = vc.u32 %v6234_v24, 2454267026  ;;  %v75_v34 = vmul.u32 28, %v74_v26  ;;  %s6088_s24 = smov 24   ;;  %s6090_s25 = smov 4  }
  0x11   :  { %v88_v35 = vshrl.u32 %v87_v27, 4  ;;  %v115_v36 = vadd.s32 %v6230_v22, %v114_v32  ;;  %v128_v37 = vsel %vm127_vm5, 1, %v6073_v15  ;;  %v291_v45 = vrot.slane %v6250_v33, 1 }
  0x12   :  { %v102_v38 = vshrl.u32 %v101_v31, 4  ;;  %v129_v40 = vadd.s32 %v6235_v25, %v128_v37  ;;  %v76_v42 = vsub.s32 %v6198_v3, %v75_v34  ;;  %v290_v58 = vsel %vm283_vm0, %v287_v17, %v289_v39  ;;  %v6336_v31 = vld [vmem:[%s9822_s26 + $0x30] sm:$0xff] }
  0x13   :  { %v89_v43 = vmul.u32 28, %v88_v35  ;;  %v116_v44 = vshrl.u32 %v115_v36, 4  ;;  %v6262_v48 = vmul.u32.u64.low 2454267026, %v6257_v41  ;;  %v6263_v49 = vmul.u32.u64.high 2454267026, %v6257_v41, %v6262_v48 }
  0x14   :  { %v103_v46 = vmul.u32 28, %v102_v38  ;;  %v130_v47 = vshrl.u32 %v129_v40, 4  ;;  %vm163_vm6 = vcmp.ne.s32.totalorder %v76_v42, 0  ;;  %vm170_vm7 = vcmp.lt.s32.totalorder %v76_v42, 0  ;;  %v377_v22 = vld [vmem:[%s9823_s27] sm:$0xff]  ;;  %v378_v23 = vld [vmem:[%s9823_s27 + $0x8] sm:$0xff] }
  0x15   :  { %v184_v50 = vadd.s32 28, %v76_v42  ;;  %v90_v51 = vsub.s32 %v59_v7, %v89_v43  ;;  %vm177_vm8 = vmand %vm170_vm7, %vm163_vm6  ;;  %v117_v54 = vmul.u32 28, %v116_v44  ;;  %v6074_v59 = vmov 0.0   ;;  %v379_v27 = vld [vmem:[%s9823_s27 + $0x10] sm:$0xff]  ;;  %v380_v28 = vld [vmem:[%s9823_s27 + $0x18] sm:$0xff] }
  0x16   :  { %v104_v53 = vsub.s32 %v60_v10, %v103_v46  ;;  %v131_v55 = vmul.u32 28, %v130_v47  ;;  %vm141_vm2 = vc.u32 %v6262_v48, 2454267026  ;;  %v292_v10 = vsel %vm283_vm0, %v289_v39, %v291_v45  ;;  %v382_v46 = vld [vmem:[%s9823_s27 + $0x28] sm:$0xff] }
  0x17   :  { %v6266_v56 = vsel %vm177_vm8, %v184_v50, %v76_v42  ;;  %vm164_vm9 = vcmp.ne.s32.totalorder %v90_v51, 0  ;;  %vm171_vm10 = vcmp.lt.s32.totalorder %v90_v51, 0  ;;  %v185_v57 = vadd.s32 28, %v90_v51 }
  0x18   :  { %vm219_vm11 = vcmp.ne.s32.totalorder %v6266_v56, 27  ;;  %vm178_vm12 = vmand %vm171_vm10, %vm164_vm9  ;;  %vm165_vm13 = vcmp.ne.s32.totalorder %v104_v53, 0  ;;  %vm172_vm14 = vcmp.lt.s32.totalorder %v104_v53, 0  ;;  %v186_v62 = vadd.s32 28, %v104_v53 }
  0x19   :  { %v6271_v60 = vsel %vm219_vm11, 1.0, %v6074_v59  ;;  %v6273_v61 = vsel %vm178_vm12, %v185_v57, %v90_v51  ;;  %vm179_vm15 = vmand %vm172_vm14, %vm165_vm13  ;;  %v118_v63 = vsub.s32 %v6214_v11, %v117_v54  ;;  %v132_v4 = vsub.s32 %v6220_v14, %v131_v55  ;;  %v6293_v11 = vld [vmem:[%s9822_s26 + $0x28] sm:$0xff]  ;;  %v383_v54 = vld [vmem:[%s9823_s27 + $0x30] sm:$0xff] }
  0x1a   :  { %v305_v2 = vmul.f32 %v6271_v60, %v286_v30  ;;  %vm220_vm1 = vcmp.ne.s32.totalorder %v6273_v61, 27  ;;  %v6282_v6 = vsel %vm179_vm15, %v186_v62, %v104_v53  ;;  %v142_v17 = vsel %vm141_vm2, 1, %v6073_v15  ;;  %v384_v55 = vld [vmem:[%s9823_s27 + $0x38] sm:$0xff] }
  0x1b   :  { %v6280_v5 = vsel %vm220_vm1, 1.0, %v6074_v59  ;;  %vm166_vm3 = vcmp.ne.s32.totalorder %v118_v63, 0  ;;  %vm173_vm4 = vcmp.lt.s32.totalorder %v118_v63, 0  ;;  %vm221_vm5 = vcmp.ne.s32.totalorder %v6282_v6, 27 }
  0x1c   :  { %340 = vrot.lane.b32.xlu0 %v305_v2, %s6075_s21  ;;  %v306_v7 = vmul.f32 %v6280_v5, %v288_v52  ;;  %vm180_vm6 = vmand %vm173_vm4, %vm166_vm3  ;;  %v187_v9 = vadd.s32 28, %v118_v63  ;;  %v6296_v12 = vsel %vm221_vm5, 1.0, %v6074_v59  ;;  %vm167_vm7 = vcmp.ne.s32.totalorder %v132_v4, 0 }
  0x1d   :  { %vm174_vm8 = vcmp.lt.s32.totalorder %v132_v4, 0  ;;  %v188_v13 = vadd.s32 28, %v132_v4  ;;  %v307_v14 = vmul.f32 %v6296_v12, %v290_v58  ;;  %v6305_v18 = vadd.s32 48, %v6198_v3 }
  0x1e   :  { %342 = vrot.lane.b32.xlu1 %v306_v7, %s6075_s21  ;;  %v6300_v16 = vsel %vm180_vm6, %v187_v9, %v118_v63  ;;  %vm181_vm9 = vmand %vm174_vm8, %vm167_vm7  ;;  %v293_v20 = vrot.slane %v6293_v11, 1  ;;  %v143_v21 = vadd.s32 %v6263_v49, %v142_v17  ;;  %v256_v25 = vrot.slane %v6192_v1, 7  ;;  %v385_v9 = vld [vmem:[%s9823_s27 + $0x40] sm:$0xff] }
  0x1f   :  { %vm222_vm10 = vcmp.ne.s32.totalorder %v6300_v16, 27  ;;  %v6308_v19 = vsel %vm181_vm9, %v188_v13, %v132_v4  ;;  %v6339_v1 = vmul.u32.u64.low 2454267026, %v6305_v18  ;;  %v6340_v32 = vmul.u32.u64.high 2454267026, %v6305_v18, %v6339_v1 }
  0x20   :  { %316 = vrot.lane.b32.xlu0 %v6209_v8, %s6072_s29  ;;  %v6321_v24 = vsel %vm222_vm10, 1.0, %v6074_v59  ;;  %vm223_vm11 = vcmp.ne.s32.totalorder %v6308_v19, 27  ;;  %v144_v26 = vshrl.u32 %v143_v21, 4  ;;  %v6076_v34 = vmov 0.0|0.0  }
  0x21   :  { %v308_v30 = vmul.f32 %v6321_v24, %v292_v10  ;;  %5001 = vmatprep.subr.bf16.mxu0 %v6076_v34  ;;  %v5002_v35 = vpack.c.bf16 %v378_v23, %v377_v22  ;;  %v6344_v36 = vsel %vm223_vm11, 1.0, %v6074_v59  ;;  %v294_v37 = vsel %vm283_vm0, %v291_v45, %v293_v20  ;;  %5016 = vmatprep.subr.bf16.mxu1 %v6076_v34  ;;  %v381_v45 = vld [vmem:[%s9823_s27 + $0x20] sm:$0xff]  ;;  %v386_v10 = vld [vmem:[%s9823_s27 + $0x48] sm:$0xff] }
  0x22   :  { %344 = vrot.lane.b32.xlu1 %v307_v14, %s6075_s21  ;;  %v145_v38 = vmul.u32 28, %v144_v26  ;;  %v255_v39 = vrot.slane %v6187_v0, 7  ;;  %vm155_vm12 = vc.u32 %v6339_v1, 2454267026  ;;  %v5005_v40 = vpack.c.bf16 %v380_v28, %v379_v27  ;;  %v387_v26 = vld [vmem:[%s9823_s27 + $0x50] sm:$0xf] }
  0x23   :  { %5003 = vmatpush3.bf16.msra.mxu0 %v5002_v35  ;;  %vm254_vm13 = vcmask 1040384   ;;  %v295_v43 = vrot.slane %v6336_v31, 1  ;;  %v156_v44 = vsel %vm155_vm12, 1, %v6073_v15  ;;  %v309_v47 = vmul.f32 %v6344_v36, %v294_v37  ;;  %s6087_s27 = smov 120  }
  0x24   :  { %318 = vrot.lane.b32.xlu0 %v6242_v29, %s6072_s29  ;;  %v146_v42 = vsub.s32 %v6257_v41, %v145_v38  ;;  %5004 = vmatprep.subr.bf16.mxu0 %v6076_v34  ;;  %v157_v41 = vadd.s32 %v6340_v32, %v156_v44  ;;  %v6369_v15 = vsel %vm254_vm13, %v255_v39, %v256_v25  ;;  %v258_v51 = vrot.slane %v6209_v8, 7 }
  0x25   :  { %v5008_v50 = vpack.c.bf16 %v382_v46, %v381_v45  ;;  %v296_v53 = vsel %vm283_vm0, %v293_v20, %v295_v43  ;;  %vm6077_vm2 = vmmov 0   ;;  %v260_v8 = vrot.slane %v6242_v29, 7 }
  0x26   :  { %346 = vrot.lane.b32.xlu1 %v308_v30, %s6075_s21  ;;  %vm168_vm14 = vcmp.ne.s32.totalorder %v146_v42, 0  ;;  %vm175_vm15 = vcmp.lt.s32.totalorder %v146_v42, 0  ;;  %v189_v48 = vadd.s32 28, %v146_v42  ;;  %v158_v49 = vshrl.u32 %v157_v41, 4  ;;  %4815 = vmatprep.mubr.msk.f32.mxu0 %vm6077_vm2, %v6074_v59 }
  0x27   :  { %vm182_vm1 = vmand %vm175_vm15, %vm168_vm14  ;;  %5006 = vmatpush3.bf16.msra.mxu0 %v5005_v40  ;;  %v259_v58 = vsel %vm254_vm13, %v256_v25, %v258_v51  ;;  %4864 = vmatprep.mubr.msk.f32.mxu1 %vm6077_vm2, %v6074_v59  ;;  %v6396_v63 = vsel %vm254_vm13, %v258_v51, %v260_v8  ;;  %v262_v2 = vrot.slane %v6250_v33, 7  ;;  %v5011_v7 = vpack.c.bf16 %v384_v55, %v383_v54 }
  0x28   :  { %320 = vrot.lane.b32.xlu0 %v6250_v33, %s6072_s29  ;;  %v6374_v52 = vsel %vm182_vm1, %v189_v48, %v146_v42  ;;  %5007 = vmatprep.subr.bf16.mxu0 %v6076_v34  ;;  %v159_v57 = vmul.u32 28, %v158_v49  ;;  %v264_v13 = vrot.slane %v6293_v11, 7  ;;  %v266_v14 = vrot.slane %v6336_v31, 7 }
  0x29   :  { %vm224_vm3 = vcmp.ne.s32.totalorder %v6374_v52, 27  ;;  %v6411_v33 = vsel %vm254_vm13, %v260_v8, %v262_v2  ;;  %v5014_v22 = vpack.c.bf16 %v386_v10, %v385_v9  ;;  %vm410_vm8 = vcmask 1043456  }
  0x2a   :  { %348 = vrot.lane.b32.xlu1 %v309_v47, %s6075_s21  ;;  %v6393_v62 = vsel %vm224_vm3, 1.0, %v6074_v59  ;;  %v160_v4 = vsub.s32 %v6305_v18, %v159_v57  ;;  %v6417_v18 = vsel %vm254_vm13, %v262_v2, %v264_v13  ;;  %v6420_v20 = vsel %vm254_vm13, %v264_v13, %v266_v14  ;;  %v515_v13 = vld [vmem:[%s9804_s4 + $0x8] sm:$0xff] }
  0x2b   :  { %v310_v29 = vmul.f32 %v6393_v62, %v296_v53  ;;  %5009 = vmatpush3.bf16.msra.mxu0 %v5008_v50  ;;  %vm198_vm9 = vcmp.ne.s32.totalorder %v6266_v56, 0  ;;  %vm199_vm10 = vcmp.ne.s32.totalorder %v6273_v61, 0  ;;  %v275_v27 = vsel %vm254_vm13, 0.0, %v255_v39 }
  0x2c   :  { %322 = vrot.lane.b32.xlu0 %v6293_v11, %s6072_s29  ;;  %5010 = vmatprep.subr.bf16.mxu0 %v6076_v34  ;;  %vm169_vm4 = vcmp.ne.s32.totalorder %v160_v4, 0  ;;  %vm176_vm5 = vcmp.lt.s32.totalorder %v160_v4, 0  ;;  %v190_v17 = vadd.s32 28, %v160_v4  ;;  %v304_v11 = vsel %vm283_vm0, %v295_v43, 0.0 }
  0x2d   :  { %vm183_vm6 = vmand %vm176_vm5, %vm169_vm4  ;;  %v6446_v28 = vsel %vm198_vm9, 1.0, %v6074_v59  ;;  %vm200_vm11 = vcmp.ne.s32.totalorder %v6282_v6, 0  ;;  %vm361_vm12 = vcmask 228352   ;;  %vm369_vm14 = vcmask 457728  }
  0x2e   :  { %350 = vrot.lane.b32.xlu1 %v310_v29, %s6075_s21  ;;  %v6424_v21 = vsel %vm183_vm6, %v190_v17, %v160_v4  ;;  %v276_v1 = vmul.f32 %v6446_v28, %v275_v27  ;;  %v6456_v0 = vsel %vm200_vm11, 1.0, %v6074_v59  ;;  %vm201_vm15 = vcmp.ne.s32.totalorder %v6300_v16, 0  ;;  %v516_v17 = vld [vmem:[%s9804_s4 + $0x10] sm:$0xff] }
  0x2f   :  { %5012 = vmatpush3.bf16.msra.mxu0 %v5011_v7  ;;  %vm225_vm7 = vcmp.ne.s32.totalorder %v6424_v21, 27  ;;  %vm388_vm1 = vcmask 687104   ;;  %v278_v37 = vmul.f32 %v6456_v0, %v259_v58  ;;  %v6465_v40 = vsel %vm201_vm15, 1.0, %v6074_v59 }
  0x30   :  { %324 = vrot.lane.b32.xlu0 %v6336_v31, %s6072_s29  ;;  %5013 = vmatprep.subr.bf16.mxu0 %v6076_v34  ;;  %v6430_v23 = vsel %vm225_vm7, 1.0, %v6074_v59  ;;  %v6450_v31 = vsel %vm199_vm10, 1.0, %v6074_v59  ;;  %vm202_vm3 = vcmp.ne.s32.totalorder %v6308_v19, 0  ;;  %v279_v44 = vmul.f32 %v6465_v40, %v6396_v63 }
  0x31   :  { %v311_v25 = vmul.f32 %v6430_v23, %v304_v11  ;;  %v277_v56 = vmul.f32 %v6450_v31, %v6369_v15  ;;  %v6476_v46 = vsel %vm202_vm3, 1.0, %v6074_v59  ;;  %vm203_vm4 = vcmp.ne.s32.totalorder %v6374_v52, 0  ;;  %v519_v11 = vld [vmem:[%s9804_s4 + $0x28] sm:$0xff] }
  0x32   :  { %v280_v15 = vmul.f32 %v6476_v46, %v6411_v33  ;;  %v6487_v49 = vsel %vm203_vm4, 1.0, %v6074_v59  ;;  %vm204_vm5 = vcmp.ne.s32.totalorder %v6424_v21, 0  ;;  %v514_v33 = vld [vmem:[%s9804_s4] sm:$0xff]  ;;  %vm531_vm6 = vcmask 916480  }
  0x33   :  { %5015 = vmatpush3.bf16.msra.mxu0 %v5014_v22  ;;  %352 = vrot.lane.b32.xlu1 %v311_v25, %s6075_s21  ;;  %v281_v53 = vmul.f32 %v6487_v49, %v6417_v18  ;;  %v6501_v57 = vsel %vm204_vm5, 1.0, %v6074_v59  ;;  %v5017_v14 = vpack.c.bf16 %v515_v13, %v514_v33  ;;  %v517_v18 = vld [vmem:[%s9804_s4 + $0x18] sm:$0xff]  ;;  %v518_v21 = vld [vmem:[%s9804_s4 + $0x20] sm:$0xff]  ;;  %v520_v25 = vld [vmem:[%s9804_s4 + $0x30] sm:$0xff]  ;;  %vm624_vm7 = vcmask 31744   ;;  %s6085_s21 = smov 108  }
  0x34   :  { %4813 = vmatprep.subr.mxu0 %v6074_v59  ;;  %v282_v29 = vmul.f32 %v6501_v57, %v6420_v20  ;;  %v5020_v20 = vpack.c.bf16 %v517_v18, %v516_v17  ;;  %v5023_v22 = vpack.c.bf16 %v519_v11, %v518_v21  ;;  %v528_v11 = vld [vmem:[%s9805_s5] sm:$0xf]  ;;  %vm1669_vm9 = vcmask 195584   ;;  %s6086_s5 = smov 12  }
  0x35   :  { %5018 = vmatpush3.bf16.msra.mxu1 %v5017_v14  ;;  %vm1836_vm10 = vcmask 1041408   ;;  %vm6080_vm11 = vmmov 1   ;;  %vm1832_vm3 = vcmask 80896   ;;  %vm2556_vm4 = vcmask 1039360  }
  0x36   :  { %5019 = vmatprep.subr.bf16.mxu1 %v6076_v34  ;;  %vm7343_vm15 = vmpackc.low %vm1836_vm10, %vm6080_vm11  ;;  %vm3261_vm5 = vcmask 883712   ;;  %vm3203_vm10 = vcmask 293888   ;;  %vm3213_vm11 = vcmask 392192  }
  0x37   :  { %4814 = vmatpush3.msk.msra.mxu0 %vm410_vm8, %v387_v26  ;;  %v521_v26 = vld [vmem:[%s9804_s4 + $0x38] sm:$0xff] }
  0x38   :  { %5037 = vmatprep.subr.bf16.mxu0 %v6076_v34  ;;  %v5026_v27 = vpack.c.bf16 %v521_v26, %v520_v25  ;;  %v6590_v26 = vsub.s32 0, %v6198_v3 }
  0x39   :  { %5021 = vmatpush3.bf16.msra.mxu1 %v5020_v20 }
  0x3a   :  { %5022 = vmatprep.subr.bf16.mxu1 %v6076_v34 }
  0x3d   :  { %5024 = vmatpush3.bf16.msra.mxu1 %v5023_v22 }
  0x3e   :  { %5025 = vmatprep.subr.bf16.mxu1 %v6076_v34 }
  0x41   :  { %5027 = vmatpush3.bf16.msra.mxu1 %v5026_v27 }
  0x42   :  { %5028 = vmatprep.subr.bf16.mxu1 %v6076_v34 }
  0x7c   :  { %v313_v30 = vpop.permute.xlu0 %312  ;;  %v315_v32 = vpop.permute.xlu1 %314 }
  0x7d   :  { %v362_v61 = vsel %vm361_vm12, %v276_v1, %v313_v30  ;;  %v363_v38 = vsel %vm361_vm12, %v277_v56, %v315_v32  ;;  %v522_v30 = vld [vmem:[%s9804_s4 + $0x40] sm:$0xff]  ;;  %v523_v1 = vld [vmem:[%s9804_s4 + $0x48] sm:$0xff]  ;;  %v524_v56 = vld [vmem:[%s9804_s4 + $0x50] sm:$0xff] }
  0x7e   :  { %v5029_v32 = vpack.c.bf16 %v523_v1, %v522_v30 }
  0x80   :  { %5030 = vmatpush3.bf16.msra.mxu1 %v5029_v32 }
  0x81   :  { %5031 = vmatprep.subr.bf16.mxu1 %v6076_v34 }
  0x8e   :  { %v341_v6 = vpop.permute.xlu0 %340 }
  0x8f   :  { %v370_v35 = vsel %vm369_vm14, %v362_v61, %v341_v6  ;;  %v525_v61 = vld [vmem:[%s9804_s4 + $0x58] sm:$0xff] }
  0x90   :  { %4816 = vmatmul.mubr.msk.f32.vlgmr.msra.gmra.mrb[0].mxu0 %vm388_vm1, %v370_v35  ;;  %v343_v39 = vpop.permute.xlu1 %342  ;;  %v5032_v6 = vpack.c.bf16 %v525_v61, %v524_v56  ;;  %v526_v35 = vld [vmem:[%s9804_s4 + $0x60] sm:$0xff] }
  0x91   :  { %4818 = vmatprep.mubr.msk.f32.mxu0 %vm6077_vm2, %v6074_v59  ;;  %v371_v42 = vsel %vm369_vm14, %v363_v38, %v343_v39  ;;  %5039 = vmatpush3.bf16.msra.mxu0 %v5017_v14 }
  0x92   :  { %v317_v16 = vpop.permute.xlu0 %316  ;;  %5040 = vmatprep.subr.bf16.mxu0 %v6076_v34  ;;  %5033 = vmatpush3.bf16.msra.mxu1 %v5032_v6 }
  0x93   :  { %v364_v43 = vsel %vm361_vm12, %v278_v37, %v317_v16  ;;  %5034 = vmatprep.subr.bf16.mxu1 %v6076_v34  ;;  %v527_v37 = vld [vmem:[%s9804_s4 + $0x68] sm:$0xff]  ;;  %s6084_s4 = smov 84  }
  0x94   :  { %4819 = vmatmul.mubr.msk.f32.gmra.mrb[2].mxu0 %vm388_vm1, %v371_v42  ;;  %v345_v45 = vpop.permute.xlu1 %344  ;;  %v5035_v38 = vpack.c.bf16 %v527_v37, %v526_v35 }
  0x95   :  { %v372_v19 = vsel %vm369_vm14, %v364_v43, %v345_v45  ;;  %4821 = vmatprep.mubr.msk.f32.mxu0 %vm6077_vm2, %v6074_v59  ;;  %5042 = vmatpush3.bf16.msra.mxu0 %v5020_v20 }
  0x96   :  { %v319_v47 = vpop.permute.xlu0 %318  ;;  %5043 = vmatprep.subr.bf16.mxu0 %v6076_v34  ;;  %5036 = vmatpush3.bf16.msra.mxu1 %v5035_v38 }
  0x97   :  { %v365_v41 = vsel %vm361_vm12, %v279_v44, %v319_v47  ;;  %4867 = vmatprep.subr.mxu1 %v6074_v59 }
  0x98   :  { %4822 = vmatmul.mubr.msk.f32.gmra.mrb[4].mxu0 %vm388_vm1, %v372_v19  ;;  %v347_v48 = vpop.permute.xlu1 %346 }
  0x99   :  { %v373_v50 = vsel %vm369_vm14, %v365_v41, %v347_v48  ;;  %4824 = vmatprep.mubr.msk.f32.mxu0 %vm6077_vm2, %v6074_v59  ;;  %5045 = vmatpush3.bf16.msra.mxu0 %v5023_v22 }
  0x9a   :  { %v321_v51 = vpop.permute.xlu0 %320  ;;  %5046 = vmatprep.subr.bf16.mxu0 %v6076_v34 }
  0x9b   :  { %v366_v52 = vsel %vm361_vm12, %v280_v15, %v321_v51 }
  0x9c   :  { %4825 = vmatmul.mubr.msk.f32.gmra.mrb[6].mxu0 %vm388_vm1, %v373_v50  ;;  %v349_v54 = vpop.permute.xlu1 %348 }
  0x9d   :  { %v374_v55 = vsel %vm369_vm14, %v366_v52, %v349_v54  ;;  %4827 = vmatprep.mubr.msk.f32.mxu0 %vm6077_vm2, %v6074_v59  ;;  %5048 = vmatpush3.bf16.msra.mxu0 %v5026_v27 }
  0x9e   :  { %v323_v8 = vpop.permute.xlu0 %322  ;;  %5049 = vmatprep.subr.bf16.mxu0 %v6076_v34 }
  0x9f   :  { %v367_v58 = vsel %vm361_vm12, %v281_v53, %v323_v8 }
  0xa0   :  { %4828 = vmatmul.mubr.msk.f32.gmra.mrb[8].mxu0 %vm388_vm1, %v374_v55  ;;  %v351_v63 = vpop.permute.xlu1 %350 }
  0xa1   :  { %v375_v2 = vsel %vm369_vm14, %v367_v58, %v351_v63  ;;  %4830 = vmatprep.mubr.msk.f32.mxu0 %vm6077_vm2, %v6074_v59  ;;  %5051 = vmatpush3.bf16.msra.mxu0 %v5029_v32 }
  0xa2   :  { %v325_v4 = vpop.permute.xlu0 %324  ;;  %5052 = vmatprep.subr.bf16.mxu0 %v6076_v34 }
  0xa3   :  { %v368_v7 = vsel %vm361_vm12, %v282_v29, %v325_v4 }
  0xa4   :  { %4831 = vmatmul.mubr.msk.f32.gmra.mrb[10].mxu0 %vm388_vm1, %v375_v2 }
  0xa5   :  { %4833 = vmatprep.mubr.msk.f32.mxu0 %vm6077_vm2, %v6074_v59  ;;  %v353_v9 = vpop.permute.xlu1 %352  ;;  %5054 = vmatpush3.bf16.msra.mxu0 %v5032_v6 }
  0xa6   :  { %v376_v10 = vsel %vm369_vm14, %v368_v7, %v353_v9  ;;  %5055 = vmatprep.subr.bf16.mxu0 %v6076_v34 }
  0xa8   :  { %4834 = vmatmul.mubr.msk.f32.gmra.mrb[12].mxu0 %vm388_vm1, %v376_v10 }
  0xa9   :  { %4900 = vmatprep.mubr.msk.f32.mxu0 %vm6077_vm2, %v6074_v59  ;;  %5057 = vmatpush3.bf16.msra.mxu0 %v5035_v38 }
  0xaa   :  { %4903 = vmatprep.subr.mxu0 %v6074_v59 }
 0x163   :  { %v480_v39 = vpop.f32.mrb[0].mxu0 }
 0x164   :  { %v4817_v16 = vpop.f32.mrb[1].mxu0  ;;  %v532_v43 = vsel %vm531_vm6, %v480_v39, 0.0 }
 0x167   :  { %v485_v42 = vpop.f32.mrb[2].mxu0 }
 0x168   :  { %v533_v44 = vsel %vm531_vm6, %v485_v42, 0.0  ;;  %v4820_v45 = vpop.f32.mrb[3].mxu0 }
 0x169   :  { %v534_v19 = vadd.f32 %v533_v44, %v532_v43 }
 0x16b   :  { %v490_v47 = vpop.f32.mrb[4].mxu0 }
 0x16c   :  { %v535_v41 = vsel %vm531_vm6, %v490_v47, 0.0  ;;  %v4823_v15 = vpop.f32.mrb[5].mxu0 }
 0x16d   :  { %v536_v48 = vadd.f32 %v535_v41, %v534_v19 }
 0x16f   :  { %v495_v50 = vpop.f32.mrb[6].mxu0 }
 0x170   :  { %v537_v51 = vsel %vm531_vm6, %v495_v50, 0.0  ;;  %v4826_v52 = vpop.f32.mrb[7].mxu0 }
 0x171   :  { %v538_v53 = vadd.f32 %v537_v51, %v536_v48 }
 0x173   :  { %v500_v54 = vpop.f32.mrb[8].mxu0 }
 0x174   :  { %v539_v55 = vsel %vm531_vm6, %v500_v54, 0.0  ;;  %v4829_v8 = vpop.f32.mrb[9].mxu0 }
 0x175   :  { %v540_v58 = vadd.f32 %v539_v55, %v538_v53 }
 0x177   :  { %v505_v63 = vpop.f32.mrb[10].mxu0 }
 0x178   :  { %v541_v2 = vsel %vm531_vm6, %v505_v63, 0.0  ;;  %v4832_v29 = vpop.f32.mrb[11].mxu0 }
 0x179   :  { %v542_v4 = vadd.f32 %v541_v2, %v540_v58 }
 0x17b   :  { %v510_v7 = vpop.f32.mrb[12].mxu0 }
 0x17c   :  { %v543_v9 = vsel %vm531_vm6, %v510_v7, 0.0  ;;  %v4835_v10 = vpop.f32.mrb[13].mxu0 }
 0x17d   :  { %v544_v33 = vadd.f32 %v543_v9, %v542_v4 }
 0x17f   :  { %v545_v13 = vrot.slane %v544_v33, 4 }
 0x181   :  { %v546_v14 = vadd.f32 %v545_v13, %v544_v33 }
 0x183   :  { %v547_v17 = vrot.slane %v546_v14, 2 }
 0x185   :  { %v548_v18 = vadd.f32 %v547_v17, %v546_v14  ;;  %v1048_v17 = vld [vmem:[%s9806_s6 + $0x8] sm:$0xff] }
 0x187   :  { %v549_v20 = vrot.slane %v548_v18, 1 }
 0x189   :  { %v550_v21 = vadd.f32 %v549_v20, %v548_v18  ;;  %v1051_v18 = vld [vmem:[%s9806_s6 + $0x20] sm:$0xff] }
 0x18a   :  { %v1047_v20 = vld [vmem:[%s9806_s6] sm:$0xff] }
 0x18b   :  { %4865 = vmatmul.mubr.msk.f32.vlgmr.msra.gmra.mrb[0].mxu1 %vm531_vm6, %v550_v21  ;;  %v5058_v21 = vpack.c.bf16 %v1051_v18, %v1048_v17  ;;  %v1055_v18 = vld [vmem:[%s9806_s6 + $0x40] sm:$0xff] }
 0x18c   :  { %4868 = vmatpush3.msk.msra.mxu1 %vm410_vm8, %v528_v11  ;;  %4869 = vmatprep.mubr.msk.f32.mxu1 %vm6077_vm2, %v6074_v59 }
 0x18d   :  { %5059 = vmatprep.subr.bf16.mxu1 %v5058_v21 }
 0x25e   :  { %v620_v22 = vpop.f32.mrb[0].mxu1 }
 0x25f   :  { %v4866_v25 = vpop.f32.mrb[1].mxu1  ;;  %4870 = vmatmul.mubr.msk.f32.vlgmr.msra.gmra.mrb[2].mxu1 %vm624_vm7, %v620_v22  ;;  %v1054_v22 = vld [vmem:[%s9806_s6 + $0x38] sm:$0xff] }
 0x260   :  { %v1057_v25 = vld [vmem:[%s9806_s6 + $0x50] sm:$0xff] }
 0x332   :  { %v697_v27 = vpop.f32.mrb[2].mxu1 }
 0x333   :  { %v701_v30 = vmul.f32 0.0006377551, %v697_v27  ;;  %v4871_v1 = vpop.f32.mrb[3].mxu1 }
 0x334   :  { %v1053_v1 = vld [vmem:[%s9806_s6 + $0x30] sm:$0xff] }
 0x335   :  { %v705_v32 = vrot.slane %v701_v30, %v6590_v26  ;;  %v5062_v30 = vpack.c.bf16 %v1057_v25, %v1054_v22  ;;  %v1109_v25 = vld [vmem:[%s9806_s6 + $0x1f0] sm:$0xff] }
 0x337   :  { %v6593_v56 = vsub.f32 %v480_v39, %v705_v32  ;;  %v6595_v61 = vsub.f32 %v485_v42, %v705_v32  ;;  %v6597_v6 = vsub.f32 %v490_v47, %v705_v32  ;;  %v6599_v35 = vsub.f32 %v495_v50, %v705_v32 }
 0x338   :  { %v6601_v37 = vsub.f32 %v500_v54, %v705_v32  ;;  %v6603_v38 = vsub.f32 %v505_v63, %v705_v32  ;;  %v6605_v16 = vsub.f32 %v510_v7, %v705_v32  ;;  %v1056_v32 = vld [vmem:[%s9806_s6 + $0x48] sm:$0xff] }
 0x339   :  { %v713_v43 = vmul.f32 %v6593_v56, %v6593_v56  ;;  %v714_v44 = vmul.f32 %v6595_v61, %v6595_v61  ;;  %v715_v39 = vmul.f32 %v6597_v6, %v6597_v6  ;;  %v716_v42 = vmul.f32 %v6599_v35, %v6599_v35 }
 0x33a   :  { %v717_v41 = vmul.f32 %v6601_v37, %v6601_v37  ;;  %v718_v50 = vmul.f32 %v6603_v38, %v6603_v38  ;;  %v719_v53 = vmul.f32 %v6605_v16, %v6605_v16 }
 0x33b   :  { %v720_v45 = vsel %vm531_vm6, %v713_v43, 0.0  ;;  %v721_v19 = vsel %vm531_vm6, %v714_v44, 0.0  ;;  %v723_v15 = vsel %vm531_vm6, %v715_v39, 0.0  ;;  %v725_v51 = vsel %vm531_vm6, %v716_v42, 0.0  ;;  %v1060_v43 = vld [vmem:[%s9806_s6 + $0x68] sm:$0xff]  ;;  %v1063_v44 = vld [vmem:[%s9806_s6 + $0x80] sm:$0xff] }
 0x33c   :  { %v722_v47 = vadd.f32 %v721_v19, %v720_v45  ;;  %v727_v54 = vsel %vm531_vm6, %v717_v41, 0.0  ;;  %v729_v8 = vsel %vm531_vm6, %v718_v50, 0.0  ;;  %v731_v63 = vsel %vm531_vm6, %v719_v53, 0.0  ;;  %v1059_v45 = vld [vmem:[%s9806_s6 + $0x60] sm:$0xff]  ;;  %v1062_v19 = vld [vmem:[%s9806_s6 + $0x78] sm:$0xff]  ;;  %v1069_v41 = vld [vmem:[%s9806_s6 + $0xb0] sm:$0xff] }
 0x33d   :  { %v5064_v39 = vpack.c.bf16 %v1056_v32, %v1053_v1  ;;  %v5066_v42 = vpack.c.bf16 %v1063_v44, %v1060_v43  ;;  %v1065_v50 = vld [vmem:[%s9806_s6 + $0x90] sm:$0xff]  ;;  %v1075_v53 = vld [vmem:[%s9806_s6 + $0xe0] sm:$0xff]  ;;  %v1084_v1 = vld [vmem:[%s9806_s6 + $0x128] sm:$0xff] }
 0x33e   :  { %v724_v48 = vadd.f32 %v723_v15, %v722_v47  ;;  %v1066_v47 = vld [vmem:[%s9806_s6 + $0x98] sm:$0xff]  ;;  %v5068_v15 = vpack.c.bf16 %v1062_v19, %v1059_v45  ;;  %v1112_v32 = vld [vmem:[%s9806_s6 + $0x208] sm:$0xff]  ;;  %v1087_v43 = vld [vmem:[%s9806_s6 + $0x140] sm:$0xff] }
 0x33f   :  { %v5150_v44 = vpack.c.bf16 %v1112_v32, %v1109_v25  ;;  %v1115_v45 = vld [vmem:[%s9806_s6 + $0x220] sm:$0xff]  ;;  %v1118_v19 = vld [vmem:[%s9806_s6 + $0x238] sm:$0xff] }
 0x340   :  { %v726_v52 = vadd.f32 %v725_v51, %v724_v48  ;;  %v5070_v48 = vpack.c.bf16 %v1069_v41, %v1066_v47  ;;  %v1068_v51 = vld [vmem:[%s9806_s6 + $0xa8] sm:$0xff]  ;;  %v1083_v41 = vld [vmem:[%s9806_s6 + $0x120] sm:$0xff]  ;;  %v1082_v32 = vld [vmem:[%s9806_s6 + $0x118] sm:$0xff] }
 0x342   :  { %v728_v55 = vadd.f32 %v727_v54, %v726_v52  ;;  %v1072_v52 = vld [vmem:[%s9806_s6 + $0xc8] sm:$0xff]  ;;  %v1097_v54 = vld [vmem:[%s9806_s6 + $0x190] sm:$0xff] }
 0x344   :  { %v730_v58 = vadd.f32 %v729_v8, %v728_v55  ;;  %v1100_v55 = vld [vmem:[%s9806_s6 + $0x1a8] sm:$0xff]  ;;  %v5072_v8 = vpack.c.bf16 %v1068_v51, %v1065_v50  ;;  %v5082_v50 = vpack.c.bf16 %v1087_v43, %v1084_v1  ;;  %v1090_v51 = vld [vmem:[%s9806_s6 + $0x158] sm:$0xff]  ;;  %v1079_v1 = vld [vmem:[%s9806_s6 + $0x100] sm:$0xff] }
 0x345   :  { %v1105_v43 = vld [vmem:[%s9806_s6 + $0x1d0] sm:$0xff] }
 0x346   :  { %v732_v2 = vadd.f32 %v731_v63, %v730_v58  ;;  %v1071_v58 = vld [vmem:[%s9806_s6 + $0xc0] sm:$0xff]  ;;  %v5142_v63 = vpack.c.bf16 %v1100_v55, %v1097_v54  ;;  %v1070_v54 = vld [vmem:[%s9806_s6 + $0xb8] sm:$0xff]  ;;  %v1093_v55 = vld [vmem:[%s9806_s6 + $0x170] sm:$0xff] }
 0x348   :  { %v733_v29 = vrot.slane %v732_v2, 4 }
 0x34a   :  { %v734_v4 = vadd.f32 %v733_v29, %v732_v2  ;;  %v1049_v2 = vld [vmem:[%s9806_s6 + $0x10] sm:$0xff]  ;;  %v5074_v29 = vpack.c.bf16 %v1075_v53, %v1072_v52  ;;  %v5154_v52 = vpack.c.bf16 %v1118_v19, %v1115_v45  ;;  %v1067_v53 = vld [vmem:[%s9806_s6 + $0xa0] sm:$0xff]  ;;  %v5164_v45 = vpack.c.bf16 %v1082_v32, %v1079_v1 }
 0x34c   :  { %v735_v7 = vrot.slane %v734_v4, 2 }
 0x34e   :  { %v736_v9 = vadd.f32 %v735_v7, %v734_v4  ;;  %v1074_v4 = vld [vmem:[%s9806_s6 + $0xd8] sm:$0xff] }
 0x34f   :  { %v1078_v7 = vld [vmem:[%s9806_s6 + $0xf8] sm:$0xff]  ;;  %v5076_v21 = vpack.c.bf16 %v1074_v4, %v1071_v58  ;;  %v1124_v58 = vld [vmem:[%s9806_s6 + $0x268] sm:$0xff]  ;;  %v5156_v4 = vpack.c.bf16 %v1070_v54, %v1067_v53  ;;  %v1107_v53 = vld [vmem:[%s9806_s6 + $0x1e0] sm:$0xff] }
 0x350   :  { %v737_v10 = vrot.slane %v736_v9, 1  ;;  %v1110_v54 = vld [vmem:[%s9806_s6 + $0x1f8] sm:$0xff] }
 0x352   :  { %v738_v33 = vadd.f32 %v737_v10, %v736_v9  ;;  %v1052_v9 = vld [vmem:[%s9806_s6 + $0x28] sm:$0xff]  ;;  %v1081_v10 = vld [vmem:[%s9806_s6 + $0x110] sm:$0xff] }
 0x354   :  { %4901 = vmatmul.mubr.msk.f32.vlgmr.msra.gmra.mrb[14].mxu0 %vm531_vm6, %v738_v33  ;;  %v5144_v33 = vpack.c.bf16 %v1052_v9, %v1049_v2  ;;  %v1089_v2 = vld [vmem:[%s9806_s6 + $0x150] sm:$0xff]  ;;  %v1096_v9 = vld [vmem:[%s9806_s6 + $0x188] sm:$0xff] }
 0x355   :  { %4904 = vmatpush3.msk.msra.mxu0 %vm410_vm8, %v528_v11  ;;  %4905 = vmatprep.mubr.msk.f32.mxu0 %vm6077_vm2, %v6074_v59  ;;  %v1050_v11 = vld [vmem:[%s9806_s6 + $0x18] sm:$0xff]  ;;  %vm1039_vm8 = vcmask 785408  }
 0x356   :  { %v5060_v27 = vpack.c.bf16 %v1050_v11, %v1047_v20  ;;  %5143 = vmatprep.subr.bf16.mxu0 %v5142_v63  ;;  %v1058_v20 = vld [vmem:[%s9806_s6 + $0x58] sm:$0xff]  ;;  %v1077_v11 = vld [vmem:[%s9806_s6 + $0xf0] sm:$0xff] }
 0x357   :  { %v5148_v22 = vpack.c.bf16 %v1058_v20, %v1055_v18  ;;  %v1130_v18 = vld [vmem:[%s9806_s6 + $0x298] sm:$0xff] }
 0x358   :  { %5061 = vmatpush1.bf16.msra.mxu1 %v5060_v27  ;;  %v5078_v27 = vpack.c.bf16 %v1081_v10, %v1078_v7  ;;  %v5086_v7 = vpack.c.bf16 %v1093_v55, %v1090_v51  ;;  %v1114_v55 = vld [vmem:[%s9806_s6 + $0x218] sm:$0xff] }
 0x359   :  { %5063 = vmatprep.subr.bf16.mxu1 %v5062_v30  ;;  %v1080_v30 = vld [vmem:[%s9806_s6 + $0x108] sm:$0xff] }
 0x35a   :  { %v5080_v47 = vpack.c.bf16 %v1080_v30, %v1077_v11  ;;  %v1098_v11 = vld [vmem:[%s9806_s6 + $0x198] sm:$0xff] }
 0x35c   :  { %5065 = vmatpush1.bf16.msra.mxu1 %v5064_v39  ;;  %v1061_v39 = vld [vmem:[%s9806_s6 + $0x70] sm:$0xff] }
 0x35d   :  { %5067 = vmatprep.subr.bf16.mxu1 %v5066_v42  ;;  %v1064_v42 = vld [vmem:[%s9806_s6 + $0x88] sm:$0xff] }
 0x360   :  { %5069 = vmatpush1.bf16.msra.mxu1 %v5068_v15  ;;  %v1086_v15 = vld [vmem:[%s9806_s6 + $0x138] sm:$0xff] }
 0x361   :  { %5071 = vmatprep.subr.bf16.mxu1 %v5070_v48  ;;  %v5152_v48 = vpack.c.bf16 %v1064_v42, %v1061_v39  ;;  %v5084_v63 = vpack.c.bf16 %v1086_v15, %v1083_v41  ;;  %v1136_v39 = vld [vmem:[%s9806_s6 + $0x2c8] sm:$0xff] }
 0x362   :  { %v1104_v41 = vld [vmem:[%s9806_s6 + $0x1c8] sm:$0xff] }
 0x364   :  { %5073 = vmatpush1.bf16.msra.mxu1 %v5072_v8  ;;  %v1121_v8 = vld [vmem:[%s9806_s6 + $0x250] sm:$0xff] }
 0x365   :  { %5075 = vmatprep.subr.bf16.mxu1 %v5074_v29  ;;  %v1092_v29 = vld [vmem:[%s9806_s6 + $0x168] sm:$0xff]  ;;  %v5158_v10 = vpack.c.bf16 %v1124_v58, %v1121_v8  ;;  %v1117_v8 = vld [vmem:[%s9806_s6 + $0x230] sm:$0xff]  ;;  %v5100_v58 = vpack.c.bf16 %v1110_v54, %v1107_v53  ;;  %v1139_v53 = vld [vmem:[%s9806_s6 + $0x2e0] sm:$0xff] }
 0x366   :  { %v5088_v20 = vpack.c.bf16 %v1092_v29, %v1089_v2  ;;  %v1113_v2 = vld [vmem:[%s9806_s6 + $0x210] sm:$0xff]  ;;  %v1116_v29 = vld [vmem:[%s9806_s6 + $0x228] sm:$0xff]  ;;  %v1142_v54 = vld [vmem:[%s9806_s6 + $0x2f8] sm:$0xff] }
 0x368   :  { %5077 = vmatpush1.bf16.msra.mxu1 %v5076_v21  ;;  %v1095_v21 = vld [vmem:[%s9806_s6 + $0x180] sm:$0xff] }
 0x369   :  { %5079 = vmatprep.subr.bf16.mxu1 %v5078_v27  ;;  %v1102_v27 = vld [vmem:[%s9806_s6 + $0x1b8] sm:$0xff]  ;;  %v5092_v42 = vpack.c.bf16 %v1098_v11, %v1095_v21  ;;  %v1125_v21 = vld [vmem:[%s9806_s6 + $0x270] sm:$0xff]  ;;  %v1128_v11 = vld [vmem:[%s9806_s6 + $0x288] sm:$0xff] }
 0x36a   :  { %v5094_v19 = vpack.c.bf16 %v1105_v43, %v1102_v27  ;;  %v5112_v27 = vpack.c.bf16 %v1128_v11, %v1125_v21 }
 0x36c   :  { %5081 = vmatpush1.bf16.msra.mxu1 %v5080_v47  ;;  %v1101_v47 = vld [vmem:[%s9806_s6 + $0x1b0] sm:$0xff] }
 0x36d   :  { %5083 = vmatprep.subr.bf16.mxu1 %v5082_v50  ;;  %v1111_v50 = vld [vmem:[%s9806_s6 + $0x200] sm:$0xff]  ;;  %v5096_v51 = vpack.c.bf16 %v1104_v41, %v1101_v47  ;;  %v1088_v41 = vld [vmem:[%s9806_s6 + $0x148] sm:$0xff] }
 0x370   :  { %5085 = vmatpush1.bf16.msra.mxu1 %v5084_v63  ;;  %v5102_v63 = vpack.c.bf16 %v1117_v8, %v1114_v55  ;;  %v5170_v8 = vpack.c.bf16 %v1142_v54, %v1139_v53 }
 0x371   :  { %5087 = vmatprep.subr.bf16.mxu1 %v5086_v7  ;;  %v1123_v7 = vld [vmem:[%s9806_s6 + $0x260] sm:$0xff] }
 0x374   :  { %5089 = vmatpush1.bf16.msra.mxu1 %v5088_v20 }
 0x427   :  { %v808_v13 = vpop.f32.mrb[14].mxu0 }
 0x428   :  { %v4902_v14 = vpop.f32.mrb[15].mxu0  ;;  %4906 = vmatmul.mubr.msk.f32.vlgmr.msra.gmra.mrb[16].mxu0 %vm624_vm7, %v808_v13  ;;  %v1103_v13 = vld [vmem:[%s9806_s6 + $0x1c0] sm:$0xff] }
 0x429   :  { %v1106_v14 = vld [vmem:[%s9806_s6 + $0x1d8] sm:$0xff]  ;;  %5145 = vmatpush3.bf16.msra.mxu0 %v5144_v33  ;;  %v1073_v33 = vld [vmem:[%s9806_s6 + $0xd0] sm:$0xff] }
 0x42a   :  { %v5146_v17 = vpack.c.bf16 %v1106_v14, %v1103_v13  ;;  %v1076_v13 = vld [vmem:[%s9806_s6 + $0xe8] sm:$0xff]  ;;  %v1099_v14 = vld [vmem:[%s9806_s6 + $0x1a0] sm:$0xff] }
 0x42b   :  { %v5090_v25 = vpack.c.bf16 %v1099_v14, %v1096_v9  ;;  %v5104_v9 = vpack.c.bf16 %v1116_v29, %v1113_v2  ;;  %v1126_v14 = vld [vmem:[%s9806_s6 + $0x278] sm:$0xff]  ;;  %v1091_v2 = vld [vmem:[%s9806_s6 + $0x160] sm:$0xff] }
 0x42c   :  { %5147 = vmatprep.subr.bf16.mxu0 %v5146_v17  ;;  %v1127_v17 = vld [vmem:[%s9806_s6 + $0x280] sm:$0xff] }
 0x42d   :  { %5149 = vmatpush3.bf16.msra.mxu0 %v5148_v22  ;;  %v5160_v22 = vpack.c.bf16 %v1076_v13, %v1073_v33  ;;  %v5162_v30 = vpack.c.bf16 %v1130_v18, %v1127_v17  ;;  %5091 = vmatprep.subr.bf16.mxu1 %v5090_v25  ;;  %v1119_v33 = vld [vmem:[%s9806_s6 + $0x240] sm:$0xff]  ;;  %v1122_v13 = vld [vmem:[%s9806_s6 + $0x258] sm:$0xff]  ;;  %v1129_v17 = vld [vmem:[%s9806_s6 + $0x290] sm:$0xff] }
 0x42e   :  { %5151 = vmatprep.subr.bf16.mxu0 %v5150_v44  ;;  %v1133_v44 = vld [vmem:[%s9806_s6 + $0x2b0] sm:$0xff]  ;;  %5093 = vmatpush1.bf16.msra.mxu1 %v5092_v42  ;;  %v5108_v18 = vpack.c.bf16 %v1122_v13, %v1119_v33  ;;  %v5110_v20 = vpack.c.bf16 %v1129_v17, %v1126_v14  ;;  %v1135_v25 = vld [vmem:[%s9806_s6 + $0x2c0] sm:$0xff]  ;;  %v1144_v33 = vld [vmem:[%s9806_s6 + $0x308] sm:$0xff] }
 0x42f   :  { %v5166_v15 = vpack.c.bf16 %v1136_v39, %v1133_v44  ;;  %5095 = vmatprep.subr.bf16.mxu1 %v5094_v19  ;;  %v529_v39 = vld [vmem:[%s9802_s2] sm:$0x1]  ;;  %v1085_v19 = vld [vmem:[%s9806_s6 + $0x130] sm:$0xff]  ;;  %s6092_s2 = smov 48  }
 0x430   :  { %v1131_v42 = vld [vmem:[%s9806_s6 + $0x2a0] sm:$0xff] }
 0x431   :  { %5153 = vmatpush3.bf16.msra.mxu0 %v5152_v48  ;;  %v1108_v48 = vld [vmem:[%s9806_s6 + $0x1e8] sm:$0xff]  ;;  %v1147_v13 = vld [vmem:[%s9806_s6 + $0x320] sm:$0xff] }
 0x432   :  { %5155 = vmatprep.subr.bf16.mxu0 %v5154_v52  ;;  %v5098_v52 = vpack.c.bf16 %v1111_v50, %v1108_v48  ;;  %5097 = vmatpush1.bf16.msra.mxu1 %v5096_v51  ;;  %v1141_v48 = vld [vmem:[%s9806_s6 + $0x2f0] sm:$0xff]  ;;  %v5168_v51 = vpack.c.bf16 %v1088_v41, %v1085_v19 }
 0x434   :  { %5099 = vmatprep.subr.bf16.mxu1 %v5098_v52 }
 0x435   :  { %5157 = vmatpush3.bf16.msra.mxu0 %v5156_v4  ;;  %v1120_v4 = vld [vmem:[%s9806_s6 + $0x248] sm:$0xff] }
 0x436   :  { %5159 = vmatprep.subr.bf16.mxu0 %v5158_v10  ;;  %5101 = vmatpush1.bf16.msra.mxu1 %v5100_v58  ;;  %v5106_v10 = vpack.c.bf16 %v1123_v7, %v1120_v4  ;;  %v1137_v58 = vld [vmem:[%s9806_s6 + $0x2d0] sm:$0xff]  ;;  %v1094_v4 = vld [vmem:[%s9806_s6 + $0x178] sm:$0xff] }
 0x437   :  { %5103 = vmatprep.subr.bf16.mxu1 %v5102_v63  ;;  %v1140_v63 = vld [vmem:[%s9806_s6 + $0x2e8] sm:$0xff] }
 0x438   :  { %v5120_v29 = vpack.c.bf16 %v1140_v63, %v1137_v58 }
 0x439   :  { %5161 = vmatpush3.bf16.msra.mxu0 %v5160_v22  ;;  %v1132_v22 = vld [vmem:[%s9806_s6 + $0x2a8] sm:$0xff] }
 0x43a   :  { %5163 = vmatprep.subr.bf16.mxu0 %v5162_v30  ;;  %5105 = vmatpush1.bf16.msra.mxu1 %v5104_v9  ;;  %v5114_v30 = vpack.c.bf16 %v1135_v25, %v1132_v22  ;;  %v5172_v9 = vpack.c.bf16 %v1094_v4, %v1091_v2  ;;  %v5122_v25 = vpack.c.bf16 %v1147_v13, %v1144_v33 }
 0x43b   :  { %5107 = vmatprep.subr.bf16.mxu1 %v5106_v10  ;;  %v4534_v10 = vld [vmem:[%s9803_s3] ss:$0 sm:$0xff]  ;;  %s6078_s3 = smov 112  }
 0x43d   :  { %5165 = vmatpush3.bf16.msra.mxu0 %v5164_v45  ;;  %v1134_v45 = vld [vmem:[%s9806_s6 + $0x2b8] sm:$0xff] }
 0x43e   :  { %5167 = vmatprep.subr.bf16.mxu0 %v5166_v15  ;;  %5109 = vmatpush1.bf16.msra.mxu1 %v5108_v18  ;;  %v5116_v47 = vpack.c.bf16 %v1134_v45, %v1131_v42  ;;  %v1138_v15 = vld [vmem:[%s9806_s6 + $0x2d8] sm:$0xff] }
 0x43f   :  { %5111 = vmatprep.subr.bf16.mxu1 %v5110_v20  ;;  %v5118_v52 = vpack.c.bf16 %v1141_v48, %v1138_v15 }
 0x441   :  { %5169 = vmatpush3.bf16.msra.mxu0 %v5168_v51 }
 0x442   :  { %5113 = vmatpush1.bf16.msra.mxu1 %v5112_v27  ;;  %5171 = vmatprep.subr.bf16.mxu0 %v5170_v8 }
 0x443   :  { %5115 = vmatprep.subr.bf16.mxu1 %v5114_v30 }
 0x445   :  { %5173 = vmatpush3.bf16.msra.mxu0 %v5172_v9 }
 0x446   :  { %5117 = vmatpush1.bf16.msra.mxu1 %v5116_v47  ;;  %5174 = vmatprep.subr.bf16.mxu0 %v6076_v34 }
 0x447   :  { %5119 = vmatprep.subr.bf16.mxu1 %v5118_v52 }
 0x44a   :  { %5121 = vmatpush1.bf16.msra.mxu1 %v5120_v29 }
 0x44b   :  { %5123 = vmatprep.subr.bf16.mxu1 %v5122_v25 }
 0x4fb   :  { %v881_v1 = vpop.f32.mrb[16].mxu0 }
 0x4fc   :  { %v885_v32 = vmul.f32 0.0006377551, %v881_v1  ;;  %v4907_v43 = vpop.f32.mrb[17].mxu0 }
 0x4fe   :  { %v886_v44 = vadd.f32 1e-05, %v885_v32 }
 0x500   :  { %6040 = vrsqrt.f32 %v886_v44 }
 0x50a   :  { %v6041_v50 = vpop.eup %6040 }
 0x50b   :  { %v888_v55 = vmul.f32 %v6041_v50, %v529_v39 }
 0x50d   :  { %v892_v7 = vrot.slane %v888_v55, %v6590_v26 }
 0x50f   :  { %v893_v14 = vmul.f32 %v892_v7, %v6593_v56  ;;  %v894_v17 = vmul.f32 %v892_v7, %v6595_v61  ;;  %v895_v18 = vmul.f32 %v892_v7, %v6597_v6  ;;  %v896_v20 = vmul.f32 %v892_v7, %v6599_v35 }
 0x510   :  { %v897_v21 = vmul.f32 %v892_v7, %v6601_v37  ;;  %v898_v11 = vmul.f32 %v892_v7, %v6603_v38  ;;  %v899_v22 = vmul.f32 %v892_v7, %v6605_v16 }
 0x511   :  { %v906_v27 = vadd.f32 %v4534_v10, %v893_v14  ;;  %v907_v30 = vadd.f32 %v4534_v10, %v894_v17  ;;  %v908_v1 = vadd.f32 %v4534_v10, %v895_v18  ;;  %v909_v32 = vadd.f32 %v4534_v10, %v896_v20 }
 0x512   :  { %v910_v56 = vadd.f32 %v4534_v10, %v897_v21  ;;  %v911_v43 = vadd.f32 %v4534_v10, %v898_v11  ;;  %v912_v44 = vadd.f32 %v4534_v10, %v899_v22 }
 0x513   :  { %v913_v61 = vmax.f32 %v906_v27, 0.0  ;;  %v914_v6 = vmax.f32 %v907_v30, 0.0  ;;  %v915_v35 = vmax.f32 %v908_v1, 0.0  ;;  %v916_v16 = vmax.f32 %v909_v32, 0.0  ;;  %v1145_v27 = vld [vmem:[%s9806_s6 + $0x310] sm:$0xff]  ;;  %v1150_v30 = vld [vmem:[%s9806_s6 + $0x338] sm:$0xff] }
 0x514   :  { %v917_v42 = vmax.f32 %v910_v56, 0.0  ;;  %v918_v41 = vmax.f32 %v911_v43, 0.0  ;;  %v919_v48 = vmax.f32 %v912_v44, 0.0  ;;  %v1153_v1 = vld [vmem:[%s9806_s6 + $0x350] sm:$0xff] }
 0x515   :  { %983 = vrot.lane.b32.xlu0 %v913_v61, %s6078_s3  ;;  %v955_v37 = vrot.slane %v913_v61, 1  ;;  %v956_v38 = vrot.slane %v914_v6, 1  ;;  %v958_v39 = vrot.slane %v915_v35, 1  ;;  %v927_v45 = vrot.slane %v913_v61, 7  ;;  %v1149_v43 = vld [vmem:[%s9806_s6 + $0x330] sm:$0xff] }
 0x516   :  { %v928_v19 = vrot.slane %v914_v6, 7  ;;  %v930_v50 = vrot.slane %v915_v35, 7  ;;  %v960_v52 = vrot.slane %v916_v16, 1  ;;  %v932_v53 = vrot.slane %v916_v16, 7 }
 0x517   :  { %v957_v47 = vsel %vm283_vm0, %v955_v37, %v956_v38  ;;  %v959_v51 = vsel %vm283_vm0, %v956_v38, %v958_v39  ;;  %v934_v54 = vrot.slane %v917_v42, 7  ;;  %v936_v55 = vrot.slane %v918_v41, 7  ;;  %v1152_v38 = vld [vmem:[%s9806_s6 + $0x348] sm:$0xff] }
 0x518   :  { %v976_v15 = vmul.f32 %v6271_v60, %v957_v47  ;;  %v929_v8 = vsel %vm254_vm13, %v927_v45, %v928_v19  ;;  %v977_v58 = vmul.f32 %v6280_v5, %v959_v51  ;;  %v938_v63 = vrot.slane %v919_v48, 7 }
 0x519   :  { %985 = vrot.lane.b32.xlu0 %v914_v6, %s6078_s3  ;;  %v961_v60 = vsel %vm283_vm0, %v958_v39, %v960_v52  ;;  %v962_v2 = vrot.slane %v917_v42, 1  ;;  %v6953_v29 = vsel %vm254_vm13, %v928_v19, %v930_v50  ;;  %v6957_v4 = vsel %vm254_vm13, %v930_v50, %v932_v53  ;;  %v1155_v50 = vld [vmem:[%s9806_s6 + $0x360] sm:$0xff] }
 0x51a   :  { %1011 = vrot.lane.b32.xlu1 %v976_v15, %s6079_s30  ;;  %v6960_v7 = vsel %vm254_vm13, %v932_v53, %v934_v54  ;;  %v6963_v9 = vsel %vm254_vm13, %v934_v54, %v936_v55  ;;  %v978_v5 = vmul.f32 %v6296_v12, %v961_v60  ;;  %v6967_v10 = vsel %vm254_vm13, %v936_v55, %v938_v63  ;;  %v1158_v53 = vld [vmem:[%s9806_s6 + $0x378] sm:$0xff]  ;;  %v1160_v54 = vld [vmem:[%s9806_s6 + $0x388] sm:$0xff] }
 0x51b   :  { %v963_v33 = vsel %vm283_vm0, %v960_v52, %v962_v2  ;;  %v964_v13 = vrot.slane %v918_v41, 1  ;;  %v966_v18 = vrot.slane %v919_v48, 1  ;;  %v947_v25 = vsel %vm254_vm13, 0.0, %v927_v45  ;;  %v1159_v45 = vld [vmem:[%s9806_s6 + $0x380] sm:$0xff] }
 0x51c   :  { %v979_v14 = vmul.f32 %v6321_v24, %v963_v33  ;;  %v948_v56 = vmul.f32 %v6446_v28, %v947_v25  ;;  %v5126_v37 = vpack.c.bf16 %v1153_v1, %v1150_v30  ;;  %v1151_v28 = vld [vmem:[%s9806_s6 + $0x340] sm:$0xff]  ;;  %v5128_v15 = vpack.c.bf16 %v1152_v38, %v1149_v43  ;;  %v1170_v30 = vld [vmem:[%s9806_s6 + $0x3d8] sm:$0xff] }
 0x51d   :  { %987 = vrot.lane.b32.xlu0 %v915_v35, %s6078_s3  ;;  %v965_v17 = vsel %vm283_vm0, %v962_v2, %v964_v13  ;;  %v967_v20 = vsel %vm283_vm0, %v964_v13, %v966_v18  ;;  %v975_v24 = vsel %vm283_vm0, %v966_v18, 0.0  ;;  %v950_v2 = vmul.f32 %v6456_v0, %v6953_v29  ;;  %v1161_v13 = vld [vmem:[%s9806_s6 + $0x390] sm:$0xff]  ;;  %v1164_v18 = vld [vmem:[%s9806_s6 + $0x3a8] sm:$0xff]  ;;  %v1163_v0 = vld [vmem:[%s9806_s6 + $0x3a0] sm:$0xff] }
 0x51e   :  { %1013 = vrot.lane.b32.xlu1 %v977_v58, %s6079_s30  ;;  %v980_v12 = vmul.f32 %v6344_v36, %v965_v17  ;;  %v981_v21 = vmul.f32 %v6393_v62, %v967_v20  ;;  %v982_v11 = vmul.f32 %v6430_v23, %v975_v24  ;;  %v1143_v36 = vld [vmem:[%s9806_s6 + $0x300] sm:$0xff]  ;;  %v1146_v62 = vld [vmem:[%s9806_s6 + $0x318] sm:$0xff]  ;;  %v1148_v23 = vld [vmem:[%s9806_s6 + $0x328] sm:$0xff]  ;;  %vm1173_vm13 = vcmask 654336  }
 0x51f   :  { %v5124_v6 = vpack.c.bf16 %v1146_v62, %v1143_v36  ;;  %v5175_v35 = vpack.c.bf16 %v1148_v23, %v1145_v27  ;;  %v1165_v58 = vld [vmem:[%s9806_s6 + $0x3b0] sm:$0xff]  ;;  %v1166_v29 = vld [vmem:[%s9806_s6 + $0x3b8] sm:$0xff]  ;;  %v1168_v20 = vld [vmem:[%s9806_s6 + $0x3c8] sm:$0xff]  ;;  %v5136_v36 = vpack.c.bf16 %v1164_v18, %v1161_v13 }
 0x520   :  { %v5184_v25 = vpack.c.bf16 %v1166_v29, %v1163_v0  ;;  %v1167_v62 = vld [vmem:[%s9806_s6 + $0x3c0] sm:$0xff]  ;;  %v1611_v29 = vld [vmem:[%s9809_s9 + $0x48] sm:$0xff] }
 0x521   :  { %989 = vrot.lane.b32.xlu0 %v916_v16, %s6078_s3  ;;  %v1154_v16 = vld [vmem:[%s9806_s6 + $0x358] sm:$0xff]  ;;  %v1610_v0 = vld [vmem:[%s9809_s9 + $0x40] sm:$0xff] }
 0x522   :  { %1015 = vrot.lane.b32.xlu1 %v978_v5, %s6079_s30  ;;  %v5132_v5 = vpack.c.bf16 %v1158_v53, %v1155_v50  ;;  %v1622_v53 = vld [vmem:[%s9809_s9 + $0xa0] sm:$0xff] }
 0x525   :  { %991 = vrot.lane.b32.xlu0 %v917_v42, %s6078_s3  ;;  %v1156_v42 = vld [vmem:[%s9806_s6 + $0x368] sm:$0xff] }
 0x526   :  { %1017 = vrot.lane.b32.xlu1 %v979_v14, %s6079_s30  ;;  %v5130_v52 = vpack.c.bf16 %v1159_v45, %v1156_v42  ;;  %v954_v42 = vmul.f32 %v6501_v57, %v6967_v10  ;;  %v1618_v57 = vld [vmem:[%s9809_s9 + $0x80] sm:$0xff] }
 0x527   :  { %v1602_v10 = vld [vmem:[%s9809_s9] sm:$0xff] }
 0x529   :  { %993 = vrot.lane.b32.xlu0 %v918_v41, %s6078_s3  ;;  %v949_v41 = vmul.f32 %v6450_v31, %v929_v8  ;;  %v1157_v31 = vld [vmem:[%s9806_s6 + $0x370] sm:$0xff]  ;;  %v1162_v8 = vld [vmem:[%s9806_s6 + $0x398] sm:$0xff] }
 0x52a   :  { %1019 = vrot.lane.b32.xlu1 %v980_v12, %s6079_s30  ;;  %v5181_v33 = vpack.c.bf16 %v1160_v54, %v1157_v31  ;;  %v5134_v17 = vpack.c.bf16 %v1165_v58, %v1162_v8  ;;  %v1623_v31 = vld [vmem:[%s9809_s9 + $0xa8] sm:$0xff]  ;;  %v1606_v54 = vld [vmem:[%s9809_s9 + $0x20] sm:$0xff] }
 0x52b   :  { %v1607_v8 = vld [vmem:[%s9809_s9 + $0x28] sm:$0xff] }
 0x52c   :  { %v5199_v58 = vpack.c.bf16 %v1607_v8, %v1606_v54 }
 0x52d   :  { %995 = vrot.lane.b32.xlu0 %v919_v48, %s6078_s3  ;;  %v5178_v48 = vpack.c.bf16 %v1154_v16, %v1151_v28 }
 0x52e   :  { %1021 = vrot.lane.b32.xlu1 %v981_v21, %s6079_s30  ;;  %v1171_v21 = vld [vmem:[%s9806_s6 + $0x3e0] sm:$0xff] }
 0x52f   :  { %v5138_v23 = vpack.c.bf16 %v1171_v21, %v1168_v20  ;;  %v1628_v20 = vld [vmem:[%s9809_s9 + $0xd0] sm:$0xff]  ;;  %v1629_v21 = vld [vmem:[%s9809_s9 + $0xd8] sm:$0xff] }
 0x532   :  { %1023 = vrot.lane.b32.xlu1 %v982_v11, %s6079_s30 }
 0x587   :  { %v984_v22 = vpop.permute.xlu0 %983 }
 0x588   :  { %v1032_v39 = vsel %vm531_vm6, %v948_v56, %v984_v22  ;;  %v952_v56 = vmul.f32 %v6476_v46, %v6960_v7  ;;  %v953_v46 = vmul.f32 %v6487_v49, %v6963_v9  ;;  %v1619_v9 = vld [vmem:[%s9809_s9 + $0x88] sm:$0xff] }
 0x58b   :  { %v986_v32 = vpop.permute.xlu0 %985 }
 0x58c   :  { %v7006_v61 = vpop.permute.xlu1 %1011  ;;  %v1033_v55 = vsel %vm531_vm6, %v949_v41, %v986_v32  ;;  %v1620_v41 = vld [vmem:[%s9809_s9 + $0x90] sm:$0xff] }
 0x58d   :  { %v1040_v44 = vsel %vm1039_vm8, %v984_v22, %v7006_v61  ;;  %v951_v22 = vmul.f32 %v6465_v40, %v6957_v4  ;;  %v1169_v40 = vld [vmem:[%s9806_s6 + $0x3d0] sm:$0xff]  ;;  %v1172_v4 = vld [vmem:[%s9806_s6 + $0x3e8] sm:$0xff]  ;;  %s6082_s6 = smov 72  }
 0x58e   :  { %1252 = vmatprep.mubr.f32.mxu1 %v1040_v44  ;;  %1466 = vmatprep.mubr.f32.mxu0 %v1040_v44 }
 0x58f   :  { %v988_v19 = vpop.permute.xlu0 %987  ;;  %1253 = vmatmul.mubr.f32.vlgmr.msra.gmra.mrb[4].mxu1 %v1032_v39  ;;  %1467 = vmatmul.mubr.f32.vlgmr.msra.gmra.mrb[18].mxu0 %v1032_v39 }
 0x590   :  { %v7029_v47 = vpop.permute.xlu1 %1013  ;;  %5125 = vmatpush1.bf16.msra.mxu1 %v5124_v6  ;;  %5176 = vmatpush3.bf16.msra.mxu0 %v5175_v35  ;;  %v1034_v12 = vsel %vm531_vm6, %v950_v2, %v988_v19  ;;  %v5140_v6 = vpack.c.bf16 %v1170_v30, %v1167_v62  ;;  %v5187_v35 = vpack.c.bf16 %v1172_v4, %v1169_v40  ;;  %v1608_v2 = vld [vmem:[%s9809_s9 + $0x30] sm:$0xff]  ;;  %v1631_v62 = vld [vmem:[%s9809_s9 + $0xe8] sm:$0xff] }
 0x591   :  { %v1041_v51 = vsel %vm1039_vm8, %v986_v32, %v7029_v47  ;;  %5127 = vmatprep.subr.bf16.mxu1 %v5126_v37  ;;  %5177 = vmatprep.subr.bf16.mxu0 %v6076_v34  ;;  %v1615_v30 = vld [vmem:[%s9809_s9 + $0x68] sm:$0xff]  ;;  %v1632_v4 = vld [vmem:[%s9809_s9 + $0xf0] sm:$0xff] }
 0x592   :  { %1258 = vmatprep.mubr.f32.mxu1 %v1041_v51  ;;  %1471 = vmatprep.mubr.f32.mxu0 %v1041_v51  ;;  %v1605_v51 = vld [vmem:[%s9809_s9 + $0x18] sm:$0xff] }
 0x593   :  { %v990_v63 = vpop.permute.xlu0 %989  ;;  %1259 = vmatmul.mubr.f32.gmra.mrb[6].mxu1 %v1033_v55  ;;  %1472 = vmatmul.mubr.f32.gmra.mrb[20].mxu0 %v1033_v55  ;;  %v5197_v55 = vpack.c.bf16 %v1623_v31, %v1622_v53 }
 0x594   :  { %v7054_v60 = vpop.permute.xlu1 %1015  ;;  %5129 = vmatpush1.bf16.msra.mxu1 %v5128_v15  ;;  %5179 = vmatpush3.bf16.msra.mxu0 %v5178_v48  ;;  %v1035_v1 = vsel %vm531_vm6, %v951_v22, %v990_v63  ;;  %v1621_v15 = vld [vmem:[%s9809_s9 + $0x98] sm:$0xff]  ;;  %v1604_v48 = vld [vmem:[%s9809_s9 + $0x10] sm:$0xff] }
 0x595   :  { %v1042_v14 = vsel %vm1039_vm8, %v988_v19, %v7054_v60  ;;  %5131 = vmatprep.subr.bf16.mxu1 %v5130_v52  ;;  %5180 = vmatprep.subr.bf16.mxu0 %v6076_v34  ;;  %v1603_v19 = vld [vmem:[%s9809_s9 + $0x8] sm:$0xff]  ;;  %v5193_v50 = vpack.c.bf16 %v1621_v15, %v1620_v41  ;;  %v5195_v52 = vpack.c.bf16 %v1605_v51, %v1604_v48  ;;  %v1613_v22 = vld [vmem:[%s9809_s9 + $0x58] sm:$0xff] }
 0x596   :  { %1264 = vmatprep.mubr.f32.mxu1 %v1042_v14  ;;  %1476 = vmatprep.mubr.f32.mxu0 %v1042_v14  ;;  %v1626_v14 = vld [vmem:[%s9809_s9 + $0xc0] sm:$0xff] }
 0x597   :  { %v992_v24 = vpop.permute.xlu0 %991  ;;  %1265 = vmatmul.mubr.f32.gmra.mrb[8].mxu1 %v1034_v12  ;;  %1477 = vmatmul.mubr.f32.gmra.mrb[22].mxu0 %v1034_v12  ;;  %v5207_v12 = vpack.c.bf16 %v1611_v29, %v1610_v0 }
 0x598   :  { %v7080_v11 = vpop.permute.xlu1 %1017  ;;  %5133 = vmatpush1.bf16.msra.mxu1 %v5132_v5  ;;  %5182 = vmatpush3.bf16.msra.mxu0 %v5181_v33  ;;  %v1036_v37 = vsel %vm531_vm6, %v952_v56, %v992_v24  ;;  %v1609_v33 = vld [vmem:[%s9809_s9 + $0x38] sm:$0xff] }
 0x599   :  { %v1043_v27 = vsel %vm1039_vm8, %v990_v63, %v7080_v11  ;;  %5135 = vmatprep.subr.bf16.mxu1 %v5134_v17  ;;  %5183 = vmatprep.subr.bf16.mxu0 %v6076_v34  ;;  %v1624_v63 = vld [vmem:[%s9809_s9 + $0xb0] sm:$0xff]  ;;  %v5203_v13 = vpack.c.bf16 %v1609_v33, %v1608_v2  ;;  %v1627_v17 = vld [vmem:[%s9809_s9 + $0xc8] sm:$0xff] }
 0x59a   :  { %1270 = vmatprep.mubr.f32.mxu1 %v1043_v27  ;;  %1481 = vmatprep.mubr.f32.mxu0 %v1043_v27  ;;  %v5205_v18 = vpack.c.bf16 %v1627_v17, %v1626_v14 }
 0x59b   :  { %1271 = vmatmul.mubr.f32.gmra.mrb[10].mxu1 %v1035_v1  ;;  %1482 = vmatmul.mubr.f32.gmra.mrb[24].mxu0 %v1035_v1  ;;  %v994_v43 = vpop.permute.xlu0 %993  ;;  %v1633_v1 = vld [vmem:[%s9809_s9 + $0xf8] sm:$0xff] }
 0x59c   :  { %v1020_v32 = vpop.permute.xlu1 %1019  ;;  %5137 = vmatpush1.bf16.msra.mxu1 %v5136_v36  ;;  %5185 = vmatpush3.bf16.msra.mxu0 %v5184_v25  ;;  %v1037_v28 = vsel %vm531_vm6, %v953_v46, %v994_v43  ;;  %v1630_v25 = vld [vmem:[%s9809_s9 + $0xe0] sm:$0xff]  ;;  %v5217_v56 = vpack.c.bf16 %v1633_v1, %v1632_v4 }
 0x59d   :  { %v1044_v44 = vsel %vm1039_vm8, %v992_v24, %v1020_v32  ;;  %5139 = vmatprep.subr.bf16.mxu1 %v5138_v23  ;;  %5186 = vmatprep.subr.bf16.mxu0 %v6076_v34  ;;  %v5209_v24 = vpack.c.bf16 %v1629_v21, %v1628_v20  ;;  %v5213_v27 = vpack.c.bf16 %v1631_v62, %v1630_v25  ;;  %v1614_v23 = vld [vmem:[%s9809_s9 + $0x60] sm:$0xff] }
 0x59e   :  { %1276 = vmatprep.mubr.f32.mxu1 %v1044_v44  ;;  %1486 = vmatprep.mubr.f32.mxu0 %v1044_v44  ;;  %v5215_v40 = vpack.c.bf16 %v1615_v30, %v1614_v23 }
 0x59f   :  { %1277 = vmatmul.mubr.f32.gmra.mrb[12].mxu1 %v1036_v37  ;;  %1487 = vmatmul.mubr.f32.gmra.mrb[26].mxu0 %v1036_v37  ;;  %v996_v16 = vpop.permute.xlu0 %995 }
 0x5a0   :  { %v1022_v38 = vpop.permute.xlu1 %1021  ;;  %5141 = vmatpush1.bf16.msra.mxu1 %v5140_v6  ;;  %5188 = vmatpush3.bf16.msra.mxu0 %v5187_v35  ;;  %v1038_v49 = vsel %vm531_vm6, %v954_v42, %v996_v16  ;;  %v1617_v6 = vld [vmem:[%s9809_s9 + $0x78] sm:$0xff]  ;;  %vm3184_vm6 = vcmask 97280  }
 0x5a1   :  { %v1045_v7 = vsel %vm1039_vm8, %v994_v43, %v1022_v38 }
 0x5a2   :  { %1282 = vmatprep.mubr.f32.mxu1 %v1045_v7  ;;  %1491 = vmatprep.mubr.f32.mxu0 %v1045_v7 }
 0x5a3   :  { %1283 = vmatmul.mubr.f32.gmra.mrb[14].mxu1 %v1037_v28  ;;  %1492 = vmatmul.mubr.f32.gmra.mrb[28].mxu0 %v1037_v28 }
 0x5a4   :  { %v1024_v39 = vpop.permute.xlu1 %1023 }
 0x5a5   :  { %v1046_v45 = vsel %vm1039_vm8, %v996_v16, %v1024_v39 }
 0x5a6   :  { %1288 = vmatprep.mubr.f32.mxu1 %v1046_v45  ;;  %1496 = vmatprep.mubr.f32.mxu0 %v1046_v45 }
 0x5a7   :  { %1289 = vmatmul.mubr.f32.gmra.mrb[16].mxu1 %v1038_v49  ;;  %1497 = vmatmul.mubr.f32.gmra.mrb[30].mxu0 %v1038_v49 }
 0x5a8   :  { %1359 = vmatprep.mubr.f32.mxu1 %v6074_v59  ;;  %4928 = vmatprep.mubr.msk.f32.mxu0 %vm6077_vm2, %v6074_v59 }
 0x5ab   :  { %4535 = vmatmul.mubr.msk.f32.vlgmr.msra.gmra.mrb[4].mxu1 %vm1173_vm13, %v7006_v61  ;;  %4929 = vmatmul.mubr.msk.f32.vlgmr.msra.gmra.mrb[32].mxu0 %vm1173_vm13, %v7006_v61  ;;  %v5189_v61 = vpack.c.bf16 %v1619_v9, %v1618_v57 }
 0x5ac   :  { %1365 = vmatprep.mubr.f32.mxu1 %v6074_v59  ;;  %4931 = vmatprep.mubr.msk.f32.mxu0 %vm6077_vm2, %v6074_v59 }
 0x5ad   :  { %5190 = vmatprep.subr.bf16.mxu0 %v5189_v61  ;;  %5235 = vmatprep.subr.bf16.mxu1 %v5189_v61 }
 0x5af   :  { %4536 = vmatmul.mubr.msk.f32.gmra.mrb[6].mxu1 %vm1173_vm13, %v7029_v47  ;;  %4932 = vmatmul.mubr.msk.f32.gmra.mrb[34].mxu0 %vm1173_vm13, %v7029_v47  ;;  %v5191_v47 = vpack.c.bf16 %v1603_v19, %v1602_v10 }
 0x5b0   :  { %1371 = vmatprep.mubr.f32.mxu1 %v6074_v59  ;;  %4934 = vmatprep.mubr.msk.f32.mxu0 %vm6077_vm2, %v6074_v59 }
 0x5b1   :  { %5192 = vmatpush3.bf16.msra.mxu0 %v5191_v47  ;;  %5237 = vmatpush3.bf16.msra.mxu1 %v5191_v47 }
 0x5b2   :  { %5194 = vmatprep.subr.bf16.mxu0 %v5193_v50  ;;  %5239 = vmatprep.subr.bf16.mxu1 %v5193_v50 }
 0x5b3   :  { %4537 = vmatmul.mubr.msk.f32.gmra.mrb[8].mxu1 %vm1173_vm13, %v7054_v60  ;;  %4935 = vmatmul.mubr.msk.f32.gmra.mrb[36].mxu0 %vm1173_vm13, %v7054_v60  ;;  %v1625_v60 = vld [vmem:[%s9809_s9 + $0xb8] sm:$0xff] }
 0x5b4   :  { %1377 = vmatprep.mubr.f32.mxu1 %v6074_v59  ;;  %4937 = vmatprep.mubr.msk.f32.mxu0 %vm6077_vm2, %v6074_v59  ;;  %v5201_v5 = vpack.c.bf16 %v1625_v60, %v1624_v63 }
 0x5b5   :  { %5196 = vmatpush3.bf16.msra.mxu0 %v5195_v52  ;;  %5241 = vmatpush3.bf16.msra.mxu1 %v5195_v52 }
 0x5b6   :  { %5198 = vmatprep.subr.bf16.mxu0 %v5197_v55  ;;  %5243 = vmatprep.subr.bf16.mxu1 %v5197_v55 }
 0x5b7   :  { %4538 = vmatmul.mubr.msk.f32.gmra.mrb[10].mxu1 %vm1173_vm13, %v7080_v11  ;;  %4938 = vmatmul.mubr.msk.f32.gmra.mrb[38].mxu0 %vm1173_vm13, %v7080_v11  ;;  %v1612_v11 = vld [vmem:[%s9809_s9 + $0x50] sm:$0xff] }
 0x5b8   :  { %1383 = vmatprep.mubr.f32.mxu1 %v6074_v59  ;;  %4940 = vmatprep.mubr.msk.f32.mxu0 %vm6077_vm2, %v6074_v59  ;;  %v5211_v36 = vpack.c.bf16 %v1613_v22, %v1612_v11 }
 0x5b9   :  { %5200 = vmatpush3.bf16.msra.mxu0 %v5199_v58  ;;  %5245 = vmatpush3.bf16.msra.mxu1 %v5199_v58 }
 0x5ba   :  { %5202 = vmatprep.subr.bf16.mxu0 %v5201_v5  ;;  %5247 = vmatprep.subr.bf16.mxu1 %v5201_v5 }
 0x5bb   :  { %4539 = vmatmul.mubr.msk.f32.gmra.mrb[12].mxu1 %vm1173_vm13, %v1020_v32  ;;  %4941 = vmatmul.mubr.msk.f32.gmra.mrb[40].mxu0 %vm1173_vm13, %v1020_v32  ;;  %v1616_v32 = vld [vmem:[%s9809_s9 + $0x70] sm:$0xff] }
 0x5bc   :  { %1389 = vmatprep.mubr.f32.mxu1 %v6074_v59  ;;  %4943 = vmatprep.mubr.msk.f32.mxu0 %vm6077_vm2, %v6074_v59  ;;  %v5219_v35 = vpack.c.bf16 %v1617_v6, %v1616_v32 }
 0x5bd   :  { %5204 = vmatpush3.bf16.msra.mxu0 %v5203_v13  ;;  %5249 = vmatpush3.bf16.msra.mxu1 %v5203_v13 }
 0x5be   :  { %5206 = vmatprep.subr.bf16.mxu0 %v5205_v18  ;;  %5251 = vmatprep.subr.bf16.mxu1 %v5205_v18 }
 0x5bf   :  { %4540 = vmatmul.mubr.msk.f32.gmra.mrb[14].mxu1 %vm1173_vm13, %v1022_v38  ;;  %4944 = vmatmul.mubr.msk.f32.gmra.mrb[42].mxu0 %vm1173_vm13, %v1022_v38 }
 0x5c0   :  { %1395 = vmatprep.mubr.f32.mxu1 %v6074_v59  ;;  %4946 = vmatprep.mubr.msk.f32.mxu0 %vm6077_vm2, %v6074_v59 }
 0x5c1   :  { %5208 = vmatpush3.bf16.msra.mxu0 %v5207_v12  ;;  %5253 = vmatpush3.bf16.msra.mxu1 %v5207_v12 }
 0x5c2   :  { %5210 = vmatprep.subr.bf16.mxu0 %v5209_v24  ;;  %5255 = vmatprep.subr.bf16.mxu1 %v5209_v24 }
 0x5c3   :  { %4541 = vmatmul.mubr.msk.f32.gmra.mrb[16].mxu1 %vm1173_vm13, %v1024_v39  ;;  %4947 = vmatmul.mubr.msk.f32.gmra.mrb[44].mxu0 %vm1173_vm13, %v1024_v39  ;;  %vm3271_vm13 = vcmask 982016  }
 0x5c5   :  { %5212 = vmatpush3.bf16.msra.mxu0 %v5211_v36  ;;  %5257 = vmatpush3.bf16.msra.mxu1 %v5211_v36 }
 0x5c6   :  { %5214 = vmatprep.subr.bf16.mxu0 %v5213_v27  ;;  %5259 = vmatprep.subr.bf16.mxu1 %v5213_v27 }
 0x5c9   :  { %5216 = vmatpush3.bf16.msra.mxu0 %v5215_v40  ;;  %5261 = vmatpush3.bf16.msra.mxu1 %v5215_v40 }
 0x5ca   :  { %5218 = vmatprep.subr.bf16.mxu0 %v5217_v56  ;;  %5263 = vmatprep.subr.bf16.mxu1 %v5217_v56 }
 0x5cd   :  { %5220 = vmatpush3.bf16.msra.mxu0 %v5219_v35  ;;  %5265 = vmatpush3.bf16.msra.mxu1 %v5219_v35 }
 0x5ce   :  { %5221 = vmatprep.subr.bf16.mxu0 %v6076_v34 }
 0x662   :  { %v4660_v43 = vpop.f32.mrb[18].mxu0 }
 0x663   :  { %v4661_v44 = vpop.f32.mrb[19].mxu0 }
 0x664   :  { %v4662_v37 = vadd.f32 %v4661_v44, %v4660_v43 }
 0x666   :  { %v4663_v38 = vpop.f32.mrb[20].mxu0 }
 0x667   :  { %v4664_v46 = vpop.f32.mrb[21].mxu0 }
 0x668   :  { %v4665_v7 = vadd.f32 %v4664_v46, %v4663_v38 }
 0x66a   :  { %v4666_v28 = vpop.f32.mrb[22].mxu0 }
 0x66b   :  { %v4667_v16 = vpop.f32.mrb[23].mxu0 }
 0x66c   :  { %v4668_v39 = vadd.f32 %v4667_v16, %v4666_v28 }
 0x66e   :  { %v4669_v42 = vpop.f32.mrb[24].mxu0 }
 0x66f   :  { %v4670_v45 = vpop.f32.mrb[25].mxu0 }
 0x670   :  { %v4671_v49 = vadd.f32 %v4670_v45, %v4669_v42 }
 0x672   :  { %v4672_v57 = vpop.f32.mrb[26].mxu0 }
 0x673   :  { %v4673_v9 = vpop.f32.mrb[27].mxu0 }
 0x674   :  { %v4674_v10 = vadd.f32 %v4673_v9, %v4672_v57 }
 0x676   :  { %v4675_v61 = vpop.f32.mrb[28].mxu0 }
 0x677   :  { %v4676_v19 = vpop.f32.mrb[29].mxu0 }
 0x678   :  { %v4677_v47 = vadd.f32 %v4676_v19, %v4675_v61 }
 0x67a   :  { %v4678_v41 = vpop.f32.mrb[30].mxu0 }
 0x67b   :  { %v4679_v15 = vpop.f32.mrb[31].mxu0 }
 0x67c   :  { %v4680_v48 = vadd.f32 %v4679_v15, %v4678_v41 }
 0x67e   :  { %v7253_v50 = vpop.f32.mrb[4].mxu1  ;;  %v1568_v51 = vpop.f32.mrb[32].mxu0 }
 0x67f   :  { %v7255_v52 = vadd.f32 %v4662_v37, %v1568_v51  ;;  %v7257_v53 = vpop.f32.mrb[5].mxu1  ;;  %v4930_v31 = vpop.f32.mrb[33].mxu0 }
 0x681   :  { %v1670_v27 = vsel %vm1669_vm9, %v7255_v52, 0.0 }
 0x682   :  { %v7259_v54 = vpop.f32.mrb[6].mxu1  ;;  %v1573_v55 = vpop.f32.mrb[34].mxu0 }
 0x683   :  { %v1645_v8 = vadd.f32 %v7259_v54, %v7253_v50  ;;  %v7263_v58 = vadd.f32 %v4665_v7, %v1573_v55  ;;  %v7265_v63 = vpop.f32.mrb[7].mxu1  ;;  %v4933_v60 = vpop.f32.mrb[35].mxu0 }
 0x684   :  { %v1657_v2 = vadd.f32 %v7265_v63, %v7257_v53 }
 0x685   :  { %v1671_v36 = vsel %vm1669_vm9, %v7263_v58, 0.0 }
 0x686   :  { %v7269_v5 = vpop.f32.mrb[8].mxu1  ;;  %v1578_v33 = vpop.f32.mrb[36].mxu0  ;;  %v1672_v32 = vadd.f32 %v1671_v36, %v1670_v27 }
 0x687   :  { %v1646_v13 = vadd.f32 %v1645_v8, %v7269_v5  ;;  %v7272_v14 = vadd.f32 %v4668_v39, %v1578_v33  ;;  %v7274_v17 = vpop.f32.mrb[9].mxu1  ;;  %v4936_v18 = vpop.f32.mrb[37].mxu0 }
 0x688   :  { %v1658_v0 = vadd.f32 %v1657_v2, %v7274_v17 }
 0x689   :  { %v1673_v23 = vsel %vm1669_vm9, %v7272_v14, 0.0 }
 0x68a   :  { %v7277_v29 = vpop.f32.mrb[10].mxu1  ;;  %v1583_v12 = vpop.f32.mrb[38].mxu0  ;;  %v1674_v35 = vadd.f32 %v1673_v23, %v1672_v32  ;;  %v1636_v32 = vld [vmem:[%s9809_s9 + $0x110] sm:$0xff] }
 0x68b   :  { %v1647_v20 = vadd.f32 %v1646_v13, %v7277_v29  ;;  %v7280_v21 = vadd.f32 %v4671_v49, %v1583_v12  ;;  %v7282_v24 = vpop.f32.mrb[11].mxu1  ;;  %v4939_v11 = vpop.f32.mrb[39].mxu0 }
 0x68c   :  { %v1659_v22 = vadd.f32 %v1658_v0, %v7282_v24  ;;  %v1634_v11 = vld [vmem:[%s9809_s9 + $0x100] sm:$0xff] }
 0x68d   :  { %v1675_v6 = vsel %vm1669_vm9, %v7280_v21, 0.0 }
 0x68e   :  { %v7287_v25 = vpop.f32.mrb[12].mxu1  ;;  %v1588_v62 = vpop.f32.mrb[40].mxu0  ;;  %v1676_v16 = vadd.f32 %v1675_v6, %v1674_v35  ;;  %v1638_v6 = vld [vmem:[%s9810_s10 + $0x8] sm:$0xff]  ;;  %v1641_v35 = vld [vmem:[%s9810_s10 + $0x20] sm:$0x3] }
 0x68f   :  { %v1648_v30 = vadd.f32 %v1647_v20, %v7287_v25  ;;  %v7294_v40 = vadd.f32 %v4674_v10, %v1588_v62  ;;  %v7296_v4 = vpop.f32.mrb[13].mxu1  ;;  %v4942_v1 = vpop.f32.mrb[41].mxu0 }
 0x690   :  { %v1660_v56 = vadd.f32 %v1659_v22, %v7296_v4  ;;  %v1635_v22 = vld [vmem:[%s9809_s9 + $0x108] sm:$0xff] }
 0x691   :  { %v1677_v37 = vsel %vm1669_vm9, %v7294_v40, 0.0  ;;  %v5222_v23 = vpack.c.bf16 %v1635_v22, %v1634_v11 }
 0x692   :  { %v7301_v43 = vpop.f32.mrb[14].mxu1  ;;  %v1593_v44 = vpop.f32.mrb[42].mxu0  ;;  %v1678_v45 = vadd.f32 %v1677_v37, %v1676_v16 }
 0x693   :  { %v1649_v38 = vadd.f32 %v1648_v30, %v7301_v43  ;;  %v7306_v46 = vadd.f32 %v4677_v47, %v1593_v44  ;;  %v7308_v7 = vpop.f32.mrb[15].mxu1  ;;  %v4945_v28 = vpop.f32.mrb[43].mxu0  ;;  %v5224_v44 = vpack.c.bf16 %v1641_v35, %v1638_v6 }
 0x694   :  { %v1661_v39 = vadd.f32 %v1660_v56, %v7308_v7  ;;  %v1640_v28 = vld [vmem:[%s9810_s10 + $0x18] sm:$0x3] }
 0x695   :  { %v1679_v42 = vsel %vm1669_vm9, %v7306_v46, 0.0  ;;  %5271 = vmatprep.subr.msk.bf16.mxu1 %vm7343_vm15, %v5224_v44 }
 0x696   :  { %v7313_v49 = vpop.f32.mrb[16].mxu1  ;;  %v1598_v57 = vpop.f32.mrb[44].mxu0  ;;  %v1680_v47 = vadd.f32 %v1679_v42, %v1678_v45 }
 0x697   :  { %v1650_v9 = vadd.f32 %v1649_v38, %v7313_v49  ;;  %v7316_v10 = vadd.f32 %v4680_v48, %v1598_v57  ;;  %v7318_v61 = vpop.f32.mrb[17].mxu1  ;;  %v4948_v19 = vpop.f32.mrb[45].mxu0  ;;  %v1637_v38 = vld [vmem:[%s9810_s10] sm:$0xff]  ;;  %v1639_v57 = vld [vmem:[%s9810_s10 + $0x10] sm:$0xff] }
 0x698   :  { %v1662_v41 = vadd.f32 %v1661_v39, %v7318_v61  ;;  %v7357_v16 = vpack.c.bf16 %v1640_v28, %v1637_v38 }
 0x699   :  { %v1651_v15 = vrot.slane %v1650_v9, 4  ;;  %v1681_v51 = vsel %vm1669_vm9, %v7316_v10, 0.0 }
 0x69a   :  { %v1682_v31 = vadd.f32 %v1681_v51, %v1680_v47  ;;  %v1663_v55 = vrot.slane %v1662_v41, 4 }
 0x69b   :  { %v1652_v8 = vadd.f32 %v1651_v15, %v1650_v9  ;;  %v1642_v9 = vld [vmem:[%s9810_s10 + $0x28] sm:$0x3]  ;;  %s6091_s10 = smov 16  }
 0x69c   :  { %v1683_v60 = vrot.slane %v1682_v31, 4  ;;  %v1664_v2 = vadd.f32 %v1663_v55, %v1662_v41  ;;  %v7369_v47 = vpack.c.bf16 %v1642_v9, %v1639_v57 }
 0x69d   :  { %v1653_v33 = vrot.slane %v1652_v8, 2 }
 0x69e   :  { %v1684_v13 = vadd.f32 %v1683_v60, %v1682_v31  ;;  %v1665_v18 = vrot.slane %v1664_v2, 2 }
 0x69f   :  { %v1654_v48 = vadd.f32 %v1653_v33, %v1652_v8 }
 0x6a0   :  { %v1685_v0 = vrot.slane %v1684_v13, 2  ;;  %v1666_v12 = vadd.f32 %v1665_v18, %v1664_v2 }
 0x6a1   :  { %v1655_v20 = vrot.slane %v1654_v48, 1 }
 0x6a2   :  { %v1667_v36 = vrot.slane %v1666_v12, 1  ;;  %v1686_v62 = vadd.f32 %v1685_v0, %v1684_v13 }
 0x6a3   :  { %v1656_v30 = vadd.f32 %v1655_v20, %v1654_v48 }
 0x6a4   :  { %v1668_v27 = vadd.f32 %v1667_v36, %v1666_v12  ;;  %v1687_v1 = vrot.slane %v1686_v62, 1 }
 0x6a6   :  { %1756 = vmatprep.mubr.f32.mxu0 %v1668_v27  ;;  %v1688_v56 = vadd.f32 %v1687_v1, %v1686_v62 }
 0x6a7   :  { %1757 = vmatmul.mubr.f32.vlgmr.msra.gmra.mrb[46].mxu0 %v1656_v30 }
 0x6a8   :  { %5223 = vmatpush3.bf16.msra.mxu0 %v5222_v23  ;;  %4955 = vmatprep.mubr.msk.f32.mxu0 %vm6077_vm2, %v6074_v59 }
 0x6a9   :  { %4953 = vmatprep.subr.mxu0 %v6074_v59 }
 0x6ac   :  { %4954 = vmatpush3.msra.mxu0 %v1636_v32 }
 0x6ad   :  { %4956 = vmatmul.mubr.msk.f32.vlgmr.msra.gmra.mrb[48].mxu0 %vm1669_vm9, %v1688_v56  ;;  %5226 = vmatprep.subr.msk.bf16.mxu0 %vm7343_vm15, %v5224_v44 }
 0x6ae   :  { %1910 = vmatprep.mubr.f32.mxu0 %v6074_v59  ;;  %5229 = vmatpush1.bf16.msk.msra.mxu0 %vm7343_vm15, %v7357_v16 }
 0x6af   :  { %5230 = vmatprep.subr.bf16.mxu0 %v6076_v34 }
 0x77a   :  { %v4730_v39 = vpop.f32.mrb[46].mxu0 }
 0x77b   :  { %v4731_v42 = vpop.f32.mrb[47].mxu0 }
 0x77c   :  { %v4732_v45 = vadd.f32 %v4731_v42, %v4730_v39 }
 0x780   :  { %v1828_v19 = vpop.f32.mrb[48].mxu0 }
 0x781   :  { %v1829_v41 = vadd.f32 %v4732_v45, %v1828_v19  ;;  %v4957_v15 = vpop.f32.mrb[49].mxu0 }
 0x783   :  { %4552 = vmatmul.mubr.msk.f32.vlgmr.msra.gmra.mrb[50].mxu0 %vm1832_vm3, %v1829_v41 }
 0x784   :  { %5233 = vmatpush3.bf16.msk.msra.mxu0 %vm7343_vm15, %v7369_v47  ;;  %4962 = vmatprep.mubr.msk.f32.mxu0 %vm6077_vm2, %v6074_v59 }
 0x785   :  { %5266 = vmatprep.subr.bf16.mxu0 %v6076_v34 }
 0x787   :  { %4963 = vmatmul.mubr.msk.f32.vlgmr.msra.gmra.mrb[52].mxu0 %vm1832_vm3, %v1829_v41 }
 0x788   :  { %5268 = vmatpush3.bf16.msra.mxu0 %v5222_v23  ;;  %4971 = vmatprep.mubr.msk.f32.mxu0 %vm6077_vm2, %v6074_v59 }
 0x789   :  { %4969 = vmatprep.subr.mxu0 %v6074_v59 }
 0x78c   :  { %4970 = vmatpush3.msra.mxu0 %v1636_v32 }
 0x78d   :  { %5275 = vmatprep.subr.bf16.mxu0 %v6076_v34 }
 0x856   :  { %v1912_v51 = vpop.f32.mrb[50].mxu0 }
 0x857   :  { %v1987_v31 = vmul.f32 0.0006377551, %v1912_v51  ;;  %v1914_v55 = vpop.f32.mrb[51].mxu0 }
 0x858   :  { %v1988_v8 = vmul.f32 0.0006377551, %v1914_v55 }
 0x859   :  { %v1993_v60 = vrot.slane %v1987_v31, %v6590_v26 }
 0x85a   :  { %v1997_v2 = vrot.slane %v1988_v8, %v6590_v26  ;;  %v1983_v33 = vpop.f32.mrb[52].mxu0 }
 0x85b   :  { %v7386_v13 = vsub.f32 %v7253_v50, %v1993_v60  ;;  %v7389_v18 = vsub.f32 %v7259_v54, %v1993_v60  ;;  %v7392_v48 = vsub.f32 %v7269_v5, %v1993_v60  ;;  %v7395_v0 = vsub.f32 %v7277_v29, %v1993_v60  ;;  %v4964_v12 = vpop.f32.mrb[53].mxu0 }
 0x85c   :  { %v1989_v20 = vmul.f32 0.0006377551, %v1983_v33  ;;  %v7398_v11 = vsub.f32 %v7257_v53, %v1997_v2  ;;  %v7401_v22 = vsub.f32 %v7265_v63, %v1997_v2  ;;  %v7404_v50 = vsub.f32 %v7274_v17, %v1997_v2 }
 0x85d   :  { %v7407_v54 = vsub.f32 %v7282_v24, %v1997_v2  ;;  %v7410_v5 = vsub.f32 %v7296_v4, %v1997_v2  ;;  %v7414_v36 = vsub.f32 %v7308_v7, %v1997_v2  ;;  %v7417_v53 = vsub.f32 %v7318_v61, %v1997_v2 }
 0x85e   :  { %v2001_v29 = vrot.slane %v1989_v20, %v6590_v26  ;;  %v2024_v63 = vmul.f32 %v7398_v11, %v7398_v11  ;;  %v2027_v17 = vmul.f32 %v7401_v22, %v7401_v22  ;;  %v2023_v24 = vmul.f32 %v7386_v13, %v7386_v13 }
 0x85f   :  { %v2026_v4 = vmul.f32 %v7389_v18, %v7389_v18  ;;  %v2030_v27 = vmul.f32 %v7404_v50, %v7404_v50  ;;  %v7439_v30 = vsub.f32 %v7287_v25, %v1993_v60  ;;  %v7444_v32 = vsub.f32 %v7301_v43, %v1993_v60 }
 0x860   :  { %v7428_v62 = vsub.f32 %v7255_v52, %v2001_v29  ;;  %v7431_v7 = vsub.f32 %v7263_v58, %v2001_v29  ;;  %v7434_v61 = vsub.f32 %v7272_v14, %v2001_v29  ;;  %v2056_v23 = vadd.f32 %v2027_v17, %v2024_v63 }
 0x861   :  { %v7447_v52 = vsub.f32 %v7313_v49, %v1993_v60  ;;  %v7450_v58 = vsub.f32 %v7280_v21, %v2001_v29  ;;  %v2033_v56 = vmul.f32 %v7407_v54, %v7407_v54  ;;  %v2029_v6 = vmul.f32 %v7392_v48, %v7392_v48 }
 0x862   :  { %v2025_v1 = vmul.f32 %v7428_v62, %v7428_v62  ;;  %v2028_v14 = vmul.f32 %v7431_v7, %v7431_v7  ;;  %v2057_v25 = vadd.f32 %v2056_v23, %v2030_v27  ;;  %v2044_v35 = vadd.f32 %v2026_v4, %v2023_v24 }
 0x863   :  { %v2036_v43 = vmul.f32 %v7410_v5, %v7410_v5  ;;  %v7461_v49 = vsub.f32 %v7294_v40, %v2001_v29  ;;  %v2031_v21 = vmul.f32 %v7434_v61, %v7434_v61  ;;  %v2039_v38 = vmul.f32 %v7414_v36, %v7414_v36 }
 0x864   :  { %v2058_v44 = vadd.f32 %v2057_v25, %v2033_v56  ;;  %v2032_v28 = vmul.f32 %v7395_v0, %v7395_v0  ;;  %v2045_v39 = vadd.f32 %v2044_v35, %v2029_v6  ;;  %v2068_v42 = vsel %vm1669_vm9, %v2025_v1, 0.0 }
 0x865   :  { %v7471_v57 = vsub.f32 %v7306_v46, %v2001_v29  ;;  %v2034_v40 = vmul.f32 %v7450_v58, %v7450_v58  ;;  %v2069_v9 = vsel %vm1669_vm9, %v2028_v14, 0.0  ;;  %v2042_v19 = vmul.f32 %v7417_v53, %v7417_v53 }
 0x866   :  { %v2059_v45 = vadd.f32 %v2058_v44, %v2036_v43  ;;  %v2035_v41 = vmul.f32 %v7439_v30, %v7439_v30  ;;  %v2046_v15 = vadd.f32 %v2045_v39, %v2032_v28  ;;  %v2070_v51 = vadd.f32 %v2069_v9, %v2068_v42 }
 0x867   :  { %v7481_v55 = vsub.f32 %v7316_v10, %v2001_v29  ;;  %v2037_v46 = vmul.f32 %v7461_v49, %v7461_v49  ;;  %v2071_v8 = vsel %vm1669_vm9, %v2031_v21, 0.0  ;;  %v2038_v60 = vmul.f32 %v7444_v32, %v7444_v32 }
 0x868   :  { %v2060_v31 = vadd.f32 %v2059_v45, %v2039_v38  ;;  %v2047_v2 = vadd.f32 %v2046_v15, %v2035_v41  ;;  %v2072_v33 = vadd.f32 %v2071_v8, %v2070_v51  ;;  %v2040_v20 = vmul.f32 %v7471_v57, %v7471_v57 }
 0x869   :  { %v2073_v63 = vsel %vm1669_vm9, %v2034_v40, 0.0  ;;  %v2041_v10 = vmul.f32 %v7447_v52, %v7447_v52  ;;  %v2043_v4 = vmul.f32 %v7481_v55, %v7481_v55  ;;  %v2075_v27 = vsel %vm1669_vm9, %v2037_v46, 0.0 }
 0x86a   :  { %v2061_v12 = vadd.f32 %v2060_v31, %v2042_v19  ;;  %v2048_v29 = vadd.f32 %v2047_v2, %v2038_v60  ;;  %v2074_v17 = vadd.f32 %v2073_v63, %v2072_v33  ;;  %v2077_v56 = vsel %vm1669_vm9, %v2040_v20, 0.0 }
 0x86b   :  { %v2079_v43 = vsel %vm1669_vm9, %v2043_v4, 0.0 }
 0x86c   :  { %v2062_v24 = vrot.slane %v2061_v12, 4  ;;  %v2049_v23 = vadd.f32 %v2048_v29, %v2041_v10  ;;  %v2076_v1 = vadd.f32 %v2075_v27, %v2074_v17 }
 0x86e   :  { %v2063_v14 = vadd.f32 %v2062_v24, %v2061_v12  ;;  %v2050_v25 = vrot.slane %v2049_v23, 4  ;;  %v2078_v6 = vadd.f32 %v2077_v56, %v2076_v1  ;;  %v2394_v1 = vsub.s32 2, %v6198_v3 }
 0x870   :  { %v2064_v35 = vrot.slane %v2063_v14, 2  ;;  %v2051_v44 = vadd.f32 %v2050_v25, %v2049_v23  ;;  %v2080_v21 = vadd.f32 %v2079_v43, %v2078_v6  ;;  %v1643_v23 = vld [vmem:[%s9807_s7] sm:$0x7]  ;;  %s6081_s7 = smov 127  }
 0x871   :  { %v2387_v56 = vrot.slane %v1643_v23, %v6590_v26  ;;  %v2395_v25 = vrot.slane %v1643_v23, %v2394_v1  ;;  %v1644_v43 = vld [vmem:[%s9808_s8] sm:$0x7] }
 0x872   :  { %v2065_v38 = vadd.f32 %v2064_v35, %v2063_v14  ;;  %v2052_v28 = vrot.slane %v2051_v44, 2  ;;  %v2081_v39 = vrot.slane %v2080_v21, 4  ;;  %v7516_v14 = vsub.s32 1, %v6198_v3 }
 0x873   :  { %v7527_v3 = vrot.slane %v1644_v43, %v6590_v26 }
 0x874   :  { %v2066_v42 = vrot.slane %v2065_v38, 1  ;;  %v2053_v45 = vadd.f32 %v2052_v28, %v2051_v44  ;;  %v2082_v40 = vadd.f32 %v2081_v39, %v2080_v21  ;;  %v2391_v6 = vrot.slane %v1643_v23, %v7516_v14 }
 0x876   :  { %v2067_v9 = vadd.f32 %v2066_v42, %v2065_v38  ;;  %v2054_v19 = vrot.slane %v2053_v45, 1  ;;  %v2083_v41 = vrot.slane %v2082_v40, 2 }
 0x878   :  { %2154 = vmatprep.mubr.f32.mxu1 %v2067_v9  ;;  %v2055_v15 = vadd.f32 %v2054_v19, %v2053_v45  ;;  %v2084_v51 = vadd.f32 %v2083_v41, %v2082_v40  ;;  %v7532_v40 = vrot.slane %v1644_v43, %v2394_v1  ;;  %v7535_v9 = vrot.slane %v1644_v43, %v7516_v14 }
 0x87a   :  { %2155 = vmatmul.mubr.f32.vlgmr.msra.gmra.mrb[18].mxu1 %v2055_v15  ;;  %v2085_v31 = vrot.slane %v2084_v51, 1 }
 0x87b   :  { %5274 = vmatpush1.bf16.msk.msra.mxu1 %vm7343_vm15, %v7357_v16  ;;  %2297 = vmatprep.mubr.f32.mxu1 %v6074_v59 }
 0x87c   :  { %v2086_v46 = vadd.f32 %v2085_v31, %v2084_v51 }
 0x87e   :  { %4972 = vmatmul.mubr.msk.f32.vlgmr.msra.gmra.mrb[54].mxu0 %vm1669_vm9, %v2086_v46 }
 0x87f   :  { %5278 = vmatpush3.bf16.msk.msra.mxu0 %vm7343_vm15, %v7369_v47  ;;  %4978 = vmatprep.mubr.msk.f32.mxu0 %vm6077_vm2, %v6074_v59  ;;  %vm2592_vm2 = vcmask 187392  }
 0x94d   :  { %v4772_v8 = vpop.f32.mrb[18].mxu1 }
 0x94e   :  { %v4773_v60 = vpop.f32.mrb[19].mxu1 }
 0x94f   :  { %v4774_v2 = vadd.f32 %v4773_v60, %v4772_v8 }
 0x951   :  { %v2226_v33 = vpop.f32.mrb[54].mxu0 }
 0x952   :  { %v2227_v12 = vadd.f32 %v4774_v2, %v2226_v33  ;;  %v4973_v20 = vpop.f32.mrb[55].mxu0 }
 0x954   :  { %4558 = vmatmul.mubr.msk.f32.vlgmr.msra.gmra.mrb[20].mxu1 %vm1832_vm3, %v2227_v12  ;;  %4979 = vmatmul.mubr.msk.f32.vlgmr.msra.gmra.mrb[56].mxu0 %vm1832_vm3, %v2227_v12 }
 0x955   :  { %2806 = vmatprep.mubr.f32.mxu1 %v6074_v59 }
 0xa27   :  { %v2299_v16 = vpop.f32.mrb[20].mxu1  ;;  %v2370_v63 = vpop.f32.mrb[56].mxu0 }
 0xa28   :  { %v2374_v10 = vmul.f32 0.0006377551, %v2299_v16  ;;  %v2376_v37 = vmul.f32 0.0006377551, %v2370_v63  ;;  %v2301_v47 = vpop.f32.mrb[21].mxu1  ;;  %v4980_v29 = vpop.f32.mrb[57].mxu0 }
 0xa29   :  { %v2375_v17 = vmul.f32 0.0006377551, %v2301_v47 }
 0xa2a   :  { %v2377_v24 = vadd.f32 1e-05, %v2374_v10  ;;  %v2379_v4 = vadd.f32 1e-05, %v2376_v37 }
 0xa2b   :  { %v2378_v27 = vadd.f32 1e-05, %v2375_v17 }
 0xa2c   :  { %6042 = vrsqrt.f32 %v2377_v24 }
 0xa2d   :  { %6044 = vrsqrt.f32 %v2379_v4 }
 0xa2e   :  { %6046 = vrsqrt.f32 %v2378_v27 }
 0xa36   :  { %v6043_v35 = vpop.eup %6042 }
 0xa37   :  { %v6045_v44 = vpop.eup %6044  ;;  %v2399_v21 = vmul.f32 %v6043_v35, %v2387_v56 }
 0xa38   :  { %v6047_v38 = vpop.eup %6046  ;;  %v2401_v28 = vmul.f32 %v6045_v44, %v2395_v25 }
 0xa39   :  { %v7524_v39 = vrot.slane %v2399_v21, %v6590_v26  ;;  %v2400_v42 = vmul.f32 %v6047_v38, %v2391_v6 }
 0xa3a   :  { %v7530_v45 = vrot.slane %v2401_v28, %v6590_v26 }
 0xa3b   :  { %v2409_v19 = vrot.slane %v2400_v42, %v6590_v26  ;;  %v2414_v41 = vmul.f32 %v7524_v39, %v7386_v13  ;;  %v2417_v15 = vmul.f32 %v7524_v39, %v7389_v18  ;;  %v2423_v51 = vmul.f32 %v7524_v39, %v7395_v0 }
 0xa3c   :  { %v2428_v31 = vmul.f32 %v7530_v45, %v7461_v49  ;;  %v2419_v46 = vmul.f32 %v7530_v45, %v7431_v7  ;;  %v2416_v8 = vmul.f32 %v7530_v45, %v7428_v62  ;;  %v2425_v60 = vmul.f32 %v7530_v45, %v7450_v58 }
 0xa3d   :  { %v7553_v13 = vadd.f32 %v7527_v3, %v2414_v41  ;;  %v7556_v18 = vadd.f32 %v7527_v3, %v2417_v15  ;;  %v7559_v0 = vadd.f32 %v7527_v3, %v2423_v51  ;;  %v2418_v49 = vmul.f32 %v2409_v19, %v7401_v22 }
 0xa3e   :  { %v2465_v2 = vadd.f32 %v7532_v40, %v2428_v31  ;;  %v2456_v7 = vadd.f32 %v7532_v40, %v2419_v46  ;;  %v2415_v62 = vmul.f32 %v2409_v19, %v7398_v11  ;;  %v2453_v33 = vadd.f32 %v7532_v40, %v2416_v8 }
 0xa3f   :  { %v2472_v58 = vmax.f32 %v7553_v13, 0.0  ;;  %v2475_v12 = vmax.f32 %v7556_v18, 0.0  ;;  %v2481_v20 = vmax.f32 %v7559_v0, 0.0  ;;  %v7570_v16 = vadd.f32 %v7535_v9, %v2418_v49 }
 0xa40   :  { %v7572_v63 = vmax.f32 %v2465_v2, 0.0  ;;  %v7574_v22 = vmax.f32 %v2456_v7, 0.0  ;;  %v7577_v10 = vadd.f32 %v7535_v9, %v2415_v62  ;;  %v7579_v37 = vmax.f32 %v2453_v33, 0.0 }
 0xa41   :  { %v5960_v11 = vpack.i.bf16 %v2475_v12, %v2472_v58  ;;  %v2476_v47 = vmax.f32 %v7570_v16, 0.0  ;;  %v2427_v29 = vmul.f32 %v2409_v19, %v7410_v5  ;;  %v2462_v17 = vadd.f32 %v7532_v40, %v2425_v60 }
 0xa42   :  { %v5965_v24 = vpack.i.bf16 %v2481_v20, %v7572_v63  ;;  %v2473_v4 = vmax.f32 %v7577_v10, 0.0  ;;  %v2421_v27 = vmul.f32 %v2409_v19, %v7404_v50  ;;  %v2422_v23 = vmul.f32 %v7530_v45, %v7434_v61 }
 0xa43   :  { %5961 = vrot.lane.b32.xlu1 %v5960_v11, %s6081_s7  ;;  %v5975_v5 = vpack.i.bf16 %v7574_v22, %v2476_v47  ;;  %v7600_v1 = vadd.f32 %v7535_v9, %v2427_v29  ;;  %v2426_v56 = vmul.f32 %v7524_v39, %v7439_v30  ;;  %v7605_v25 = vmax.f32 %v2462_v17, 0.0 }
 0xa44   :  { %5966 = vrot.lane.b32.xlu0 %v5965_v24, %s6081_s7  ;;  %v7608_v50 = vadd.f32 %v7535_v9, %v2421_v27  ;;  %v2459_v61 = vadd.f32 %v7532_v40, %v2422_v23  ;;  %v2430_v6 = vmul.f32 %v2409_v19, %v7414_v36  ;;  %v2420_v44 = vmul.f32 %v7524_v39, %v7392_v48 }
 0xa45   :  { %v2485_v35 = vmax.f32 %v7600_v1, 0.0  ;;  %v7614_v43 = vadd.f32 %v7527_v3, %v2426_v56  ;;  %v2424_v30 = vmul.f32 %v2409_v19, %v7407_v54  ;;  %v5970_v21 = vpack.i.bf16 %v7579_v37, %v2473_v4 }
 0xa46   :  { %v2479_v38 = vmax.f32 %v7608_v50, 0.0  ;;  %v7623_v28 = vmax.f32 %v2459_v61, 0.0  ;;  %v7626_v36 = vadd.f32 %v7535_v9, %v2430_v6  ;;  %v7630_v42 = vadd.f32 %v7527_v3, %v2420_v44 }
 0xa47   :  { %5976 = vrot.lane.b32.xlu1 %v5975_v5, %s6081_s7  ;;  %v7633_v48 = vadd.f32 %v7535_v9, %v2424_v30  ;;  %v2433_v54 = vmul.f32 %v2409_v19, %v7417_v53  ;;  %v2429_v41 = vmul.f32 %v7524_v39, %v7444_v32  ;;  %v5995_v15 = vpack.i.bf16 %v2485_v35, %v7605_v25 }
 0xa48   :  { %5971 = vrot.lane.b32.xlu0 %v5970_v21, %s6081_s7  ;;  %v2484_v51 = vmax.f32 %v7614_v43, 0.0  ;;  %v2488_v31 = vmax.f32 %v7626_v36, 0.0  ;;  %v2431_v46 = vmul.f32 %v7530_v45, %v7471_v57  ;;  %v5980_v8 = vpack.i.bf16 %v7623_v28, %v2479_v38 }
 0xa49   :  { %v2478_v53 = vmax.f32 %v7630_v42, 0.0  ;;  %v2482_v19 = vmax.f32 %v7633_v48, 0.0  ;;  %v7652_v32 = vadd.f32 %v7527_v3, %v2429_v41  ;;  %v7662_v49 = vadd.f32 %v7535_v9, %v2433_v54 }
 0xa4a   :  { %v2468_v60 = vadd.f32 %v7532_v40, %v2431_v46  ;;  %v6000_v57 = vpack.i.bf16 %v2488_v31, %v2484_v51  ;;  %v2432_v2 = vmul.f32 %v7524_v39, %v7447_v52  ;;  %v2434_v11 = vmul.f32 %v7530_v45, %v7481_v55 }
 0xa4b   :  { %5996 = vrot.lane.b32.xlu1 %v5995_v15, %s6081_s7  ;;  %v5985_v7 = vpack.i.bf16 %v2482_v19, %v2478_v53  ;;  %v2487_v62 = vmax.f32 %v7652_v32, 0.0  ;;  %v2491_v9 = vmax.f32 %v7662_v49, 0.0 }
 0xa4c   :  { %5981 = vrot.lane.b32.xlu0 %v5980_v8, %s6081_s7  ;;  %v7671_v33 = vmax.f32 %v2468_v60, 0.0  ;;  %v7679_v52 = vadd.f32 %v7527_v3, %v2432_v2  ;;  %v2471_v29 = vadd.f32 %v7532_v40, %v2434_v11  ;;  %v7700_v3 = vld [vmem:[%s9811_s11] sm:$0xff] }
 0xa4d   :  { %4995 = vmatprep.mubr.msk.f32.mxu0 %vm369_vm14, %v7700_v3 }
 0xa4e   :  { %v5990_v39 = vpack.i.bf16 %v2487_v62, %v7671_v33  ;;  %v2490_v55 = vmax.f32 %v7679_v52, 0.0  ;;  %v7690_v45 = vmax.f32 %v2471_v29, 0.0 }
 0xa4f   :  { %6001 = vrot.lane.b32.xlu1 %v6000_v57, %s6081_s7 }
 0xa50   :  { %5986 = vrot.lane.b32.xlu0 %v5985_v7, %s6081_s7 }
 0xa53   :  { %2552 = vrot.lane.b32.xlu1 %v2491_v9, %s6081_s7 }
 0xa54   :  { %5991 = vrot.lane.b32.xlu0 %v5990_v39, %s6081_s7 }
 0xa57   :  { %2550 = vrot.lane.b32.xlu1 %v2490_v55, %s6081_s7 }
 0xa58   :  { %2554 = vrot.lane.b32.xlu0 %v7690_v45, %s6081_s7 }
 0xab5   :  { %v5962_v40 = vpop.permute.xlu1 %5961 }
 0xab6   :  { %v7704_v17 = vpop.permute.xlu0 %5966  ;;  %v5964_v23 = vunpack.i.h.bf16 %v5962_v40  ;;  %v5963_v21 = vunpack.i.l.bf16 %v5962_v40 }
 0xab7   :  { %v5968_v24 = vunpack.i.l.bf16 %v7704_v17 }
 0xab9   :  { %v5977_v27 = vpop.permute.xlu1 %5976  ;;  %v2597_v5 = vsel %vm2592_vm2, %v5968_v24, %v7572_v63 }
 0xaba   :  { %v5979_v56 = vunpack.i.h.bf16 %v5977_v27  ;;  %v5978_v61 = vunpack.i.l.bf16 %v5977_v27  ;;  %v5972_v6 = vpop.permute.xlu0 %5971  ;;  %v7714_v46 = vmax.f32 %v7572_v63, %v2597_v5  ;;  %v5969_v63 = vunpack.i.h.bf16 %v7704_v17 }
 0xabb   :  { %v5974_v44 = vunpack.i.h.bf16 %v5972_v6  ;;  %v5973_v30 = vunpack.i.l.bf16 %v5972_v6 }
 0xabc   :  { %v2594_v54 = vsel %vm2592_vm2, %v5979_v56, %v7574_v22  ;;  %v2559_v41 = vsel %vm2556_vm4, %v5964_v23, %v5978_v61  ;;  %v2560_v15 = vsel %vm2556_vm4, %v5978_v61, %v5979_v56  ;;  %v2667_v16 = vrot.slane %v7714_v46, 1 }
 0xabd   :  { %v7718_v8 = vmax.f32 %v2475_v12, %v2559_v41  ;;  %v2593_v60 = vsel %vm2592_vm2, %v5974_v44, %v7579_v37  ;;  %v5997_v57 = vpop.permute.xlu1 %5996  ;;  %v7723_v2 = vmax.f32 %v7574_v22, %v2594_v54  ;;  %v2557_v7 = vsel %vm2556_vm4, %v5963_v21, %v5973_v30 }
 0xabe   :  { %v2558_v11 = vsel %vm2556_vm4, %v5973_v30, %v5974_v44  ;;  %v5999_v39 = vunpack.i.h.bf16 %v5997_v57  ;;  %v5982_v29 = vpop.permute.xlu0 %5981  ;;  %v7730_v18 = vmax.f32 %v2476_v47, %v2560_v15  ;;  %v7735_v40 = vmax.f32 %v2472_v58, %v2557_v7 }
 0xabf   :  { %v2643_v12 = vrot.slane %v7718_v8, 1  ;;  %v7738_v22 = vmax.f32 %v7579_v37, %v2593_v60  ;;  %v7742_v27 = vmax.f32 %v2473_v4, %v2558_v11  ;;  %v5998_v17 = vunpack.i.l.bf16 %v5997_v57 }
 0xac0   :  { %v2566_v23 = vsel %vm2556_vm4, %v5999_v39, %v5968_v24  ;;  %v2642_v47 = vrot.slane %v7735_v40, 1  ;;  %v5984_v5 = vunpack.i.h.bf16 %v5982_v29  ;;  %v5983_v56 = vunpack.i.l.bf16 %v5982_v29 }
 0xac1   :  { %v6002_v61 = vpop.permute.xlu1 %6001  ;;  %v2649_v13 = vrot.slane %v7723_v2, 1  ;;  %v7750_v58 = vmax.f32 %v2485_v35, %v2566_v23  ;;  %v2596_v10 = vsel %vm2592_vm2, %v5998_v17, %v7605_v25  ;;  %v2646_v24 = vrot.slane %v7730_v18, 1 }
 0xac2   :  { %v6003_v37 = vunpack.i.l.bf16 %v6002_v61  ;;  %v5987_v4 = vpop.permute.xlu0 %5986  ;;  %v7758_v6 = vsel %vm283_vm0, %v2642_v47, %v2643_v12  ;;  %v7761_v44 = vmax.f32 %v7605_v25, %v2596_v10  ;;  %v2595_v1 = vsel %vm2592_vm2, %v5984_v5, %v7623_v28 }
 0xac3   :  { %v2648_v35 = vrot.slane %v7738_v22, 1  ;;  %v2645_v30 = vrot.slane %v7742_v27, 1  ;;  %v2562_v21 = vsel %vm2556_vm4, %v5983_v56, %v5984_v5  ;;  %v7770_v41 = vmax.f32 %v7623_v28, %v2595_v1 }
 0xac4   :  { %v2565_v54 = vsel %vm2556_vm4, %v6003_v37, %v5999_v39  ;;  %v7774_v15 = vmax.f32 %v2479_v38, %v2562_v21  ;;  %v5989_v60 = vunpack.i.h.bf16 %v5987_v4  ;;  %v2705_v7 = vmax.f32 %v7735_v40, %v7758_v6 }
 0xac5   :  { %v7778_v25 = vmax.f32 %v2484_v51, %v2565_v54  ;;  %v2553_v57 = vpop.permute.xlu1 %2552  ;;  %v2665_v11 = vrot.slane %v7750_v58, 1  ;;  %v6004_v29 = vunpack.i.h.bf16 %v6002_v61  ;;  %v5988_v39 = vunpack.i.l.bf16 %v5987_v4 }
 0xac6   :  { %v5992_v23 = vpop.permute.xlu0 %5991  ;;  %v2661_v28 = vrot.slane %v7761_v44, 1  ;;  %v2653_v50 = vrot.slane %v7774_v15, 1  ;;  %v2563_v38 = vsel %vm2556_vm4, %v5969_v63, %v5989_v60  ;;  %v2564_v43 = vsel %vm2556_vm4, %v5989_v60, %v5998_v17 }
 0xac7   :  { %v2663_v51 = vrot.slane %v7778_v25, 1  ;;  %v7790_v47 = vmax.f32 %v2481_v20, %v2563_v38  ;;  %v2561_v5 = vsel %vm2556_vm4, %v5988_v39, %v5983_v56  ;;  %v5994_v10 = vunpack.i.h.bf16 %v5992_v23 }
 0xac8   :  { %v2655_v61 = vrot.slane %v7770_v41, 1  ;;  %v2610_v37 = vmax.f32 %v2482_v19, %v2564_v43  ;;  %v7798_v4 = vmax.f32 %v2478_v53, %v2561_v5  ;;  %v5993_v63 = vunpack.i.l.bf16 %v5992_v23 }
 0xac9   :  { %v2551_v17 = vpop.permute.xlu1 %2550  ;;  %v2657_v1 = vrot.slane %v7790_v47, 1  ;;  %v2647_v21 = vsel %vm283_vm0, %v2645_v30, %v2646_v24  ;;  %v2650_v56 = vsel %vm283_vm0, %v2648_v35, %v2649_v13  ;;  %v2567_v48 = vsel %vm2556_vm4, %v5994_v10, %v6004_v29 }
 0xaca   :  { %v2569_v0 = vsel %vm2556_vm4, %v2551_v17, %v2553_v57  ;;  %v2555_v20 = vpop.permute.xlu0 %2554  ;;  %v2651_v54 = vrot.slane %v7798_v4, 1  ;;  %v2568_v19 = vsel %vm2556_vm4, %v6004_v29, %v5993_v63  ;;  %v2598_v42 = vsel %vm2592_vm2, %v5993_v63, %v7671_v33 }
 0xacb   :  { %v2664_v53 = vsel %vm283_vm0, %v2657_v1, %v2663_v51  ;;  %v2616_v60 = vmax.f32 %v2488_v31, %v2568_v19  ;;  %v2617_v30 = vmax.f32 %v7671_v33, %v2598_v42  ;;  %v2654_v35 = vsel %vm283_vm0, %v2646_v24, %v2653_v50 }
 0xacc   :  { %v2659_v39 = vrot.slane %v2610_v37, 1  ;;  %v7818_v23 = vmax.f32 %v2490_v55, %v2569_v0  ;;  %v2570_v29 = vsel %vm2556_vm4, %v2553_v57, %v2555_v20  ;;  %v2706_v38 = vmax.f32 %v7742_v27, %v2647_v21 }
 0xacd   :  { %v2714_v43 = vmax.f32 %v7790_v47, %v2664_v53  ;;  %v2658_v5 = vsel %vm283_vm0, %v2651_v54, %v2657_v1  ;;  %v2615_v36 = vmax.f32 %v2487_v62, %v2567_v48  ;;  %v2671_v31 = vrot.slane %v2616_v60, 1 }
 0xace   :  { %v2599_v33 = vsel %vm2592_vm2, %v2555_v20, %v7690_v45  ;;  %v7830_v52 = vmax.f32 %v2491_v9, %v2570_v29  ;;  %v2709_v55 = vmax.f32 %v7730_v18, %v2654_v35  ;;  %v2656_v24 = vsel %vm283_vm0, %v2649_v13, %v2655_v61  ;;  %v2918_v29 = vld [vmem:[%s9812_s12 + $0x10] sm:$0xff] }
 0xacf   :  { %v2673_v27 = vrot.slane %v2617_v30, 1  ;;  %v2620_v57 = vmax.f32 %v7690_v45, %v2599_v33  ;;  %v2707_v47 = vmax.f32 %v7738_v22, %v2650_v56  ;;  %v2710_v32 = vmax.f32 %v7723_v2, %v2656_v24  ;;  %v2728_v33 = vld [vmem:[%s9811_s11 + $0x10] sm:$0xff]  ;;  %v2920_v24 = vld [vmem:[%s9812_s12 + $0x20] sm:$0xff] }
 0xad0   :  { %v2675_v62 = vrot.slane %v7818_v23, 1  ;;  %v2677_v10 = vrot.slane %v7830_v52, 1  ;;  %v5279_v63 = vpack.c.bf16 %v2709_v55, %v2706_v38  ;;  %v2662_v49 = vsel %vm283_vm0, %v2655_v61, %v2661_v28  ;;  %v2727_v38 = vld [vmem:[%s9811_s11 + $0x8] sm:$0xff] }
 0xad1   :  { %v2679_v9 = vrot.slane %v2620_v57, 1  ;;  %v5291_v17 = vpack.c.bf16 %v2710_v32, %v2707_v47  ;;  %v2668_v18 = vsel %vm283_vm0, %v2661_v28, %v2667_v16  ;;  %v2713_v13 = vmax.f32 %v7770_v41, %v2662_v49  ;;  %v2927_v47 = vld [vmem:[%s9812_s12 + $0x58] sm:$0xff] }
 0xad2   :  { %5280 = vmatprep.subr.bf16.mxu1 %v5279_v63  ;;  %v2716_v45 = vmax.f32 %v7761_v44, %v2668_v18  ;;  %v2652_v2 = vsel %vm283_vm0, %v2643_v12, %v2651_v54  ;;  %v2660_v22 = vsel %vm283_vm0, %v2653_v50, %v2659_v39  ;;  %v2666_v61 = vsel %vm283_vm0, %v2659_v39, %v2665_v11  ;;  %v2916_v39 = vld [vmem:[%s9812_s12] sm:$0xff]  ;;  %v2929_v63 = vld [vmem:[%s9812_s12 + $0x68] sm:$0xff]  ;;  %v2931_v49 = vld [vmem:[%s9812_s12 + $0x78] sm:$0xff] }
 0xad3   :  { %v2669_v1 = vrot.slane %v2615_v36, 1  ;;  %5292 = vmatprep.subr.bf16.mxu0 %v5291_v17  ;;  %v2708_v0 = vmax.f32 %v7718_v8, %v2652_v2  ;;  %v2712_v28 = vmax.f32 %v7774_v15, %v2660_v22  ;;  %v2715_v41 = vmax.f32 %v2610_v37, %v2666_v61  ;;  %v2928_v18 = vld [vmem:[%s9812_s12 + $0x60] sm:$0xff]  ;;  %v2935_v2 = vld [vmem:[%s9812_s12 + $0x98] sm:$0xff] }
 0xad4   :  { %5294 = vmatpush3.bf16.msra.mxu0 %v5291_v17  ;;  %v5295_v20 = vpack.c.bf16 %v2716_v45, %v2713_v13  ;;  %v2672_v44 = vsel %vm283_vm0, %v2665_v11, %v2671_v31  ;;  %v2678_v12 = vsel %vm283_vm0, %v2671_v31, %v2677_v10  ;;  %v2674_v50 = vsel %vm283_vm0, %v2667_v16, %v2673_v27  ;;  %v2930_v13 = vld [vmem:[%s9812_s12 + $0x70] sm:$0xff]  ;;  %v2933_v45 = vld [vmem:[%s9812_s12 + $0x88] sm:$0xff] }
 0xad5   :  { %v2711_v21 = vmax.f32 %v7798_v4, %v2658_v5  ;;  %v5281_v8 = vpack.c.bf16 %v2708_v0, %v2705_v7  ;;  %v5283_v15 = vpack.c.bf16 %v2715_v41, %v2712_v28  ;;  %v2721_v37 = vmax.f32 %v2616_v60, %v2678_v12  ;;  %v2921_v5 = vld [vmem:[%s9812_s12 + $0x28] sm:$0xff]  ;;  %v2934_v0 = vld [vmem:[%s9812_s12 + $0x90] sm:$0xff]  ;;  %v2939_v41 = vld [vmem:[%s9812_s12 + $0xb8] sm:$0xff] }
 0xad6   :  { %5296 = vmatprep.subr.bf16.mxu0 %v5295_v20  ;;  %v2718_v56 = vmax.f32 %v7750_v58, %v2672_v44  ;;  %v2680_v54 = vsel %vm283_vm0, %v2673_v27, %v2679_v9  ;;  %v2676_v11 = vsel %vm283_vm0, %v2669_v1, %v2675_v62  ;;  %v2719_v48 = vmax.f32 %v7714_v46, %v2674_v50  ;;  %v2922_v27 = vld [vmem:[%s9812_s12 + $0x30] sm:$0xff]  ;;  %v2937_v28 = vld [vmem:[%s9812_s12 + $0xa8] sm:$0xff]  ;;  %v2936_v12 = vld [vmem:[%s9812_s12 + $0xa0] sm:$0xff] }
 0xad7   :  { %5282 = vmatpush1.bf16.msra.mxu1 %v5281_v8  ;;  %v2722_v19 = vmax.f32 %v2617_v30, %v2680_v54  ;;  %v2670_v40 = vsel %vm283_vm0, %v2663_v51, %v2669_v1  ;;  %v2704_v6 = vsel %vm283_vm0, %v2679_v9, %v2620_v57  ;;  %v5285_v7 = vpack.c.bf16 %v2714_v43, %v2711_v21  ;;  %v2917_v51 = vld [vmem:[%s9812_s12 + $0x8] sm:$0xff]  ;;  %v2919_v30 = vld [vmem:[%s9812_s12 + $0x18] sm:$0xff]  ;;  %v2932_v1 = vld [vmem:[%s9812_s12 + $0x80] sm:$0xff] }
 0xad8   :  { %5284 = vmatprep.subr.bf16.mxu1 %v5283_v15  ;;  %5298 = vmatpush3.bf16.msra.mxu0 %v5295_v20  ;;  %v5287_v16 = vpack.c.bf16 %v2721_v37, %v2718_v56  ;;  %v2720_v58 = vmax.f32 %v2615_v36, %v2676_v11  ;;  %v2717_v42 = vmax.f32 %v7778_v25, %v2670_v40  ;;  %v2923_v36 = vld [vmem:[%s9812_s12 + $0x38] sm:$0xff]  ;;  %v2938_v50 = vld [vmem:[%s9812_s12 + $0xb0] sm:$0xff]  ;;  %v2941_v21 = vld [vmem:[%s9812_s12 + $0xc8] sm:$0xff] }
 0xad9   :  { %v5299_v4 = vpack.c.bf16 %v2722_v19, %v2719_v48  ;;  %v2725_v53 = vmax.f32 %v2620_v57, %v2704_v6  ;;  %v2703_v46 = vsel %vm283_vm0, %v2677_v10, %v7830_v52  ;;  %v2702_v35 = vsel %vm283_vm0, %v2675_v62, %v7818_v23  ;;  %v2925_v57 = vld [vmem:[%s9812_s12 + $0x48] sm:$0xff]  ;;  %v2924_v62 = vld [vmem:[%s9812_s12 + $0x40] sm:$0xff]  ;;  %v2926_v10 = vld [vmem:[%s9812_s12 + $0x50] sm:$0xff] }
 0xada   :  { %v5289_v60 = vpack.c.bf16 %v2720_v58, %v2717_v42  ;;  %v2724_v25 = vmax.f32 %v7830_v52, %v2703_v46  ;;  %v5303_v43 = vpack.c.bf16 %v2919_v30, %v2917_v51  ;;  %v2723_v31 = vmax.f32 %v7818_v23, %v2702_v35  ;;  %v2729_v23 = vld [vmem:[%s9811_s11 + $0x18] sm:$0xf]  ;;  %v2940_v56 = vld [vmem:[%s9812_s12 + $0xc0] sm:$0xff]  ;;  %v2942_v54 = vld [vmem:[%s9812_s12 + $0xd0] sm:$0xff]  ;;  %s6083_s11 = smov 60  }
 0xadb   :  { %5286 = vmatpush1.bf16.msra.mxu1 %v5285_v7  ;;  %5300 = vmatprep.subr.bf16.mxu0 %v5299_v4  ;;  %v5305_v52 = vpack.c.bf16 %v2918_v29, %v2916_v39  ;;  %v5307_v55 = vpack.c.bf16 %v2923_v36, %v2921_v5  ;;  %v5309_v32 = vpack.c.bf16 %v2922_v27, %v2920_v24  ;;  %v2943_v8 = vld [vmem:[%s9812_s12 + $0xd8] sm:$0xff]  ;;  %v2945_v11 = vld [vmem:[%s9812_s12 + $0xe8] sm:$0xff]  ;;  %v2944_v40 = vld [vmem:[%s9812_s12 + $0xe0] sm:$0xff]  ;;  %vm3223_vm0 = vcmask 490496  }
 0xadc   :  { %5288 = vmatprep.subr.bf16.mxu1 %v5287_v16  ;;  %5302 = vmatpush3.bf16.msra.mxu0 %v5299_v4  ;;  %v5313_v9 = vpack.c.bf16 %v2926_v10, %v2924_v62  ;;  %v5315_v17 = vpack.c.bf16 %v2931_v49, %v2929_v63  ;;  %v5317_v22 = vpack.c.bf16 %v2930_v13, %v2928_v18  ;;  %v2947_v48 = vld [vmem:[%s9812_s12 + $0xf8] sm:$0xff]  ;;  %v2946_v6 = vld [vmem:[%s9812_s12 + $0xf0] sm:$0xff]  ;;  %v2949_v7 = vld [vmem:[%s9812_s12 + $0x108] sm:$0xff] }
 0xadd   :  { %4993 = vmatprep.subr.mxu0 %v2725_v53  ;;  %v5319_v61 = vpack.c.bf16 %v2935_v2, %v2933_v45  ;;  %v5321_v20 = vpack.c.bf16 %v2934_v0, %v2932_v1  ;;  %v5323_v44 = vpack.c.bf16 %v2939_v41, %v2937_v28  ;;  %v5325_v15 = vpack.c.bf16 %v2938_v50, %v2936_v12  ;;  %v2951_v4 = vld [vmem:[%s9812_s12 + $0x118] sm:$0xff]  ;;  %v2950_v46 = vld [vmem:[%s9812_s12 + $0x110] sm:$0xff]  ;;  %v2957_v29 = vld [vmem:[%s9812_s12 + $0x148] sm:$0xff] }
 0xade   :  { %v5327_v37 = vpack.c.bf16 %v2943_v8, %v2941_v21  ;;  %v5329_v19 = vpack.c.bf16 %v2942_v54, %v2940_v56  ;;  %v5331_v16 = vpack.c.bf16 %v2947_v48, %v2945_v11  ;;  %v5333_v58 = vpack.c.bf16 %v2946_v6, %v2944_v40  ;;  %v2955_v51 = vld [vmem:[%s9812_s12 + $0x138] sm:$0xff]  ;;  %v2954_v39 = vld [vmem:[%s9812_s12 + $0x130] sm:$0xff]  ;;  %v2956_v36 = vld [vmem:[%s9812_s12 + $0x140] sm:$0xff] }
 0xadf   :  { %5290 = vmatpush1.bf16.msra.mxu1 %v5289_v60  ;;  %v5335_v42 = vpack.c.bf16 %v2951_v4, %v2949_v7  ;;  %v2953_v60 = vld [vmem:[%s9812_s12 + $0x128] sm:$0xff]  ;;  %v2960_v27 = vld [vmem:[%s9812_s12 + $0x160] sm:$0xff]  ;;  %v2966_v10 = vld [vmem:[%s9812_s12 + $0x190] sm:$0xff] }
 0xae0   :  { %2754 = vmatprep.subr.mxu1 %v2724_v25  ;;  %4994 = vmatpush3.msra.mxu0 %v2725_v53  ;;  %v2948_v53 = vld [vmem:[%s9812_s12 + $0x100] sm:$0xff]  ;;  %v5339_v35 = vpack.c.bf16 %v2955_v51, %v2953_v60  ;;  %v2969_v63 = vld [vmem:[%s9812_s12 + $0x1a8] sm:$0xff]  ;;  %v2971_v49 = vld [vmem:[%s9812_s12 + $0x1b8] sm:$0xff] }
 0xae1   :  { %4996 = vmatmul.mubr.msk.f32.vlgmr.msra.gmra.mrb[58].mxu0 %vm369_vm14, %v2727_v38  ;;  %v5337_v30 = vpack.c.bf16 %v2950_v46, %v2948_v53  ;;  %v2952_v25 = vld [vmem:[%s9812_s12 + $0x120] sm:$0xff]  ;;  %v2970_v13 = vld [vmem:[%s9812_s12 + $0x1b0] sm:$0xff]  ;;  %v2973_v45 = vld [vmem:[%s9812_s12 + $0x1c8] sm:$0xff] }
 0xae2   :  { %4998 = vmatprep.mubr.msk.f32.mxu0 %vm369_vm14, %v2728_v33  ;;  %v2964_v62 = vld [vmem:[%s9812_s12 + $0x180] sm:$0xff]  ;;  %v2975_v2 = vld [vmem:[%s9812_s12 + $0x1d8] sm:$0xff]  ;;  %v2974_v0 = vld [vmem:[%s9812_s12 + $0x1d0] sm:$0xff] }
 0xae3   :  { %2755 = vmatpush1.msra.mxu1 %v2723_v31  ;;  %v2958_v31 = vld [vmem:[%s9812_s12 + $0x150] sm:$0xff]  ;;  %v2968_v18 = vld [vmem:[%s9812_s12 + $0x1a0] sm:$0xff]  ;;  %v2977_v28 = vld [vmem:[%s9812_s12 + $0x1e8] sm:$0xff] }
 0xae4   :  { %4561 = vmatmul.mubr.msk.f32.vlgmr.msra.gmra.mrb[22].mxu1 %vm369_vm14, %v7700_v3  ;;  %5304 = vmatprep.subr.bf16.mxu1 %v5303_v43  ;;  %v5311_v3 = vpack.c.bf16 %v2927_v47, %v2925_v57  ;;  %v5341_v43 = vpack.c.bf16 %v2954_v39, %v2952_v25  ;;  %v2965_v57 = vld [vmem:[%s9812_s12 + $0x188] sm:$0xff]  ;;  %v2967_v47 = vld [vmem:[%s9812_s12 + $0x198] sm:$0xff]  ;;  %v2972_v1 = vld [vmem:[%s9812_s12 + $0x1c0] sm:$0xff] }
 0xae5   :  { %2812 = vmatprep.mubr.f32.mxu1 %v6074_v59  ;;  %4999 = vmatmul.mubr.msk.f32.gmra.mrb[60].mxu0 %vm369_vm14, %v2729_v23  ;;  %v2979_v41 = vld [vmem:[%s9812_s12 + $0x1f8] sm:$0xff]  ;;  %v2976_v12 = vld [vmem:[%s9812_s12 + $0x1e0] sm:$0xff]  ;;  %v2978_v50 = vld [vmem:[%s9812_s12 + $0x1f0] sm:$0xff] }
 0xae6   :  { %5306 = vmatpush1.bf16.msra.mxu1 %v5305_v52  ;;  %v2963_v52 = vld [vmem:[%s9812_s12 + $0x178] sm:$0xff]  ;;  %v5365_v21 = vpack.c.bf16 %v2978_v50, %v2976_v12  ;;  %v2981_v8 = vld [vmem:[%s9812_s12 + $0x208] sm:$0xff]  ;;  %v2980_v56 = vld [vmem:[%s9812_s12 + $0x200] sm:$0xff] }
 0xae7   :  { %5308 = vmatprep.subr.bf16.mxu1 %v5307_v55  ;;  %v5345_v55 = vpack.c.bf16 %v2958_v31, %v2956_v36  ;;  %v2982_v54 = vld [vmem:[%s9812_s12 + $0x210] sm:$0xff]  ;;  %v2985_v7 = vld [vmem:[%s9812_s12 + $0x228] sm:$0xff]  ;;  %v2984_v53 = vld [vmem:[%s9812_s12 + $0x220] sm:$0xff] }
 0xae8   :  { %4562 = vmatmul.mubr.msk.f32.gmra.mrb[24].mxu1 %vm369_vm14, %v2727_v38  ;;  %v2959_v38 = vld [vmem:[%s9812_s12 + $0x158] sm:$0xff]  ;;  %v3508_v39 = vld [vmem:[%s9813_s13 + $0x600] sm:$0xff]  ;;  %v3326_v50 = vld [vmem:[%s9813_s13 + $0x50] sm:$0xff] }
 0xae9   :  { %2818 = vmatprep.mubr.f32.mxu1 %v6074_v59  ;;  %v5343_v5 = vpack.c.bf16 %v2959_v38, %v2957_v29  ;;  %v3511_v25 = vld [vmem:[%s9813_s13 + $0x618] sm:$0xff]  ;;  %v3510_v38 = vld [vmem:[%s9813_s13 + $0x610] sm:$0xff]  ;;  %v3512_v31 = vld [vmem:[%s9813_s13 + $0x620] sm:$0xff] }
 0xaea   :  { %5310 = vmatpush1.bf16.msra.mxu1 %v5309_v32  ;;  %v3324_v12 = vld [vmem:[%s9813_s13 + $0x40] sm:$0xff] }
 0xaeb   :  { %5312 = vmatprep.subr.bf16.mxu1 %v5311_v3  ;;  %v5351_v3 = vpack.c.bf16 %v2967_v47, %v2965_v57  ;;  %v3316_v47 = vld [vmem:[%s9813_s13] sm:$0xff] }
 0xaec   :  { %4563 = vmatmul.mubr.msk.f32.gmra.mrb[26].mxu1 %vm369_vm14, %v2728_v33  ;;  %v2961_v33 = vld [vmem:[%s9812_s12 + $0x168] sm:$0xff] }
 0xaed   :  { %2824 = vmatprep.mubr.f32.mxu1 %v6074_v59  ;;  %v5347_v24 = vpack.c.bf16 %v2963_v52, %v2961_v33  ;;  %v3514_v33 = vld [vmem:[%s9813_s13 + $0x630] sm:$0xff]  ;;  %v3317_v52 = vld [vmem:[%s9813_s13 + $0x8] sm:$0xff] }
 0xaee   :  { %5314 = vmatpush1.bf16.msra.mxu1 %v5313_v9  ;;  %v5353_v9 = vpack.c.bf16 %v2966_v10, %v2964_v62 }
 0xaef   :  { %5316 = vmatprep.subr.bf16.mxu1 %v5315_v17  ;;  %v5355_v17 = vpack.c.bf16 %v2971_v49, %v2969_v63  ;;  %v3518_v63 = vld [vmem:[%s9813_s13 + $0x650] sm:$0xff]  ;;  %v3321_v49 = vld [vmem:[%s9813_s13 + $0x28] sm:$0xff] }
 0xaf0   :  { %4564 = vmatmul.mubr.msk.f32.gmra.mrb[28].mxu1 %vm369_vm14, %v2729_v23  ;;  %v2962_v23 = vld [vmem:[%s9812_s12 + $0x170] sm:$0xff]  ;;  %vm3233_vm14 = vcmask 588800  }
 0xaf1   :  { %v5349_v32 = vpack.c.bf16 %v2962_v23, %v2960_v27  ;;  %v3519_v27 = vld [vmem:[%s9813_s13 + $0x658] sm:$0xff]  ;;  %v5569_v23 = vpack.c.bf16 %v3514_v33, %v3512_v31  ;;  %v3532_v31 = vld [vmem:[%s9813_s13 + $0x6c0] sm:$0xff] }
 0xaf2   :  { %5318 = vmatpush1.bf16.msra.mxu1 %v5317_v22  ;;  %v5357_v22 = vpack.c.bf16 %v2970_v13, %v2968_v18  ;;  %v3521_v18 = vld [vmem:[%s9813_s13 + $0x668] sm:$0xff]  ;;  %v3523_v13 = vld [vmem:[%s9813_s13 + $0x678] sm:$0xff] }
 0xaf3   :  { %5320 = vmatprep.subr.bf16.mxu1 %v5319_v61  ;;  %v5359_v61 = vpack.c.bf16 %v2975_v2, %v2973_v45  ;;  %v3320_v45 = vld [vmem:[%s9813_s13 + $0x20] sm:$0xff]  ;;  %v3322_v2 = vld [vmem:[%s9813_s13 + $0x30] sm:$0xff] }
 0xaf6   :  { %5322 = vmatpush1.bf16.msra.mxu1 %v5321_v20  ;;  %v5361_v20 = vpack.c.bf16 %v2974_v0, %v2972_v1  ;;  %v3520_v1 = vld [vmem:[%s9813_s13 + $0x660] sm:$0xff]  ;;  %v3325_v0 = vld [vmem:[%s9813_s13 + $0x48] sm:$0xff] }
 0xaf7   :  { %5324 = vmatprep.subr.bf16.mxu1 %v5323_v44  ;;  %v5363_v44 = vpack.c.bf16 %v2979_v41, %v2977_v28  ;;  %v3327_v28 = vld [vmem:[%s9813_s13 + $0x58] sm:$0xff]  ;;  %v5575_v41 = vpack.c.bf16 %v3523_v13, %v3521_v18  ;;  %v3538_v18 = vld [vmem:[%s9813_s13 + $0x6f0] sm:$0xff]  ;;  %v3345_v13 = vld [vmem:[%s9813_s13 + $0xe8] sm:$0xff] }
 0xafa   :  { %5326 = vmatpush1.bf16.msra.mxu1 %v5325_v15  ;;  %v2983_v15 = vld [vmem:[%s9812_s12 + $0x218] sm:$0xff] }
 0xafb   :  { %5328 = vmatprep.subr.bf16.mxu1 %v5327_v37  ;;  %v5367_v37 = vpack.c.bf16 %v2983_v15, %v2981_v8  ;;  %v3527_v8 = vld [vmem:[%s9813_s13 + $0x698] sm:$0xff]  ;;  %v3329_v15 = vld [vmem:[%s9813_s13 + $0x68] sm:$0xff] }
 0xafe   :  { %5330 = vmatpush1.bf16.msra.mxu1 %v5329_v19 }
 0xaff   :  { %5332 = vmatprep.subr.bf16.mxu1 %v5331_v16  ;;  %v5369_v16 = vpack.c.bf16 %v2982_v54, %v2980_v56  ;;  %v3331_v56 = vld [vmem:[%s9813_s13 + $0x78] sm:$0xff] }
 0xb02   :  { %5334 = vmatpush1.bf16.msra.mxu1 %v5333_v58 }
 0xb03   :  { %5336 = vmatprep.subr.bf16.mxu1 %v5335_v42 }
 0xb06   :  { %5338 = vmatpush1.bf16.msra.mxu1 %v5337_v30 }
 0xb07   :  { %5340 = vmatprep.subr.bf16.mxu1 %v5339_v35  ;;  %v3509_v35 = vld [vmem:[%s9813_s13 + $0x608] sm:$0xff] }
 0xb08   :  { %v5563_v29 = vpack.c.bf16 %v3511_v25, %v3509_v35  ;;  %v3334_v35 = vld [vmem:[%s9813_s13 + $0x90] sm:$0xff] }
 0xb0a   :  { %5342 = vmatpush1.bf16.msra.mxu1 %v5341_v43  ;;  %v3515_v43 = vld [vmem:[%s9813_s13 + $0x638] sm:$0xff]  ;;  %5564 = vmatprep.subr.bf16.mxu0 %v5563_v29  ;;  %v3337_v29 = vld [vmem:[%s9813_s13 + $0xa8] sm:$0xff] }
 0xb0b   :  { %5344 = vmatprep.subr.bf16.mxu1 %v5343_v5  ;;  %v5565_v5 = vpack.c.bf16 %v3510_v38, %v3508_v39  ;;  %v3530_v39 = vld [vmem:[%s9813_s13 + $0x6b0] sm:$0xff]  ;;  %v3339_v38 = vld [vmem:[%s9813_s13 + $0xb8] sm:$0xff] }
 0xb0c   :  { %v5391_v33 = vpack.c.bf16 %v3339_v38, %v3337_v29  ;;  %v3359_v29 = vld [vmem:[%s9813_s13 + $0x158] sm:$0xff]  ;;  %v3553_v38 = vld [vmem:[%s9813_s13 + $0x768] sm:$0xff] }
 0xb0d   :  { %5566 = vmatpush1.bf16.msra.mxu0 %v5565_v5 }
 0xb0e   :  { %5346 = vmatpush1.bf16.msra.mxu1 %v5345_v55  ;;  %v3319_v55 = vld [vmem:[%s9813_s13 + $0x18] sm:$0xff] }
 0xb0f   :  { %5348 = vmatprep.subr.bf16.mxu1 %v5347_v24  ;;  %v3517_v24 = vld [vmem:[%s9813_s13 + $0x648] sm:$0xff]  ;;  %v5371_v57 = vpack.c.bf16 %v3319_v55, %v3317_v52  ;;  %v3336_v52 = vld [vmem:[%s9813_s13 + $0xa0] sm:$0xff]  ;;  %v3338_v55 = vld [vmem:[%s9813_s13 + $0xb0] sm:$0xff] }
 0xb10   :  { %v5571_v62 = vpack.c.bf16 %v3519_v27, %v3517_v24  ;;  %v3534_v27 = vld [vmem:[%s9813_s13 + $0x6d0] sm:$0xff] }
 0xb12   :  { %5350 = vmatpush1.bf16.msra.mxu1 %v5349_v32  ;;  %v3318_v32 = vld [vmem:[%s9813_s13 + $0x10] sm:$0xff] }
 0xb13   :  { %5352 = vmatprep.subr.bf16.mxu1 %v5351_v3  ;;  %v3516_v3 = vld [vmem:[%s9813_s13 + $0x640] sm:$0xff]  ;;  %v5373_v10 = vpack.c.bf16 %v3318_v32, %v3316_v47  ;;  %v3537_v47 = vld [vmem:[%s9813_s13 + $0x6e8] sm:$0xff]  ;;  %v3539_v32 = vld [vmem:[%s9813_s13 + $0x6f8] sm:$0xff] }
 0xb16   :  { %5354 = vmatpush1.bf16.msra.mxu1 %v5353_v9  ;;  %v3323_v9 = vld [vmem:[%s9813_s13 + $0x38] sm:$0xff] }
 0xb17   :  { %5356 = vmatprep.subr.bf16.mxu1 %v5355_v17  ;;  %v5375_v17 = vpack.c.bf16 %v3323_v9, %v3321_v49  ;;  %v3340_v49 = vld [vmem:[%s9813_s13 + $0xc0] sm:$0xff]  ;;  %v3342_v9 = vld [vmem:[%s9813_s13 + $0xd0] sm:$0xff] }
 0xb1a   :  { %5358 = vmatpush1.bf16.msra.mxu1 %v5357_v22  ;;  %v5573_v22 = vpack.c.bf16 %v3518_v63, %v3516_v3  ;;  %v5393_v3 = vpack.c.bf16 %v3338_v55, %v3336_v52  ;;  %v3358_v52 = vld [vmem:[%s9813_s13 + $0x150] sm:$0xff] }
 0xb1b   :  { %5360 = vmatprep.subr.bf16.mxu1 %v5359_v61  ;;  %v5377_v61 = vpack.c.bf16 %v3322_v2, %v3320_v45  ;;  %v3347_v45 = vld [vmem:[%s9813_s13 + $0xf8] sm:$0xff]  ;;  %v3541_v2 = vld [vmem:[%s9813_s13 + $0x708] sm:$0xff] }
 0xb1e   :  { %5362 = vmatpush1.bf16.msra.mxu1 %v5361_v20  ;;  %v3522_v20 = vld [vmem:[%s9813_s13 + $0x670] sm:$0xff] }
 0xb1f   :  { %5364 = vmatprep.subr.bf16.mxu1 %v5363_v44  ;;  %v5379_v44 = vpack.c.bf16 %v3327_v28, %v3325_v0  ;;  %v5577_v54 = vpack.c.bf16 %v3522_v20, %v3520_v1  ;;  %v3540_v0 = vld [vmem:[%s9813_s13 + $0x700] sm:$0xff]  ;;  %v5399_v28 = vpack.c.bf16 %v3347_v45, %v3345_v13  ;;  %v3346_v20 = vld [vmem:[%s9813_s13 + $0xf0] sm:$0xff]  ;;  %v3367_v13 = vld [vmem:[%s9813_s13 + $0x198] sm:$0xff] }
 0xb20   :  { %v3561_v45 = vld [vmem:[%s9813_s13 + $0x7a8] sm:$0xff] }
 0xb22   :  { %5366 = vmatpush1.bf16.msra.mxu1 %v5365_v21  ;;  %v3525_v21 = vld [vmem:[%s9813_s13 + $0x688] sm:$0xff] }
 0xb23   :  { %5368 = vmatprep.subr.bf16.mxu1 %v5367_v37  ;;  %v5381_v37 = vpack.c.bf16 %v3326_v50, %v3324_v12  ;;  %v3542_v12 = vld [vmem:[%s9813_s13 + $0x710] sm:$0xff]  ;;  %v3349_v50 = vld [vmem:[%s9813_s13 + $0x108] sm:$0xff] }
 0xbb4   :  { %v4997_v11 = vpop.f32.mrb[58].mxu0 }
 0xbb5   :  { %v2897_v48 = vpop.f32.mrb[59].mxu0 }
 0xbb7   :  { %v2808_v19 = vpop.f32.mrb[22].mxu1 }
 0xbb8   :  { %v2810_v40 = vpop.f32.mrb[23].mxu1  ;;  %v5000_v6 = vpop.f32.mrb[60].mxu0 }
 0xbb9   :  { %3062 = vmatprep.mubr.f32.mxu1 %v2810_v40  ;;  %v2907_v4 = vpop.f32.mrb[61].mxu0  ;;  %v5579_v40 = vpack.c.bf16 %v3527_v8, %v3525_v21  ;;  %v3351_v21 = vld [vmem:[%s9813_s13 + $0x118] sm:$0xff]  ;;  %v3545_v8 = vld [vmem:[%s9813_s13 + $0x728] sm:$0xff] }
 0xbba   :  { %3063 = vmatmul.mubr.f32.vlgmr.msra.gmra.mrb[30].mxu1 %v2808_v19  ;;  %v3328_v19 = vld [vmem:[%s9813_s13 + $0x60] sm:$0xff] }
 0xbbb   :  { %v2814_v58 = vpop.f32.mrb[24].mxu1  ;;  %5370 = vmatpush1.bf16.msra.mxu1 %v5369_v16  ;;  %v3330_v16 = vld [vmem:[%s9813_s13 + $0x70] sm:$0xff] }
 0xbbc   :  { %v2816_v42 = vpop.f32.mrb[25].mxu1  ;;  %3091 = vmatprep.subr.mxu1 %v2985_v7  ;;  %v3333_v7 = vld [vmem:[%s9813_s13 + $0x88] sm:$0xff] }
 0xbbd   :  { %3068 = vmatprep.mubr.f32.mxu1 %v2816_v42  ;;  %v3531_v42 = vld [vmem:[%s9813_s13 + $0x6b8] sm:$0xff] }
 0xbbe   :  { %3069 = vmatmul.mubr.f32.gmra.mrb[32].mxu1 %v2814_v58  ;;  %v3529_v58 = vld [vmem:[%s9813_s13 + $0x6a8] sm:$0xff] }
 0xbbf   :  { %v2820_v46 = vpop.f32.mrb[26].mxu1  ;;  %3092 = vmatpush1.msra.mxu1 %v2984_v53  ;;  %v5385_v53 = vpack.c.bf16 %v3330_v16, %v3328_v19  ;;  %v5583_v25 = vpack.c.bf16 %v3531_v42, %v3529_v58  ;;  %v3350_v19 = vld [vmem:[%s9813_s13 + $0x110] sm:$0xff]  ;;  %v3551_v58 = vld [vmem:[%s9813_s13 + $0x758] sm:$0xff] }
 0xbc0   :  { %v2822_v60 = vpop.f32.mrb[27].mxu1  ;;  %5372 = vmatprep.subr.bf16.mxu1 %v5371_v57  ;;  %v3343_v57 = vld [vmem:[%s9813_s13 + $0xd8] sm:$0xff] }
 0xbc1   :  { %3074 = vmatprep.mubr.f32.mxu1 %v2822_v60  ;;  %v3528_v60 = vld [vmem:[%s9813_s13 + $0x6a0] sm:$0xff] }
 0xbc2   :  { %3075 = vmatmul.mubr.f32.gmra.mrb[34].mxu1 %v2820_v46 }
 0xbc3   :  { %v2826_v51 = vpop.f32.mrb[28].mxu1 }
 0xbc4   :  { %v2828_v30 = vpop.f32.mrb[29].mxu1 }
 0xbc5   :  { %3080 = vmatprep.mubr.f32.mxu1 %v2828_v30  ;;  %v3332_v30 = vld [vmem:[%s9813_s13 + $0x80] sm:$0xff] }
 0xbc6   :  { %3081 = vmatmul.mubr.f32.gmra.mrb[36].mxu1 %v2826_v51  ;;  %v5389_v5 = vpack.c.bf16 %v3334_v35, %v3332_v30  ;;  %v3354_v30 = vld [vmem:[%s9813_s13 + $0x130] sm:$0xff] }
 0xbc7   :  { %3151 = vmatprep.mubr.f32.mxu1 %v6074_v59 }
 0xbca   :  { %4569 = vmatmul.mubr.msk.f32.vlgmr.msra.gmra.mrb[30].mxu1 %vm1669_vm9, %v2897_v48  ;;  %v5383_v48 = vpack.c.bf16 %v3331_v56, %v3329_v15  ;;  %v3547_v15 = vld [vmem:[%s9813_s13 + $0x738] sm:$0xff]  ;;  %v5597_v56 = vpack.c.bf16 %v3542_v12, %v3540_v0  ;;  %v3364_v0 = vld [vmem:[%s9813_s13 + $0x180] sm:$0xff]  ;;  %v3565_v12 = vld [vmem:[%s9813_s13 + $0x7c8] sm:$0xff] }
 0xbcb   :  { %3157 = vmatprep.mubr.f32.mxu1 %v6074_v59  ;;  %5374 = vmatpush1.bf16.msra.mxu1 %v5373_v10  ;;  %v3536_v10 = vld [vmem:[%s9813_s13 + $0x6e0] sm:$0xff]  ;;  %v5599_v16 = vpack.c.bf16 %v3547_v15, %v3545_v8 }
 0xbcc   :  { %5376 = vmatprep.subr.bf16.mxu1 %v5375_v17  ;;  %v5591_v17 = vpack.c.bf16 %v3539_v32, %v3537_v47  ;;  %v5593_v1 = vpack.c.bf16 %v3538_v18, %v3536_v10  ;;  %v3559_v47 = vld [vmem:[%s9813_s13 + $0x798] sm:$0xff]  ;;  %v3365_v18 = vld [vmem:[%s9813_s13 + $0x188] sm:$0xff] }
 0xbce   :  { %4570 = vmatmul.mubr.msk.f32.gmra.mrb[32].mxu1 %vm1669_vm9, %v4997_v11  ;;  %v3524_v11 = vld [vmem:[%s9813_s13 + $0x680] sm:$0xff] }
 0xbcf   :  { %3163 = vmatprep.mubr.f32.mxu1 %v6074_v59  ;;  %5378 = vmatpush1.bf16.msra.mxu1 %v5377_v61  ;;  %v5397_v61 = vpack.c.bf16 %v3342_v9, %v3340_v49  ;;  %v3362_v49 = vld [vmem:[%s9813_s13 + $0x170] sm:$0xff] }
 0xbd0   :  { %5380 = vmatprep.subr.bf16.mxu1 %v5379_v44 }
 0xbd2   :  { %4571 = vmatmul.mubr.msk.f32.gmra.mrb[34].mxu1 %vm1669_vm9, %v2907_v4  ;;  %v3335_v4 = vld [vmem:[%s9813_s13 + $0x98] sm:$0xff] }
 0xbd3   :  { %3169 = vmatprep.mubr.f32.mxu1 %v6074_v59  ;;  %v3513_v59 = vld [vmem:[%s9813_s13 + $0x628] sm:$0xff]  ;;  %5382 = vmatpush1.bf16.msra.mxu1 %v5381_v37  ;;  %v5387_v51 = vpack.c.bf16 %v3335_v4, %v3333_v7  ;;  %v3355_v7 = vld [vmem:[%s9813_s13 + $0x138] sm:$0xff] }
 0xbd4   :  { %v5567_v36 = vpack.c.bf16 %v3515_v43, %v3513_v59  ;;  %5384 = vmatprep.subr.bf16.mxu1 %v5383_v48  ;;  %v3533_v59 = vld [vmem:[%s9813_s13 + $0x6c8] sm:$0xff]  ;;  %v3535_v43 = vld [vmem:[%s9813_s13 + $0x6d8] sm:$0xff]  ;;  %v3348_v48 = vld [vmem:[%s9813_s13 + $0x100] sm:$0xff] }
 0xbd5   :  { %v5587_v24 = vpack.c.bf16 %v3535_v43, %v3533_v59  ;;  %v3549_v4 = vld [vmem:[%s9813_s13 + $0x748] sm:$0xff]  ;;  %v5405_v42 = vpack.c.bf16 %v3350_v19, %v3348_v48  ;;  %v3555_v59 = vld [vmem:[%s9813_s13 + $0x778] sm:$0xff] }
 0xbd6   :  { %4572 = vmatmul.mubr.msk.f32.gmra.mrb[36].mxu1 %vm1669_vm9, %v5000_v6  ;;  %5568 = vmatprep.subr.bf16.mxu0 %v5567_v36  ;;  %v3526_v6 = vld [vmem:[%s9813_s13 + $0x690] sm:$0xff]  ;;  %v5585_v36 = vpack.c.bf16 %v3530_v39, %v3528_v60  ;;  %v5603_v35 = vpack.c.bf16 %v3551_v58, %v3549_v4  ;;  %v3357_v39 = vld [vmem:[%s9813_s13 + $0x148] sm:$0xff]  ;;  %v5607_v55 = vpack.c.bf16 %v3555_v59, %v3553_v38  ;;  %v3371_v48 = vld [vmem:[%s9813_s13 + $0x1b8] sm:$0xff] }
 0xbd7   :  { %5570 = vmatpush1.bf16.msra.mxu0 %v5569_v23  ;;  %v5581_v46 = vpack.c.bf16 %v3526_v6, %v3524_v11  ;;  %5386 = vmatpush1.bf16.msra.mxu1 %v5385_v53  ;;  %v3341_v23 = vld [vmem:[%s9813_s13 + $0xc8] sm:$0xff]  ;;  %v5403_v11 = vpack.c.bf16 %v3351_v21, %v3349_v50  ;;  %v3567_v50 = vld [vmem:[%s9813_s13 + $0x7d8] sm:$0xff]  ;;  %v3370_v4 = vld [vmem:[%s9813_s13 + $0x1b0] sm:$0xff] }
 0xbd8   :  { %5572 = vmatprep.subr.bf16.mxu0 %v5571_v62  ;;  %5388 = vmatprep.subr.bf16.mxu1 %v5387_v51  ;;  %v5589_v62 = vpack.c.bf16 %v3534_v27, %v3532_v31  ;;  %v5395_v63 = vpack.c.bf16 %v3343_v57, %v3341_v23  ;;  %v3353_v6 = vld [vmem:[%s9813_s13 + $0x128] sm:$0xff]  ;;  %v3352_v51 = vld [vmem:[%s9813_s13 + $0x120] sm:$0xff]  ;;  %v5411_v31 = vpack.c.bf16 %v3359_v29, %v3357_v39  ;;  %v3363_v23 = vld [vmem:[%s9813_s13 + $0x178] sm:$0xff] }
 0xbd9   :  { %v5407_v60 = vpack.c.bf16 %v3355_v7, %v3353_v6  ;;  %v5409_v43 = vpack.c.bf16 %v3354_v30, %v3352_v51  ;;  %v3361_v27 = vld [vmem:[%s9813_s13 + $0x168] sm:$0xff]  ;;  %v5619_v15 = vpack.c.bf16 %v3567_v50, %v3565_v12  ;;  %v3571_v6 = vld [vmem:[%s9813_s13 + $0x7f8] sm:$0xff]  ;;  %v3368_v7 = vld [vmem:[%s9813_s13 + $0x1a0] sm:$0xff] }
 0xbda   :  { %v3557_v57 = vld [vmem:[%s9813_s13 + $0x788] sm:$0xff]  ;;  %v5415_v10 = vpack.c.bf16 %v3363_v23, %v3361_v27  ;;  %v5425_v30 = vpack.c.bf16 %v3370_v4, %v3368_v7  ;;  %v3575_v59 = vld [vmem:[%s9813_s13 + $0x818] sm:$0xff] }
 0xbdb   :  { %5574 = vmatpush1.bf16.msra.mxu0 %v5573_v22  ;;  %5390 = vmatpush1.bf16.msra.mxu1 %v5389_v5  ;;  %v3543_v22 = vld [vmem:[%s9813_s13 + $0x718] sm:$0xff]  ;;  %v5611_v9 = vpack.c.bf16 %v3559_v47, %v3557_v57  ;;  %v3569_v19 = vld [vmem:[%s9813_s13 + $0x7e8] sm:$0xff] }
 0xbdc   :  { %5576 = vmatprep.subr.bf16.mxu0 %v5575_v41  ;;  %5392 = vmatprep.subr.bf16.mxu1 %v5391_v33  ;;  %v3344_v41 = vld [vmem:[%s9813_s13 + $0xe0] sm:$0xff]  ;;  %v5595_v44 = vpack.c.bf16 %v3543_v22, %v3541_v2  ;;  %v3563_v2 = vld [vmem:[%s9813_s13 + $0x7b8] sm:$0xff]  ;;  %v3573_v39 = vld [vmem:[%s9813_s13 + $0x808] sm:$0xff] }
 0xbdd   :  { %v5401_v37 = vpack.c.bf16 %v3346_v20, %v3344_v41  ;;  %v3356_v33 = vld [vmem:[%s9813_s13 + $0x140] sm:$0xff]  ;;  %v5615_v41 = vpack.c.bf16 %v3563_v2, %v3561_v45  ;;  %v3377_v23 = vld [vmem:[%s9813_s13 + $0x1e8] sm:$0xff]  ;;  %v3379_v57 = vld [vmem:[%s9813_s13 + $0x1f8] sm:$0xff] }
 0xbde   :  { %v5413_v32 = vpack.c.bf16 %v3358_v52, %v3356_v33  ;;  %v3560_v20 = vld [vmem:[%s9813_s13 + $0x7a0] sm:$0xff]  ;;  %v5627_v33 = vpack.c.bf16 %v3575_v59, %v3573_v39 }
 0xbdf   :  { %5578 = vmatpush1.bf16.msra.mxu0 %v5577_v54  ;;  %5394 = vmatpush1.bf16.msra.mxu1 %v5393_v3  ;;  %v3544_v54 = vld [vmem:[%s9813_s13 + $0x720] sm:$0xff] }
 0xbe0   :  { %5580 = vmatprep.subr.bf16.mxu0 %v5579_v40  ;;  %5396 = vmatprep.subr.bf16.mxu1 %v5395_v63  ;;  %v3546_v40 = vld [vmem:[%s9813_s13 + $0x730] sm:$0xff]  ;;  %v3360_v63 = vld [vmem:[%s9813_s13 + $0x160] sm:$0xff] }
 0xbe1   :  { %v5601_v53 = vpack.c.bf16 %v3546_v40, %v3544_v54  ;;  %v5417_v22 = vpack.c.bf16 %v3362_v49, %v3360_v63  ;;  %v3378_v63 = vld [vmem:[%s9813_s13 + $0x1f0] sm:$0xff] }
 0xbe3   :  { %5582 = vmatpush1.bf16.msra.mxu0 %v5581_v46  ;;  %5398 = vmatpush1.bf16.msra.mxu1 %v5397_v61  ;;  %v3548_v46 = vld [vmem:[%s9813_s13 + $0x740] sm:$0xff] }
 0xbe4   :  { %5584 = vmatprep.subr.bf16.mxu0 %v5583_v25  ;;  %5400 = vmatprep.subr.bf16.mxu1 %v5399_v28  ;;  %v3550_v25 = vld [vmem:[%s9813_s13 + $0x750] sm:$0xff] }
 0xbe5   :  { %v5605_v5 = vpack.c.bf16 %v3550_v25, %v3548_v46  ;;  %v3366_v28 = vld [vmem:[%s9813_s13 + $0x190] sm:$0xff]  ;;  %v3568_v46 = vld [vmem:[%s9813_s13 + $0x7e0] sm:$0xff]  ;;  %v3375_v25 = vld [vmem:[%s9813_s13 + $0x1d8] sm:$0xff] }
 0xbe6   :  { %v5421_v21 = vpack.c.bf16 %v3366_v28, %v3364_v0  ;;  %v3381_v0 = vld [vmem:[%s9813_s13 + $0x208] sm:$0xff]  ;;  %v3383_v28 = vld [vmem:[%s9813_s13 + $0x218] sm:$0xff] }
 0xbe7   :  { %5586 = vmatpush1.bf16.msra.mxu0 %v5585_v36  ;;  %5402 = vmatpush1.bf16.msra.mxu1 %v5401_v37  ;;  %v3552_v36 = vld [vmem:[%s9813_s13 + $0x760] sm:$0xff] }
 0xbe8   :  { %5588 = vmatprep.subr.bf16.mxu0 %v5587_v24  ;;  %5404 = vmatprep.subr.bf16.mxu1 %v5403_v11  ;;  %v3554_v24 = vld [vmem:[%s9813_s13 + $0x770] sm:$0xff]  ;;  %v3564_v37 = vld [vmem:[%s9813_s13 + $0x7c0] sm:$0xff]  ;;  %v3369_v11 = vld [vmem:[%s9813_s13 + $0x1a8] sm:$0xff] }
 0xbe9   :  { %v5609_v3 = vpack.c.bf16 %v3554_v24, %v3552_v36  ;;  %v5423_v40 = vpack.c.bf16 %v3371_v48, %v3369_v11 }
 0xbeb   :  { %5590 = vmatpush1.bf16.msra.mxu0 %v5589_v62  ;;  %5406 = vmatpush1.bf16.msra.mxu1 %v5405_v42  ;;  %v3556_v62 = vld [vmem:[%s9813_s13 + $0x780] sm:$0xff] }
 0xbec   :  { %5592 = vmatprep.subr.bf16.mxu0 %v5591_v17  ;;  %5408 = vmatprep.subr.bf16.mxu1 %v5407_v60  ;;  %v3558_v17 = vld [vmem:[%s9813_s13 + $0x790] sm:$0xff] }
 0xbed   :  { %v5613_v61 = vpack.c.bf16 %v3558_v17, %v3556_v62  ;;  %v3570_v60 = vld [vmem:[%s9813_s13 + $0x7f0] sm:$0xff]  ;;  %v3376_v62 = vld [vmem:[%s9813_s13 + $0x1e0] sm:$0xff] }
 0xbee   :  { %v5625_v29 = vpack.c.bf16 %v3570_v60, %v3568_v46  ;;  %v3572_v60 = vld [vmem:[%s9813_s13 + $0x800] sm:$0xff] }
 0xbef   :  { %5594 = vmatpush1.bf16.msra.mxu0 %v5593_v1  ;;  %5410 = vmatpush1.bf16.msra.mxu1 %v5409_v43  ;;  %v5419_v1 = vpack.c.bf16 %v3367_v13, %v3365_v18  ;;  %v3372_v43 = vld [vmem:[%s9813_s13 + $0x1c0] sm:$0xff]  ;;  %v5433_v18 = vpack.c.bf16 %v3378_v63, %v3376_v62  ;;  %v3382_v62 = vld [vmem:[%s9813_s13 + $0x210] sm:$0xff] }
 0xbf0   :  { %5596 = vmatprep.subr.bf16.mxu0 %v5595_v44  ;;  %5412 = vmatprep.subr.bf16.mxu1 %v5411_v31  ;;  %v3562_v44 = vld [vmem:[%s9813_s13 + $0x7b0] sm:$0xff] }
 0xbf1   :  { %v5617_v8 = vpack.c.bf16 %v3562_v44, %v3560_v20 }
 0xbf3   :  { %5598 = vmatpush1.bf16.msra.mxu0 %v5597_v56  ;;  %5414 = vmatpush1.bf16.msra.mxu1 %v5413_v32  ;;  %v3566_v56 = vld [vmem:[%s9813_s13 + $0x7d0] sm:$0xff] }
 0xbf4   :  { %5600 = vmatprep.subr.bf16.mxu0 %v5599_v16  ;;  %5416 = vmatprep.subr.bf16.mxu1 %v5415_v10  ;;  %v5621_v54 = vpack.c.bf16 %v3566_v56, %v3564_v37  ;;  %v5431_v10 = vpack.c.bf16 %v3379_v57, %v3377_v23 }
 0xbf7   :  { %5602 = vmatpush1.bf16.msra.mxu0 %v5601_v53  ;;  %5418 = vmatpush1.bf16.msra.mxu1 %v5417_v22  ;;  %v5623_v53 = vpack.c.bf16 %v3571_v6, %v3569_v19 }
 0xbf8   :  { %5604 = vmatprep.subr.bf16.mxu0 %v5603_v35  ;;  %5420 = vmatprep.subr.bf16.mxu1 %v5419_v1  ;;  %v3373_v35 = vld [vmem:[%s9813_s13 + $0x1c8] sm:$0xff] }
 0xbf9   :  { %v5427_v38 = vpack.c.bf16 %v3375_v25, %v3373_v35  ;;  %v3579_v35 = vld [vmem:[%s9813_s13 + $0x838] sm:$0xff] }
 0xbfb   :  { %5606 = vmatpush1.bf16.msra.mxu0 %v5605_v5  ;;  %5422 = vmatpush1.bf16.msra.mxu1 %v5421_v21  ;;  %v3374_v5 = vld [vmem:[%s9813_s13 + $0x1d0] sm:$0xff] }
 0xbfc   :  { %5608 = vmatprep.subr.bf16.mxu0 %v5607_v55  ;;  %5424 = vmatprep.subr.bf16.mxu1 %v5423_v40  ;;  %v5429_v52 = vpack.c.bf16 %v3374_v5, %v3372_v43 }
 0xbff   :  { %5610 = vmatpush1.bf16.msra.mxu0 %v5609_v3  ;;  %5426 = vmatpush1.bf16.msra.mxu1 %v5425_v30  ;;  %v3577_v30 = vld [vmem:[%s9813_s13 + $0x828] sm:$0xff] }
 0xc00   :  { %5612 = vmatprep.subr.bf16.mxu0 %v5611_v9  ;;  %5428 = vmatprep.subr.bf16.mxu1 %v5427_v38 }
 0xc03   :  { %5614 = vmatpush1.bf16.msra.mxu0 %v5613_v61  ;;  %5430 = vmatpush1.bf16.msra.mxu1 %v5429_v52  ;;  %v3578_v52 = vld [vmem:[%s9813_s13 + $0x830] sm:$0xff] }
 0xc04   :  { %5616 = vmatprep.subr.bf16.mxu0 %v5615_v41  ;;  %5432 = vmatprep.subr.bf16.mxu1 %v5431_v10  ;;  %v5435_v41 = vpack.c.bf16 %v3383_v28, %v3381_v0  ;;  %v3384_v0 = vld [vmem:[%s9813_s13 + $0x220] sm:$0xff]  ;;  %v3386_v28 = vld [vmem:[%s9813_s13 + $0x230] sm:$0xff] }
 0xc07   :  { %5618 = vmatpush1.bf16.msra.mxu0 %v5617_v8  ;;  %5434 = vmatpush1.bf16.msra.mxu1 %v5433_v18  ;;  %v3387_v18 = vld [vmem:[%s9813_s13 + $0x238] sm:$0xff] }
 0xc08   :  { %5620 = vmatprep.subr.bf16.mxu0 %v5619_v15  ;;  %5436 = vmatprep.subr.bf16.mxu1 %v5435_v41  ;;  %v3584_v41 = vld [vmem:[%s9813_s13 + $0x860] sm:$0xff] }
 0xc0b   :  { %5622 = vmatpush1.bf16.msra.mxu0 %v5621_v54 }
 0xc0c   :  { %5624 = vmatprep.subr.bf16.mxu0 %v5623_v53 }
 0xc0f   :  { %5626 = vmatpush1.bf16.msra.mxu0 %v5625_v29 }
 0xc10   :  { %5628 = vmatprep.subr.bf16.mxu0 %v5627_v33  ;;  %v3576_v33 = vld [vmem:[%s9813_s13 + $0x820] sm:$0xff] }
 0xc9d   :  { %v8463_v16 = vpop.f32.mrb[30].mxu1 }
 0xc9e   :  { %v3188_v58 = vrot.slane %v8463_v16, 4  ;;  %v8475_v42 = vpop.f32.mrb[31].mxu1  ;;  %v3178_v37 = vrot.slane %v8463_v16, 2  ;;  %v3197_v11 = vrot.slane %v8463_v16, 6 }
 0xc9f   :  { %v3189_v51 = vrot.slane %v8475_v42, 4  ;;  %v3179_v54 = vrot.slane %v8475_v42, 2  ;;  %v3198_v48 = vrot.slane %v8475_v42, 6 }
 0xca1   :  { %v8502_v36 = vpop.f32.mrb[32].mxu1  ;;  %v6025_v31 = vpack.i.bf16 %v3189_v51, %v3188_v58  ;;  %v3574_v51 = vld [vmem:[%s9813_s13 + $0x810] sm:$0xff] }
 0xca2   :  { %v3217_v55 = vrot.slane %v8502_v36, 2  ;;  %v3227_v24 = vrot.slane %v8502_v36, 4  ;;  %v8506_v27 = vpop.f32.mrb[33].mxu1  ;;  %v3237_v44 = vrot.slane %v8502_v36, 6  ;;  %v5629_v59 = vpack.c.bf16 %v3574_v51, %v3572_v60  ;;  %v3590_v51 = vld [vmem:[%s9813_s13 + $0x890] sm:$0xff] }
 0xca3   :  { %v3218_v47 = vrot.slane %v8506_v27, 2  ;;  %v3228_v32 = vrot.slane %v8506_v27, 4  ;;  %v6035_v3 = vpack.i.bf16 %v8506_v27, %v8502_v36  ;;  %v3238_v8 = vrot.slane %v8506_v27, 6  ;;  %v3583_v27 = vld [vmem:[%s9813_s13 + $0x858] sm:$0xff] }
 0xca5   :  { %v3165_v49 = vpop.f32.mrb[34].mxu1  ;;  %v6005_v9 = vpack.i.bf16 %v3228_v32, %v3227_v24  ;;  %v6010_v17 = vpack.i.bf16 %v3218_v47, %v3217_v55  ;;  %v3581_v24 = vld [vmem:[%s9813_s13 + $0x848] sm:$0xff]  ;;  %v5633_v32 = vpack.c.bf16 %v3578_v52, %v3576_v33 }
 0xca6   :  { %v3265_v13 = vrot.slane %v3165_v49, 4  ;;  %v3276_v45 = vrot.slane %v3165_v49, 6  ;;  %v3167_v2 = vpop.f32.mrb[35].mxu1  ;;  %v3255_v15 = vrot.slane %v3165_v49, 2  ;;  %v5635_v63 = vpack.c.bf16 %v3583_v27, %v3581_v24  ;;  %v3392_v24 = vld [vmem:[%s9813_s13 + $0x260] sm:$0xff]  ;;  %v3394_v27 = vld [vmem:[%s9813_s13 + $0x270] sm:$0xff] }
 0xca7   :  { %v3266_v22 = vrot.slane %v3167_v2, 4  ;;  %v3277_v61 = vrot.slane %v3167_v2, 6  ;;  %6006 = vrot.lane.b32.xlu0 %v6005_v9, %s6082_s6  ;;  %6011 = vrot.lane.b32.xlu1 %v6010_v17, %s6083_s11  ;;  %v6015_v1 = vpack.i.bf16 %v3167_v2, %v3165_v49  ;;  %v3256_v56 = vrot.slane %v3167_v2, 2  ;;  %v3580_v49 = vld [vmem:[%s9813_s13 + $0x840] sm:$0xff]  ;;  %v3582_v9 = vld [vmem:[%s9813_s13 + $0x850] sm:$0xff] }
 0xca8   :  { %v3385_v17 = vld [vmem:[%s9813_s13 + $0x228] sm:$0xff] }
 0xca9   :  { %v3171_v20 = vpop.f32.mrb[36].mxu1  ;;  %v6020_v12 = vpack.i.bf16 %v3266_v22, %v3265_v13  ;;  %v6030_v50 = vpack.i.bf16 %v3277_v61, %v3276_v45  ;;  %v3585_v13 = vld [vmem:[%s9813_s13 + $0x868] sm:$0xff]  ;;  %v3587_v45 = vld [vmem:[%s9813_s13 + $0x878] sm:$0xff] }
 0xcaa   :  { %v3173_v21 = vpop.f32.mrb[37].mxu1  ;;  %v3295_v19 = vrot.slane %v3171_v20, 2 }
 0xcab   :  { %3239 = vrot.lane.b32.xlu0 %v3237_v44, %s6084_s4  ;;  %6016 = vrot.lane.b32.xlu1 %v6015_v1, %s6079_s30  ;;  %s6089_s30 = smov 36   ;;  %v3296_v40 = vrot.slane %v3173_v21, 2  ;;  %v5637_v1 = vpack.c.bf16 %v3582_v9, %v3580_v49  ;;  %v3597_v49 = vld [vmem:[%s9813_s13 + $0x8c8] sm:$0xff]  ;;  %v3599_v9 = vld [vmem:[%s9813_s13 + $0x8d8] sm:$0xff] }
 0xcaf   :  { %3241 = vrot.lane.b32.xlu0 %v3238_v8, %s6084_s4  ;;  %3257 = vrot.lane.b32.xlu1 %v3255_v15, %s6085_s21  ;;  %v3389_v8 = vld [vmem:[%s9813_s13 + $0x248] sm:$0xff]  ;;  %v3391_v15 = vld [vmem:[%s9813_s13 + $0x258] sm:$0xff] }
 0xcb3   :  { %3180 = vrot.lane.b32.xlu0 %v3178_v37, %s6086_s5  ;;  %3259 = vrot.lane.b32.xlu1 %v3256_v56, %s6085_s21  ;;  %v3591_v37 = vld [vmem:[%s9813_s13 + $0x898] sm:$0xff] }
 0xcb7   :  { %6021 = vrot.lane.b32.xlu0 %v6020_v12, %s6087_s27  ;;  %6026 = vrot.lane.b32.xlu1 %v6025_v31, %s6088_s24  ;;  %v5631_v31 = vpack.c.bf16 %v3579_v35, %v3577_v30  ;;  %v5439_v12 = vpack.c.bf16 %v3387_v18, %v3385_v17  ;;  %v3393_v30 = vld [vmem:[%s9813_s13 + $0x268] sm:$0xff]  ;;  %v3395_v35 = vld [vmem:[%s9813_s13 + $0x278] sm:$0xff] }
 0xcbb   :  { %3182 = vrot.lane.b32.xlu0 %v3179_v54, %s6086_s5  ;;  %3199 = vrot.lane.b32.xlu1 %v3197_v11, %s6089_s30  ;;  %v5441_v11 = vpack.c.bf16 %v3386_v28, %v3384_v0 }
 0xcbf   :  { %6031 = vrot.lane.b32.xlu0 %v6030_v50, %s6090_s25  ;;  %3287 = vrot.lane.b32.xlu1 %v3171_v20, %s6091_s10  ;;  %v5639_v50 = vpack.c.bf16 %v3587_v45, %v3585_v13  ;;  %v5449_v13 = vpack.c.bf16 %v3394_v27, %v3392_v24  ;;  %v3406_v24 = vld [vmem:[%s9813_s13 + $0x2d0] sm:$0xff] }
 0xcc3   :  { %6036 = vrot.lane.b32.xlu0 %v6035_v3, %s6092_s2  ;;  %3201 = vrot.lane.b32.xlu1 %v3198_v48, %s6089_s30  ;;  %v3380_v3 = vld [vmem:[%s9813_s13 + $0x200] sm:$0xff] }
 0xcc4   :  { %v5437_v61 = vpack.c.bf16 %v3382_v62, %v3380_v3  ;;  %v3592_v3 = vld [vmem:[%s9813_s13 + $0x8a0] sm:$0xff]  ;;  %v3594_v62 = vld [vmem:[%s9813_s13 + $0x8b0] sm:$0xff] }
 0xcc5   :  { %v5649_v45 = vpack.c.bf16 %v3594_v62, %v3592_v3  ;;  %v3604_v3 = vld [vmem:[%s9813_s13 + $0x900] sm:$0xff]  ;;  %v3606_v62 = vld [vmem:[%s9813_s13 + $0x910] sm:$0xff] }
 0xcc7   :  { %3297 = vrot.lane.b32.xlu1 %v3295_v19, %s6072_s29  ;;  %3289 = vrot.lane.b32.xlu0 %v3173_v21, %s6091_s10  ;;  %v3586_v21 = vld [vmem:[%s9813_s13 + $0x870] sm:$0xff]  ;;  %v5443_v19 = vpack.c.bf16 %v3391_v15, %v3389_v8 }
 0xcc8   :  { %v5641_v48 = vpack.c.bf16 %v3586_v21, %v3584_v41  ;;  %v5651_v41 = vpack.c.bf16 %v3599_v9, %v3597_v49  ;;  %v3603_v21 = vld [vmem:[%s9813_s13 + $0x8f8] sm:$0xff]  ;;  %v5661_v9 = vpack.c.bf16 %v3606_v62, %v3604_v3  ;;  %v3420_v3 = vld [vmem:[%s9813_s13 + $0x340] sm:$0xff]  ;;  %v3422_v62 = vld [vmem:[%s9813_s13 + $0x350] sm:$0xff] }
 0xccb   :  { %3299 = vrot.lane.b32.xlu0 %v3296_v40, %s6072_s29  ;;  %v3388_v40 = vld [vmem:[%s9813_s13 + $0x240] sm:$0xff] }
 0xd19   :  { %v6007_v6 = vpop.permute.xlu0 %6006  ;;  %v8539_v7 = vpop.permute.xlu1 %6011 }
 0xd1a   :  { %v6009_v4 = vunpack.i.h.bf16 %v6007_v6  ;;  %v6008_v58 = vunpack.i.l.bf16 %v6007_v6  ;;  %v6014_v53 = vunpack.i.h.bf16 %v8539_v7  ;;  %v6013_v46 = vunpack.i.l.bf16 %v8539_v7  ;;  %v3390_v6 = vld [vmem:[%s9813_s13 + $0x250] sm:$0xff]  ;;  %v3411_v7 = vld [vmem:[%s9813_s13 + $0x2f8] sm:$0xff] }
 0xd1b   :  { %v5445_v33 = vpack.c.bf16 %v3390_v6, %v3388_v40  ;;  %v3402_v40 = vld [vmem:[%s9813_s13 + $0x2b0] sm:$0xff] }
 0xd1c   :  { %v3224_v25 = vsel %vm3223_vm0, %v6013_v46, %v6014_v53  ;;  %v3234_v39 = vsel %vm3233_vm14, %v6008_v58, %v6009_v4 }
 0xd1d   :  { %v8559_v29 = vpop.permute.xlu0 %3239  ;;  %v8561_v38 = vpop.permute.xlu1 %6016  ;;  %v3308_v55 = vsel %vm3233_vm14, %v3224_v25, %v6008_v58  ;;  %v3593_v25 = vld [vmem:[%s9813_s13 + $0x8a8] sm:$0xff] }
 0xd1e   :  { %v6019_v43 = vunpack.i.h.bf16 %v8561_v38  ;;  %v6018_v5 = vunpack.i.l.bf16 %v8561_v38  ;;  %v3309_v36 = vsel %vm388_vm1, %v3234_v39, %v8559_v29  ;;  %v3595_v39 = vld [vmem:[%s9813_s13 + $0x8b8] sm:$0xff] }
 0xd1f   :  { %4098 = vmatprep.mubr.f32.mxu0 %v3309_v36 }
 0xd20   :  { %4099 = vmatmul.mubr.f32.vlgmr.msra.gmra.mrb[62].mxu0 %v3308_v55  ;;  %v3252_v23 = vsel %vm1039_vm8, %v6018_v5, %v6019_v43  ;;  %v5447_v55 = vpack.c.bf16 %v3395_v35, %v3393_v30  ;;  %v3602_v30 = vld [vmem:[%s9813_s13 + $0x8f0] sm:$0xff]  ;;  %v3405_v35 = vld [vmem:[%s9813_s13 + $0x2c8] sm:$0xff] }
 0xd21   :  { %5630 = vmatpush1.bf16.msra.mxu0 %v5629_v59  ;;  %v8583_v57 = vpop.permute.xlu0 %3241  ;;  %v3258_v47 = vpop.permute.xlu1 %3257 }
 0xd22   :  { %5632 = vmatprep.subr.bf16.mxu0 %v5631_v31  ;;  %v3311_v10 = vsel %vm3261_vm5, %v3252_v23, %v3258_v47 }
 0xd23   :  { %4169 = vmatprep.mubr.f32.mxu0 %v3311_v10  ;;  %v3397_v10 = vld [vmem:[%s9813_s13 + $0x288] sm:$0xff] }
 0xd25   :  { %5634 = vmatpush1.bf16.msra.mxu0 %v5633_v32  ;;  %v3181_v2 = vpop.permute.xlu0 %3180  ;;  %v3260_v22 = vpop.permute.xlu1 %3259  ;;  %v5647_v32 = vpack.c.bf16 %v3595_v39, %v3593_v25  ;;  %v3407_v25 = vld [vmem:[%s9813_s13 + $0x2d8] sm:$0xff]  ;;  %v3605_v39 = vld [vmem:[%s9813_s13 + $0x908] sm:$0xff] }
 0xd26   :  { %v3262_v20 = vsel %vm3261_vm5, %v3258_v47, %v3260_v22  ;;  %v3303_v44 = vsel %vm3184_vm6, %v8475_v42, %v3181_v2  ;;  %5636 = vmatprep.subr.bf16.mxu0 %v5635_v63  ;;  %v3589_v42 = vld [vmem:[%s9813_s13 + $0x888] sm:$0xff]  ;;  %v3399_v63 = vld [vmem:[%s9813_s13 + $0x298] sm:$0xff]  ;;  %v3398_v22 = vld [vmem:[%s9813_s13 + $0x290] sm:$0xff] }
 0xd27   :  { %3885 = vmatprep.mubr.f32.mxu1 %v3303_v44  ;;  %v5643_v60 = vpack.c.bf16 %v3591_v37, %v3589_v42  ;;  %v5451_v28 = vpack.c.bf16 %v3399_v63, %v3397_v10  ;;  %v3401_v44 = vld [vmem:[%s9813_s13 + $0x2a8] sm:$0xff]  ;;  %v3611_v63 = vld [vmem:[%s9813_s13 + $0x938] sm:$0xff] }
 0xd28   :  { %3886 = vmatmul.mubr.f32.vlgmr.msra.gmra.mrb[38].mxu1 %v8463_v16  ;;  %v3588_v16 = vld [vmem:[%s9813_s13 + $0x880] sm:$0xff]  ;;  %v3409_v10 = vld [vmem:[%s9813_s13 + $0x2e8] sm:$0xff] }
 0xd29   :  { %5438 = vmatpush1.bf16.msra.mxu1 %v5437_v61  ;;  %5638 = vmatpush1.bf16.msra.mxu0 %v5637_v1  ;;  %v8638_v56 = vpop.permute.xlu0 %6021  ;;  %v8640_v54 = vpop.permute.xlu1 %6026  ;;  %v5645_v52 = vpack.c.bf16 %v3590_v51, %v3588_v16  ;;  %v3596_v61 = vld [vmem:[%s9813_s13 + $0x8c0] sm:$0xff] }
 0xd2a   :  { %v6023_v4 = vunpack.i.l.bf16 %v8638_v56  ;;  %v6029_v58 = vunpack.i.h.bf16 %v8640_v54  ;;  %v6028_v53 = vunpack.i.l.bf16 %v8640_v54  ;;  %5440 = vmatprep.subr.bf16.mxu1 %v5439_v12  ;;  %5640 = vmatprep.subr.bf16.mxu0 %v5639_v50  ;;  %v6024_v1 = vunpack.i.h.bf16 %v8638_v56  ;;  %v3403_v12 = vld [vmem:[%s9813_s13 + $0x2b8] sm:$0xff]  ;;  %v3601_v50 = vld [vmem:[%s9813_s13 + $0x8e8] sm:$0xff]  ;;  %v3600_v51 = vld [vmem:[%s9813_s13 + $0x8e0] sm:$0xff] }
 0xd2b   :  { %v3644_v56 = vld [vmem:[%s9813_s13 + $0xa40] sm:$0xff]  ;;  %v3653_v54 = vld [vmem:[%s9813_s13 + $0xa88] sm:$0xff] }
 0xd2c   :  { %v3194_v59 = vsel %vm1669_vm9, %v6028_v53, %v6029_v58  ;;  %v8675_v43 = vsel %vm3271_vm13, %v3262_v20, %v6023_v4  ;;  %v3598_v20 = vld [vmem:[%s9813_s13 + $0x8d0] sm:$0xff]  ;;  %v3272_v38 = vsel %vm3271_vm13, %v6023_v4, %v6024_v1 }
 0xd2d   :  { %5442 = vmatpush1.bf16.msra.mxu1 %v5441_v11  ;;  %5642 = vmatpush1.bf16.msra.mxu0 %v5641_v48  ;;  %v3183_v36 = vpop.permute.xlu0 %3182  ;;  %v3200_v31 = vpop.permute.xlu1 %3199  ;;  %v5653_v11 = vpack.c.bf16 %v3598_v20, %v3596_v61  ;;  %v5455_v48 = vpack.c.bf16 %v3403_v12, %v3401_v44  ;;  %v3608_v61 = vld [vmem:[%s9813_s13 + $0x920] sm:$0xff]  ;;  %v3415_v20 = vld [vmem:[%s9813_s13 + $0x318] sm:$0xff]  ;;  %v3613_v44 = vld [vmem:[%s9813_s13 + $0x948] sm:$0xff] }
 0xd2e   :  { %v8684_v23 = vsel %vm3184_vm6, %v3181_v2, %v3183_v36  ;;  %5444 = vmatprep.subr.bf16.mxu1 %v5443_v19  ;;  %v3305_v47 = vsel %vm3203_vm10, %v3194_v59, %v3200_v31  ;;  %5644 = vmatprep.subr.bf16.mxu0 %v5643_v60  ;;  %v3396_v2 = vld [vmem:[%s9813_s13 + $0x280] sm:$0xff]  ;;  %v5655_v60 = vpack.c.bf16 %v3603_v21, %v3601_v50  ;;  %v3607_v59 = vld [vmem:[%s9813_s13 + $0x918] sm:$0xff]  ;;  %v3646_v4 = vld [vmem:[%s9813_s13 + $0xa50] sm:$0xff] }
 0xd2f   :  { %3956 = vmatprep.mubr.f32.mxu1 %v3305_v47  ;;  %v5453_v37 = vpack.c.bf16 %v3398_v22, %v3396_v2  ;;  %v3400_v19 = vld [vmem:[%s9813_s13 + $0x2a0] sm:$0xff]  ;;  %v5459_v47 = vpack.c.bf16 %v3407_v25, %v3405_v35  ;;  %v5463_v2 = vpack.c.bf16 %v3411_v7, %v3409_v10  ;;  %v3615_v12 = vld [vmem:[%s9813_s13 + $0x958] sm:$0xff]  ;;  %v3418_v35 = vld [vmem:[%s9813_s13 + $0x330] sm:$0xff] }
 0xd31   :  { %5446 = vmatpush1.bf16.msra.mxu1 %v5445_v33  ;;  %5646 = vmatpush1.bf16.msra.mxu0 %v5645_v52  ;;  %v8705_v17 = vpop.permute.xlu0 %6031  ;;  %v8707_v18 = vpop.permute.xlu1 %3287  ;;  %v5457_v33 = vpack.c.bf16 %v3402_v40, %v3400_v19  ;;  %v5657_v52 = vpack.c.bf16 %v3602_v30, %v3600_v51  ;;  %v3614_v19 = vld [vmem:[%s9813_s13 + $0x950] sm:$0xff]  ;;  %v3417_v40 = vld [vmem:[%s9813_s13 + $0x328] sm:$0xff]  ;;  %v3416_v30 = vld [vmem:[%s9813_s13 + $0x320] sm:$0xff] }
 0xd32   :  { %v6033_v0 = vunpack.i.l.bf16 %v8705_v17  ;;  %5448 = vmatprep.subr.bf16.mxu1 %v5447_v55  ;;  %5648 = vmatprep.subr.bf16.mxu0 %v5647_v32  ;;  %v3404_v55 = vld [vmem:[%s9813_s13 + $0x2c0] sm:$0xff]  ;;  %v5659_v32 = vpack.c.bf16 %v3607_v59, %v3605_v39 }
 0xd33   :  { %v5461_v49 = vpack.c.bf16 %v3406_v24, %v3404_v55  ;;  %v3616_v59 = vld [vmem:[%s9813_s13 + $0x960] sm:$0xff]  ;;  %v3621_v55 = vld [vmem:[%s9813_s13 + $0x988] sm:$0xff]  ;;  %v3623_v24 = vld [vmem:[%s9813_s13 + $0x998] sm:$0xff] }
 0xd34   :  { %v8740_v8 = vsel %vm624_vm7, %v6024_v1, %v6033_v0  ;;  %v5675_v7 = vpack.c.bf16 %v3623_v24, %v3621_v55  ;;  %v3632_v55 = vld [vmem:[%s9813_s13 + $0x9e0] sm:$0xff]  ;;  %v3634_v24 = vld [vmem:[%s9813_s13 + $0x9f0] sm:$0xff]  ;;  %v3449_v1 = vld [vmem:[%s9813_s13 + $0x428] sm:$0xff] }
 0xd35   :  { %5450 = vmatpush1.bf16.msra.mxu1 %v5449_v13  ;;  %5650 = vmatpush1.bf16.msra.mxu0 %v5649_v45  ;;  %v6037_v15 = vpop.permute.xlu0 %6036  ;;  %v3202_v42 = vpop.permute.xlu1 %3201  ;;  %v3408_v13 = vld [vmem:[%s9813_s13 + $0x2e0] sm:$0xff]  ;;  %v3410_v45 = vld [vmem:[%s9813_s13 + $0x2f0] sm:$0xff] }
 0xd36   :  { %v6039_v6 = vunpack.i.h.bf16 %v6037_v15  ;;  %v6038_v16 = vunpack.i.l.bf16 %v6037_v15  ;;  %v3204_v58 = vsel %vm3203_vm10, %v3200_v31, %v3202_v42  ;;  %5452 = vmatprep.subr.bf16.mxu1 %v5451_v28  ;;  %5652 = vmatprep.subr.bf16.mxu0 %v5651_v41  ;;  %v3610_v28 = vld [vmem:[%s9813_s13 + $0x930] sm:$0xff]  ;;  %v3413_v41 = vld [vmem:[%s9813_s13 + $0x308] sm:$0xff]  ;;  %v5465_v50 = vpack.c.bf16 %v3410_v45, %v3408_v13  ;;  %v3412_v15 = vld [vmem:[%s9813_s13 + $0x300] sm:$0xff] }
 0xd37   :  { %v5665_v21 = vpack.c.bf16 %v3610_v28, %v3608_v61  ;;  %v3414_v42 = vld [vmem:[%s9813_s13 + $0x310] sm:$0xff]  ;;  %v3625_v13 = vld [vmem:[%s9813_s13 + $0x9a8] sm:$0xff]  ;;  %v3627_v45 = vld [vmem:[%s9813_s13 + $0x9b8] sm:$0xff] }
 0xd38   :  { %v3214_v36 = vsel %vm3213_vm11, %v6038_v16, %v6039_v6  ;;  %v8767_v31 = vsel %vm3213_vm11, %v3204_v58, %v6038_v16  ;;  %v3419_v6 = vld [vmem:[%s9813_s13 + $0x338] sm:$0xff]  ;;  %v3617_v16 = vld [vmem:[%s9813_s13 + $0x968] sm:$0xff]  ;;  %v3424_v61 = vld [vmem:[%s9813_s13 + $0x360] sm:$0xff] }
 0xd39   :  { %5454 = vmatpush1.bf16.msra.mxu1 %v5453_v37  ;;  %5654 = vmatpush1.bf16.msra.mxu0 %v5653_v11  ;;  %v8778_v27 = vsel %vm3223_vm0, %v3214_v36, %v6013_v46  ;;  %v3609_v46 = vld [vmem:[%s9813_s13 + $0x928] sm:$0xff]  ;;  %v5467_v37 = vpack.c.bf16 %v3415_v20, %v3413_v41  ;;  %v5667_v11 = vpack.c.bf16 %v3615_v12, %v3613_v44  ;;  %v3619_v58 = vld [vmem:[%s9813_s13 + $0x978] sm:$0xff]  ;;  %v3618_v36 = vld [vmem:[%s9813_s13 + $0x970] sm:$0xff] }
 0xd3a   :  { %5456 = vmatprep.subr.bf16.mxu1 %v5455_v48  ;;  %5656 = vmatprep.subr.bf16.mxu0 %v5655_v60  ;;  %v5663_v22 = vpack.c.bf16 %v3611_v63, %v3609_v46  ;;  %v3612_v48 = vld [vmem:[%s9813_s13 + $0x940] sm:$0xff]  ;;  %v5469_v60 = vpack.c.bf16 %v3414_v42, %v3412_v15  ;;  %v5471_v25 = vpack.c.bf16 %v3419_v6, %v3417_v40  ;;  %v3622_v63 = vld [vmem:[%s9813_s13 + $0x990] sm:$0xff]  ;;  %v3629_v15 = vld [vmem:[%s9813_s13 + $0x9c8] sm:$0xff] }
 0xd3b   :  { %v5669_v51 = vpack.c.bf16 %v3614_v19, %v3612_v48  ;;  %v5671_v39 = vpack.c.bf16 %v3619_v58, %v3617_v16  ;;  %v3620_v46 = vld [vmem:[%s9813_s13 + $0x980] sm:$0xff]  ;;  %v3426_v28 = vld [vmem:[%s9813_s13 + $0x370] sm:$0xff]  ;;  %v5679_v20 = vpack.c.bf16 %v3627_v45, %v3625_v13  ;;  %v3631_v42 = vld [vmem:[%s9813_s13 + $0x9d8] sm:$0xff] }
 0xd3c   :  { %v3624_v44 = vld [vmem:[%s9813_s13 + $0x9a0] sm:$0xff]  ;;  %v3626_v12 = vld [vmem:[%s9813_s13 + $0x9b0] sm:$0xff]  ;;  %v5683_v6 = vpack.c.bf16 %v3631_v42, %v3629_v15  ;;  %v3445_v15 = vld [vmem:[%s9813_s13 + $0x408] sm:$0xff] }
 0xd3d   :  { %5458 = vmatpush1.bf16.msra.mxu1 %v5457_v33  ;;  %5658 = vmatpush1.bf16.msra.mxu0 %v5657_v52  ;;  %v3421_v33 = vld [vmem:[%s9813_s13 + $0x348] sm:$0xff]  ;;  %v3423_v52 = vld [vmem:[%s9813_s13 + $0x358] sm:$0xff]  ;;  %v3428_v48 = vld [vmem:[%s9813_s13 + $0x380] sm:$0xff] }
 0xd3e   :  { %5460 = vmatprep.subr.bf16.mxu1 %v5459_v47  ;;  %5660 = vmatprep.subr.bf16.mxu0 %v5659_v32  ;;  %v5473_v47 = vpack.c.bf16 %v3418_v35, %v3416_v30  ;;  %v5673_v32 = vpack.c.bf16 %v3618_v36, %v3616_v59  ;;  %v5475_v10 = vpack.c.bf16 %v3423_v52, %v3421_v33  ;;  %v3430_v19 = vld [vmem:[%s9813_s13 + $0x390] sm:$0xff]  ;;  %v3628_v16 = vld [vmem:[%s9813_s13 + $0x9c0] sm:$0xff]  ;;  %v3633_v30 = vld [vmem:[%s9813_s13 + $0x9e8] sm:$0xff] }
 0xd3f   :  { %v3630_v58 = vld [vmem:[%s9813_s13 + $0x9d0] sm:$0xff]  ;;  %v3635_v35 = vld [vmem:[%s9813_s13 + $0x9f8] sm:$0xff]  ;;  %v3432_v59 = vld [vmem:[%s9813_s13 + $0x3a0] sm:$0xff] }
 0xd40   :  { %v3434_v36 = vld [vmem:[%s9813_s13 + $0x3b0] sm:$0xff]  ;;  %v5687_v52 = vpack.c.bf16 %v3635_v35, %v3633_v30  ;;  %v3636_v13 = vld [vmem:[%s9813_s13 + $0xa00] sm:$0xff]  ;;  %v3649_v30 = vld [vmem:[%s9813_s13 + $0xa68] sm:$0xff] }
 0xd41   :  { %5462 = vmatpush1.bf16.msra.mxu1 %v5461_v49  ;;  %5662 = vmatpush1.bf16.msra.mxu0 %v5661_v9  ;;  %v3425_v49 = vld [vmem:[%s9813_s13 + $0x368] sm:$0xff]  ;;  %v3427_v9 = vld [vmem:[%s9813_s13 + $0x378] sm:$0xff]  ;;  %v3638_v45 = vld [vmem:[%s9813_s13 + $0xa10] sm:$0xff] }
 0xd42   :  { %5464 = vmatprep.subr.bf16.mxu1 %v5463_v2  ;;  %5664 = vmatprep.subr.bf16.mxu0 %v5663_v22  ;;  %v5477_v2 = vpack.c.bf16 %v3422_v62, %v3420_v3  ;;  %v5677_v22 = vpack.c.bf16 %v3622_v63, %v3620_v46  ;;  %v5479_v41 = vpack.c.bf16 %v3427_v9, %v3425_v49  ;;  %v3637_v3 = vld [vmem:[%s9813_s13 + $0xa08] sm:$0xff]  ;;  %v3639_v62 = vld [vmem:[%s9813_s13 + $0xa18] sm:$0xff]  ;;  %v3436_v46 = vld [vmem:[%s9813_s13 + $0x3c0] sm:$0xff] }
 0xd43   :  { %v5691_v49 = vpack.c.bf16 %v3639_v62, %v3637_v3  ;;  %v3438_v9 = vld [vmem:[%s9813_s13 + $0x3d0] sm:$0xff]  ;;  %v3651_v35 = vld [vmem:[%s9813_s13 + $0xa78] sm:$0xff] }
 0xd44   :  { %v3455_v3 = vld [vmem:[%s9813_s13 + $0x458] sm:$0xff] }
 0xd45   :  { %5466 = vmatpush1.bf16.msra.mxu1 %v5465_v50  ;;  %5666 = vmatpush1.bf16.msra.mxu0 %v5665_v21  ;;  %v3429_v50 = vld [vmem:[%s9813_s13 + $0x388] sm:$0xff]  ;;  %v3431_v21 = vld [vmem:[%s9813_s13 + $0x398] sm:$0xff] }
 0xd46   :  { %5468 = vmatprep.subr.bf16.mxu1 %v5467_v37  ;;  %5668 = vmatprep.subr.bf16.mxu0 %v5667_v11  ;;  %v5481_v37 = vpack.c.bf16 %v3426_v28, %v3424_v61  ;;  %v5681_v11 = vpack.c.bf16 %v3626_v12, %v3624_v44  ;;  %v5483_v40 = vpack.c.bf16 %v3431_v21, %v3429_v50  ;;  %v3641_v28 = vld [vmem:[%s9813_s13 + $0xa28] sm:$0xff]  ;;  %v3440_v12 = vld [vmem:[%s9813_s13 + $0x3e0] sm:$0xff]  ;;  %v3642_v21 = vld [vmem:[%s9813_s13 + $0xa30] sm:$0xff] }
 0xd47   :  { %v3243_v61 = vsel %vm388_vm1, %v8559_v29, %v8583_v57  ;;  %v5693_v44 = vpack.c.bf16 %v3638_v45, %v3636_v13  ;;  %v3442_v29 = vld [vmem:[%s9813_s13 + $0x3f0] sm:$0xff]  ;;  %v3640_v50 = vld [vmem:[%s9813_s13 + $0xa20] sm:$0xff]  ;;  %v3459_v13 = vld [vmem:[%s9813_s13 + $0x478] sm:$0xff]  ;;  %vm3291_vm1 = vcmask 130048  }
 0xd48   :  { %v3310_v42 = vsel %vm1039_vm8, %v3243_v61, %v6018_v5  ;;  %v5497_v5 = vpack.c.bf16 %v3442_v29, %v3440_v12  ;;  %v3657_v45 = vld [vmem:[%s9813_s13 + $0xaa8] sm:$0xff]  ;;  %v3658_v29 = vld [vmem:[%s9813_s13 + $0xab0] sm:$0xff] }
 0xd49   :  { %5470 = vmatpush1.bf16.msra.mxu1 %v5469_v60  ;;  %5670 = vmatpush1.bf16.msra.mxu0 %v5669_v51  ;;  %v3433_v60 = vld [vmem:[%s9813_s13 + $0x3a8] sm:$0xff]  ;;  %v3435_v51 = vld [vmem:[%s9813_s13 + $0x3b8] sm:$0xff] }
 0xd4a   :  { %5472 = vmatprep.subr.bf16.mxu1 %v5471_v25  ;;  %5672 = vmatprep.subr.bf16.mxu0 %v5671_v39  ;;  %v5485_v25 = vpack.c.bf16 %v3430_v19, %v3428_v48  ;;  %v5685_v39 = vpack.c.bf16 %v3630_v58, %v3628_v16  ;;  %v5487_v33 = vpack.c.bf16 %v3435_v51, %v3433_v60  ;;  %v3645_v48 = vld [vmem:[%s9813_s13 + $0xa48] sm:$0xff]  ;;  %v3647_v19 = vld [vmem:[%s9813_s13 + $0xa58] sm:$0xff]  ;;  %v3444_v58 = vld [vmem:[%s9813_s13 + $0x400] sm:$0xff] }
 0xd4b   :  { %v5699_v16 = vpack.c.bf16 %v3647_v19, %v3645_v48  ;;  %v3446_v60 = vld [vmem:[%s9813_s13 + $0x410] sm:$0xff]  ;;  %v3451_v51 = vld [vmem:[%s9813_s13 + $0x438] sm:$0xff]  ;;  %v3460_v48 = vld [vmem:[%s9813_s13 + $0x480] sm:$0xff] }
 0xd4c   :  { %v3462_v19 = vld [vmem:[%s9813_s13 + $0x490] sm:$0xff] }
 0xd4d   :  { %5474 = vmatpush1.bf16.msra.mxu1 %v5473_v47  ;;  %5674 = vmatpush1.bf16.msra.mxu0 %v5673_v32  ;;  %v3437_v47 = vld [vmem:[%s9813_s13 + $0x3c8] sm:$0xff]  ;;  %v3439_v32 = vld [vmem:[%s9813_s13 + $0x3d8] sm:$0xff] }
 0xd4e   :  { %5476 = vmatprep.subr.bf16.mxu1 %v5475_v10  ;;  %5676 = vmatprep.subr.bf16.mxu0 %v5675_v7  ;;  %v5489_v10 = vpack.c.bf16 %v3434_v36, %v3432_v59  ;;  %v5689_v7 = vpack.c.bf16 %v3634_v24, %v3632_v55  ;;  %v5491_v63 = vpack.c.bf16 %v3439_v32, %v3437_v47  ;;  %v3448_v36 = vld [vmem:[%s9813_s13 + $0x420] sm:$0xff]  ;;  %v3650_v47 = vld [vmem:[%s9813_s13 + $0xa70] sm:$0xff]  ;;  %v3453_v32 = vld [vmem:[%s9813_s13 + $0x448] sm:$0xff] }
 0xd4f   :  { %v5503_v59 = vpack.c.bf16 %v3451_v51, %v3449_v1  ;;  %v3304_v55 = vsel %vm1669_vm9, %v8684_v23, %v6028_v53  ;;  %v5703_v24 = vpack.c.bf16 %v3651_v35, %v3649_v30  ;;  %v3655_v53 = vld [vmem:[%s9813_s13 + $0xa98] sm:$0xff]  ;;  %v3464_v51 = vld [vmem:[%s9813_s13 + $0x4a0] sm:$0xff]  ;;  %v3466_v30 = vld [vmem:[%s9813_s13 + $0x4b0] sm:$0xff] }
 0xd50   :  { %v3664_v35 = vld [vmem:[%s9813_s13 + $0xae0] sm:$0xff] }
 0xd51   :  { %5478 = vmatpush1.bf16.msra.mxu1 %v5477_v2  ;;  %5678 = vmatpush1.bf16.msra.mxu0 %v5677_v22  ;;  %v3441_v2 = vld [vmem:[%s9813_s13 + $0x3e8] sm:$0xff]  ;;  %v3443_v22 = vld [vmem:[%s9813_s13 + $0x3f8] sm:$0xff] }
 0xd52   :  { %5480 = vmatprep.subr.bf16.mxu1 %v5479_v41  ;;  %5680 = vmatprep.subr.bf16.mxu0 %v5679_v20  ;;  %v3643_v41 = vld [vmem:[%s9813_s13 + $0xa38] sm:$0xff]  ;;  %v5493_v20 = vpack.c.bf16 %v3438_v9, %v3436_v46  ;;  %v5495_v57 = vpack.c.bf16 %v3443_v22, %v3441_v2  ;;  %v3454_v46 = vld [vmem:[%s9813_s13 + $0x450] sm:$0xff]  ;;  %v3457_v9 = vld [vmem:[%s9813_s13 + $0x468] sm:$0xff] }
 0xd53   :  { %v3659_v2 = vld [vmem:[%s9813_s13 + $0xab8] sm:$0xff] }
 0xd54   :  { %v5711_v12 = vpack.c.bf16 %v3659_v2, %v3657_v45  ;;  %v3672_v45 = vld [vmem:[%s9813_s13 + $0xb20] sm:$0xff] }
 0xd55   :  { %5482 = vmatpush1.bf16.msra.mxu1 %v5481_v37  ;;  %5682 = vmatpush1.bf16.msra.mxu0 %v5681_v11  ;;  %v5695_v37 = vpack.c.bf16 %v3643_v41, %v3641_v28  ;;  %v3447_v11 = vld [vmem:[%s9813_s13 + $0x418] sm:$0xff]  ;;  %v5511_v28 = vpack.c.bf16 %v3459_v13, %v3457_v9  ;;  %v3456_v41 = vld [vmem:[%s9813_s13 + $0x460] sm:$0xff]  ;;  %v3474_v13 = vld [vmem:[%s9813_s13 + $0x4f0] sm:$0xff] }
 0xd56   :  { %5484 = vmatprep.subr.bf16.mxu1 %v5483_v40  ;;  %5684 = vmatprep.subr.bf16.mxu0 %v5683_v6  ;;  %v5697_v40 = vpack.c.bf16 %v3642_v21, %v3640_v50  ;;  %v5499_v6 = vpack.c.bf16 %v3447_v11, %v3445_v15  ;;  %v3463_v50 = vld [vmem:[%s9813_s13 + $0x498] sm:$0xff]  ;;  %v3661_v21 = vld [vmem:[%s9813_s13 + $0xac8] sm:$0xff]  ;;  %v3472_v9 = vld [vmem:[%s9813_s13 + $0x4e0] sm:$0xff] }
 0xd57   :  { %v3663_v15 = vld [vmem:[%s9813_s13 + $0xad8] sm:$0xff] }
 0xd59   :  { %5486 = vmatpush1.bf16.msra.mxu1 %v5485_v25  ;;  %5686 = vmatpush1.bf16.msra.mxu0 %v5685_v39  ;;  %v5501_v25 = vpack.c.bf16 %v3446_v60, %v3444_v58  ;;  %v5701_v39 = vpack.c.bf16 %v3646_v4, %v3644_v56  ;;  %v3665_v58 = vld [vmem:[%s9813_s13 + $0xae8] sm:$0xff]  ;;  %v3667_v60 = vld [vmem:[%s9813_s13 + $0xaf8] sm:$0xff]  ;;  %v5517_v56 = vpack.c.bf16 %v3462_v19, %v3460_v48 }
 0xd5a   :  { %5488 = vmatprep.subr.bf16.mxu1 %v5487_v33  ;;  %5688 = vmatprep.subr.bf16.mxu0 %v5687_v52  ;;  %v3450_v33 = vld [vmem:[%s9813_s13 + $0x430] sm:$0xff]  ;;  %v3648_v52 = vld [vmem:[%s9813_s13 + $0xa60] sm:$0xff]  ;;  %v3681_v48 = vld [vmem:[%s9813_s13 + $0xb68] sm:$0xff] }
 0xd5b   :  { %v5505_v23 = vpack.c.bf16 %v3450_v33, %v3448_v36  ;;  %v5705_v62 = vpack.c.bf16 %v3650_v47, %v3648_v52  ;;  %v3471_v36 = vld [vmem:[%s9813_s13 + $0x4d8] sm:$0xff]  ;;  %v3669_v33 = vld [vmem:[%s9813_s13 + $0xb08] sm:$0xff] }
 0xd5c   :  { %v3671_v52 = vld [vmem:[%s9813_s13 + $0xb18] sm:$0xff] }
 0xd5d   :  { %5490 = vmatpush1.bf16.msra.mxu1 %v5489_v10  ;;  %5690 = vmatpush1.bf16.msra.mxu0 %v5689_v7  ;;  %v5507_v10 = vpack.c.bf16 %v3455_v3, %v3453_v32  ;;  %v3452_v7 = vld [vmem:[%s9813_s13 + $0x440] sm:$0xff]  ;;  %v3470_v3 = vld [vmem:[%s9813_s13 + $0x4d0] sm:$0xff]  ;;  %v3683_v19 = vld [vmem:[%s9813_s13 + $0xb78] sm:$0xff] }
 0xd5e   :  { %5492 = vmatprep.subr.bf16.mxu1 %v5491_v63  ;;  %5692 = vmatprep.subr.bf16.mxu0 %v5691_v49  ;;  %v3652_v63 = vld [vmem:[%s9813_s13 + $0xa80] sm:$0xff]  ;;  %v5707_v49 = vpack.c.bf16 %v3655_v53, %v3653_v54  ;;  %v5509_v22 = vpack.c.bf16 %v3454_v46, %v3452_v7  ;;  %v5723_v53 = vpack.c.bf16 %v3671_v52, %v3669_v33  ;;  %v3673_v7 = vld [vmem:[%s9813_s13 + $0xb28] sm:$0xff]  ;;  %v3675_v46 = vld [vmem:[%s9813_s13 + $0xb38] sm:$0xff] }
 0xd5f   :  { %v3468_v32 = vld [vmem:[%s9813_s13 + $0x4c0] sm:$0xff]  ;;  %v5727_v2 = vpack.c.bf16 %v3675_v46, %v3673_v7 }
 0xd60   :  { %4170 = vmatmul.mubr.f32.vlgmr.msra.gmra.mrb[62].mxu0 %v3310_v42  ;;  %v3668_v54 = vld [vmem:[%s9813_s13 + $0xb00] sm:$0xff] }
 0xd61   :  { %5494 = vmatpush1.bf16.msra.mxu1 %v5493_v20  ;;  %5694 = vmatpush1.bf16.msra.mxu0 %v5693_v44  ;;  %v3458_v20 = vld [vmem:[%s9813_s13 + $0x470] sm:$0xff]  ;;  %v3656_v44 = vld [vmem:[%s9813_s13 + $0xaa0] sm:$0xff] }
 0xd62   :  { %4240 = vmatprep.mubr.f32.mxu0 %v3272_v38  ;;  %5496 = vmatprep.subr.bf16.mxu1 %v5495_v57  ;;  %v3461_v57 = vld [vmem:[%s9813_s13 + $0x488] sm:$0xff]  ;;  %v5513_v42 = vpack.c.bf16 %v3458_v20, %v3456_v41  ;;  %v3660_v38 = vld [vmem:[%s9813_s13 + $0xac0] sm:$0xff]  ;;  %v3679_v20 = vld [vmem:[%s9813_s13 + $0xb58] sm:$0xff] }
 0xd63   :  { %5696 = vmatprep.subr.bf16.mxu0 %v5695_v37  ;;  %v5713_v37 = vpack.c.bf16 %v3658_v29, %v3656_v44  ;;  %v5515_v11 = vpack.c.bf16 %v3463_v50, %v3461_v57  ;;  %v3677_v41 = vld [vmem:[%s9813_s13 + $0xb48] sm:$0xff]  ;;  %v5529_v44 = vpack.c.bf16 %v3474_v13, %v3472_v9  ;;  %v3476_v57 = vld [vmem:[%s9813_s13 + $0x500] sm:$0xff]  ;;  %v3478_v50 = vld [vmem:[%s9813_s13 + $0x510] sm:$0xff] }
 0xd64   :  { %v3684_v33 = vld [vmem:[%s9813_s13 + $0xb80] sm:$0xff]  ;;  %v3693_v9 = vld [vmem:[%s9813_s13 + $0xbc8] sm:$0xff]  ;;  %v3695_v13 = vld [vmem:[%s9813_s13 + $0xbd8] sm:$0xff] }
 0xd65   :  { %5498 = vmatpush1.bf16.msra.mxu1 %v5497_v5  ;;  %5698 = vmatpush1.bf16.msra.mxu0 %v5697_v40  ;;  %v5715_v5 = vpack.c.bf16 %v3663_v15, %v3661_v21  ;;  %v3662_v40 = vld [vmem:[%s9813_s13 + $0xad0] sm:$0xff]  ;;  %v3676_v21 = vld [vmem:[%s9813_s13 + $0xb40] sm:$0xff]  ;;  %v5731_v15 = vpack.c.bf16 %v3679_v20, %v3677_v41  ;;  %v5747_v20 = vpack.c.bf16 %v3695_v13, %v3693_v9 }
 0xd66   :  { %5500 = vmatprep.subr.bf16.mxu1 %v5499_v6  ;;  %5700 = vmatprep.subr.bf16.mxu0 %v5699_v16  ;;  %v3465_v6 = vld [vmem:[%s9813_s13 + $0x4a8] sm:$0xff]  ;;  %v3467_v16 = vld [vmem:[%s9813_s13 + $0x4b8] sm:$0xff]  ;;  %v5717_v4 = vpack.c.bf16 %v3662_v40, %v3660_v38  ;;  %v5533_v38 = vpack.c.bf16 %v3478_v50, %v3476_v57  ;;  %v3688_v7 = vld [vmem:[%s9813_s13 + $0xba0] sm:$0xff] }
 0xd67   :  { %v5519_v1 = vpack.c.bf16 %v3467_v16, %v3465_v6  ;;  %v3480_v6 = vld [vmem:[%s9813_s13 + $0x520] sm:$0xff]  ;;  %v3482_v16 = vld [vmem:[%s9813_s13 + $0x530] sm:$0xff]  ;;  %v3697_v57 = vld [vmem:[%s9813_s13 + $0xbe8] sm:$0xff] }
 0xd68   :  { %3957 = vmatmul.mubr.f32.vlgmr.msra.gmra.mrb[38].mxu1 %v3304_v55  ;;  %v5521_v55 = vpack.c.bf16 %v3466_v30, %v3464_v51  ;;  %v3685_v51 = vld [vmem:[%s9813_s13 + $0xb88] sm:$0xff]  ;;  %v3687_v30 = vld [vmem:[%s9813_s13 + $0xb98] sm:$0xff]  ;;  %v3692_v41 = vld [vmem:[%s9813_s13 + $0xbc0] sm:$0xff] }
 0xd69   :  { %5502 = vmatpush1.bf16.msra.mxu1 %v5501_v25  ;;  %4027 = vmatprep.mubr.f32.mxu1 %v8778_v27  ;;  %v3654_v27 = vld [vmem:[%s9813_s13 + $0xa90] sm:$0xff]  ;;  %v5719_v25 = vpack.c.bf16 %v3667_v60, %v3665_v58  ;;  %v3680_v58 = vld [vmem:[%s9813_s13 + $0xb60] sm:$0xff]  ;;  %v5735_v60 = vpack.c.bf16 %v3683_v19, %v3681_v48  ;;  %v5739_v52 = vpack.c.bf16 %v3687_v30, %v3685_v51  ;;  %v3699_v50 = vld [vmem:[%s9813_s13 + $0xbf8] sm:$0xff] }
 0xd6a   :  { %5702 = vmatpush1.bf16.msra.mxu0 %v5701_v39  ;;  %5504 = vmatprep.subr.bf16.mxu1 %v5503_v59  ;;  %v5709_v61 = vpack.c.bf16 %v3654_v27, %v3652_v63  ;;  %v3666_v39 = vld [vmem:[%s9813_s13 + $0xaf0] sm:$0xff]  ;;  %v3469_v59 = vld [vmem:[%s9813_s13 + $0x4c8] sm:$0xff]  ;;  %v5525_v63 = vpack.c.bf16 %v3470_v3, %v3468_v32  ;;  %v3691_v3 = vld [vmem:[%s9813_s13 + $0xbb8] sm:$0xff]  ;;  %v5751_v19 = vpack.c.bf16 %v3699_v50, %v3697_v57 }
 0xd6b   :  { %5704 = vmatprep.subr.bf16.mxu0 %v5703_v24  ;;  %v5721_v24 = vpack.c.bf16 %v3666_v39, %v3664_v35  ;;  %v5523_v47 = vpack.c.bf16 %v3471_v36, %v3469_v59  ;;  %v5537_v35 = vpack.c.bf16 %v3482_v16, %v3480_v6  ;;  %v3484_v59 = vld [vmem:[%s9813_s13 + $0x540] sm:$0xff]  ;;  %v3486_v36 = vld [vmem:[%s9813_s13 + $0x550] sm:$0xff]  ;;  %v3689_v32 = vld [vmem:[%s9813_s13 + $0xba8] sm:$0xff] }
 0xd6c   :  { %v5743_v46 = vpack.c.bf16 %v3691_v3, %v3689_v32  ;;  %v3696_v48 = vld [vmem:[%s9813_s13 + $0xbe0] sm:$0xff]  ;;  %v3701_v6 = vld [vmem:[%s9813_s13 + $0xc08] sm:$0xff]  ;;  %v3703_v16 = vld [vmem:[%s9813_s13 + $0xc18] sm:$0xff] }
 0xd6d   :  { %5506 = vmatpush1.bf16.msra.mxu1 %v5505_v23  ;;  %v3670_v23 = vld [vmem:[%s9813_s13 + $0xb10] sm:$0xff]  ;;  %v5755_v30 = vpack.c.bf16 %v3703_v16, %v3701_v6  ;;  %v3720_v50 = vld [vmem:[%s9813_s13 + $0xca0] sm:$0xff] }
 0xd6e   :  { %5706 = vmatpush1.bf16.msra.mxu0 %v5705_v62  ;;  %5508 = vmatprep.subr.bf16.mxu1 %v5507_v10  ;;  %v3473_v62 = vld [vmem:[%s9813_s13 + $0x4e8] sm:$0xff]  ;;  %v3475_v10 = vld [vmem:[%s9813_s13 + $0x4f8] sm:$0xff]  ;;  %v3502_v51 = vld [vmem:[%s9813_s13 + $0x5d0] sm:$0xff] }
 0xd6f   :  { %5708 = vmatprep.subr.bf16.mxu0 %v5707_v49  ;;  %v5725_v49 = vpack.c.bf16 %v3670_v23, %v3668_v54  ;;  %v5527_v27 = vpack.c.bf16 %v3475_v10, %v3473_v62  ;;  %v5541_v54 = vpack.c.bf16 %v3486_v36, %v3484_v59  ;;  %v3488_v62 = vld [vmem:[%s9813_s13 + $0x560] sm:$0xff]  ;;  %v3490_v10 = vld [vmem:[%s9813_s13 + $0x570] sm:$0xff]  ;;  %v3507_v59 = vld [vmem:[%s9813_s13 + $0x5f8] sm:$0xff] }
 0xd70   :  { %v3705_v36 = vld [vmem:[%s9813_s13 + $0xc28] sm:$0xff]  ;;  %v3506_v32 = vld [vmem:[%s9813_s13 + $0x5f0] sm:$0xff]  ;;  %v3728_v16 = vld [vmem:[%s9813_s13 + $0xce0] sm:$0xff] }
 0xd71   :  { %5510 = vmatpush1.bf16.msra.mxu1 %v5509_v22  ;;  %v3674_v22 = vld [vmem:[%s9813_s13 + $0xb30] sm:$0xff] }
 0xd72   :  { %5710 = vmatpush1.bf16.msra.mxu0 %v5709_v61  ;;  %5512 = vmatprep.subr.bf16.mxu1 %v5511_v28  ;;  %v3477_v61 = vld [vmem:[%s9813_s13 + $0x508] sm:$0xff]  ;;  %v3479_v28 = vld [vmem:[%s9813_s13 + $0x518] sm:$0xff] }
 0xd73   :  { %5712 = vmatprep.subr.bf16.mxu0 %v5711_v12  ;;  %v5729_v12 = vpack.c.bf16 %v3674_v22, %v3672_v45  ;;  %v5531_v29 = vpack.c.bf16 %v3479_v28, %v3477_v61  ;;  %v5545_v45 = vpack.c.bf16 %v3490_v10, %v3488_v62  ;;  %v3492_v61 = vld [vmem:[%s9813_s13 + $0x580] sm:$0xff]  ;;  %v3494_v28 = vld [vmem:[%s9813_s13 + $0x590] sm:$0xff] }
 0xd75   :  { %5514 = vmatpush1.bf16.msra.mxu1 %v5513_v42  ;;  %v3678_v42 = vld [vmem:[%s9813_s13 + $0xb50] sm:$0xff] }
 0xd76   :  { %5714 = vmatpush1.bf16.msra.mxu0 %v5713_v37  ;;  %5516 = vmatprep.subr.bf16.mxu1 %v5515_v11  ;;  %v3481_v37 = vld [vmem:[%s9813_s13 + $0x528] sm:$0xff]  ;;  %v3483_v11 = vld [vmem:[%s9813_s13 + $0x538] sm:$0xff] }
 0xd77   :  { %5716 = vmatprep.subr.bf16.mxu0 %v5715_v5  ;;  %v5733_v5 = vpack.c.bf16 %v3678_v42, %v3676_v21  ;;  %v5535_v40 = vpack.c.bf16 %v3483_v11, %v3481_v37  ;;  %v5549_v21 = vpack.c.bf16 %v3494_v28, %v3492_v61  ;;  %v3496_v37 = vld [vmem:[%s9813_s13 + $0x5a0] sm:$0xff]  ;;  %v3498_v11 = vld [vmem:[%s9813_s13 + $0x5b0] sm:$0xff]  ;;  %v3719_v61 = vld [vmem:[%s9813_s13 + $0xc98] sm:$0xff] }
 0xd79   :  { %5518 = vmatpush1.bf16.msra.mxu1 %v5517_v56  ;;  %v3682_v56 = vld [vmem:[%s9813_s13 + $0xb70] sm:$0xff] }
 0xd7a   :  { %5718 = vmatpush1.bf16.msra.mxu0 %v5717_v4  ;;  %5520 = vmatprep.subr.bf16.mxu1 %v5519_v1  ;;  %v3485_v4 = vld [vmem:[%s9813_s13 + $0x548] sm:$0xff]  ;;  %v3487_v1 = vld [vmem:[%s9813_s13 + $0x558] sm:$0xff] }
 0xd7b   :  { %5720 = vmatprep.subr.bf16.mxu0 %v5719_v25  ;;  %v5737_v25 = vpack.c.bf16 %v3682_v56, %v3680_v58  ;;  %v5539_v39 = vpack.c.bf16 %v3487_v1, %v3485_v4  ;;  %v5553_v58 = vpack.c.bf16 %v3498_v11, %v3496_v37  ;;  %v3500_v1 = vld [vmem:[%s9813_s13 + $0x5c0] sm:$0xff] }
 0xd7d   :  { %5522 = vmatpush1.bf16.msra.mxu1 %v5521_v55  ;;  %v3686_v55 = vld [vmem:[%s9813_s13 + $0xb90] sm:$0xff] }
 0xd7e   :  { %5722 = vmatpush1.bf16.msra.mxu0 %v5721_v24  ;;  %5524 = vmatprep.subr.bf16.mxu1 %v5523_v47  ;;  %v3489_v24 = vld [vmem:[%s9813_s13 + $0x568] sm:$0xff]  ;;  %v3491_v47 = vld [vmem:[%s9813_s13 + $0x578] sm:$0xff] }
 0xd7f   :  { %5724 = vmatprep.subr.bf16.mxu0 %v5723_v53  ;;  %v5741_v53 = vpack.c.bf16 %v3686_v55, %v3684_v33  ;;  %v5543_v23 = vpack.c.bf16 %v3491_v47, %v3489_v24  ;;  %v3707_v33 = vld [vmem:[%s9813_s13 + $0xc38] sm:$0xff]  ;;  %v3504_v47 = vld [vmem:[%s9813_s13 + $0x5e0] sm:$0xff] }
 0xd80   :  { %v5561_v10 = vpack.c.bf16 %v3506_v32, %v3504_v47  ;;  %v3740_v32 = vld [vmem:[%s9813_s13 + $0xd40] sm:$0xff] }
 0xd81   :  { %5526 = vmatpush1.bf16.msra.mxu1 %v5525_v63  ;;  %v3690_v63 = vld [vmem:[%s9813_s13 + $0xbb0] sm:$0xff] }
 0xd82   :  { %5726 = vmatpush1.bf16.msra.mxu0 %v5725_v49  ;;  %5528 = vmatprep.subr.bf16.mxu1 %v5527_v27  ;;  %v3493_v49 = vld [vmem:[%s9813_s13 + $0x588] sm:$0xff]  ;;  %v3495_v27 = vld [vmem:[%s9813_s13 + $0x598] sm:$0xff] }
 0xd83   :  { %5728 = vmatprep.subr.bf16.mxu0 %v5727_v2  ;;  %v5745_v2 = vpack.c.bf16 %v3690_v63, %v3688_v7  ;;  %v5547_v22 = vpack.c.bf16 %v3495_v27, %v3493_v49  ;;  %v3708_v63 = vld [vmem:[%s9813_s13 + $0xc40] sm:$0xff]  ;;  %v3710_v49 = vld [vmem:[%s9813_s13 + $0xc50] sm:$0xff]  ;;  %v3715_v27 = vld [vmem:[%s9813_s13 + $0xc78] sm:$0xff] }
 0xd84   :  { %v5765_v9 = vpack.c.bf16 %v3710_v49, %v3708_v63  ;;  %v3748_v49 = vld [vmem:[%s9813_s13 + $0xd80] sm:$0xff] }
 0xd85   :  { %5530 = vmatpush1.bf16.msra.mxu1 %v5529_v44  ;;  %v3694_v44 = vld [vmem:[%s9813_s13 + $0xbd0] sm:$0xff] }
 0xd86   :  { %5730 = vmatpush1.bf16.msra.mxu0 %v5729_v12  ;;  %5532 = vmatprep.subr.bf16.mxu1 %v5531_v29  ;;  %v3497_v12 = vld [vmem:[%s9813_s13 + $0x5a8] sm:$0xff]  ;;  %v3499_v29 = vld [vmem:[%s9813_s13 + $0x5b8] sm:$0xff] }
 0xd87   :  { %5732 = vmatprep.subr.bf16.mxu0 %v5731_v15  ;;  %v5749_v15 = vpack.c.bf16 %v3694_v44, %v3692_v41  ;;  %v5551_v42 = vpack.c.bf16 %v3499_v29, %v3497_v12  ;;  %v3721_v44 = vld [vmem:[%s9813_s13 + $0xca8] sm:$0xff]  ;;  %v3723_v12 = vld [vmem:[%s9813_s13 + $0xcb8] sm:$0xff] }
 0xd88   :  { %v5775_v57 = vpack.c.bf16 %v3723_v12, %v3721_v44  ;;  %v3758_v44 = vld [vmem:[%s9813_s13 + $0xdd0] sm:$0xff]  ;;  %v3761_v12 = vld [vmem:[%s9813_s13 + $0xde8] sm:$0xff] }
 0xd89   :  { %5534 = vmatpush1.bf16.msra.mxu1 %v5533_v38  ;;  %v3698_v38 = vld [vmem:[%s9813_s13 + $0xbf0] sm:$0xff] }
 0xd8a   :  { %5734 = vmatpush1.bf16.msra.mxu0 %v5733_v5  ;;  %5536 = vmatprep.subr.bf16.mxu1 %v5535_v40  ;;  %v3501_v5 = vld [vmem:[%s9813_s13 + $0x5c8] sm:$0xff]  ;;  %v3503_v40 = vld [vmem:[%s9813_s13 + $0x5d8] sm:$0xff]  ;;  %v5753_v56 = vpack.c.bf16 %v3698_v38, %v3696_v48  ;;  %v3724_v48 = vld [vmem:[%s9813_s13 + $0xcc0] sm:$0xff] }
 0xd8b   :  { %5736 = vmatprep.subr.bf16.mxu0 %v5735_v60  ;;  %v6034_v60 = vunpack.i.h.bf16 %v8705_v17  ;;  %v5555_v4 = vpack.c.bf16 %v3503_v40, %v3501_v5  ;;  %v3706_v17 = vld [vmem:[%s9813_s13 + $0xc30] sm:$0xff]  ;;  %v3729_v38 = vld [vmem:[%s9813_s13 + $0xce8] sm:$0xff]  ;;  %v3731_v5 = vld [vmem:[%s9813_s13 + $0xcf8] sm:$0xff] }
 0xd8c   :  { %v5783_v6 = vpack.c.bf16 %v3731_v5, %v3729_v38  ;;  %v3764_v38 = vld [vmem:[%s9813_s13 + $0xe00] sm:$0xff]  ;;  %v3766_v5 = vld [vmem:[%s9813_s13 + $0xe10] sm:$0xff] }
 0xd8d   :  { %5538 = vmatpush1.bf16.msra.mxu1 %v5537_v35  ;;  %v3700_v35 = vld [vmem:[%s9813_s13 + $0xc00] sm:$0xff]  ;;  %v3282_v24 = vsel %vm624_vm7, %v6033_v0, %v6034_v60  ;;  %v3709_v0 = vld [vmem:[%s9813_s13 + $0xc48] sm:$0xff]  ;;  %vm3818_vm7 = vcmask 326656  }
 0xd8e   :  { %5738 = vmatpush1.bf16.msra.mxu0 %v5737_v25  ;;  %5540 = vmatprep.subr.bf16.mxu1 %v5539_v39  ;;  %v3702_v25 = vld [vmem:[%s9813_s13 + $0xc10] sm:$0xff]  ;;  %v3505_v39 = vld [vmem:[%s9813_s13 + $0x5e8] sm:$0xff]  ;;  %v3314_v62 = vsel %vm3291_vm1, %v3282_v24, %v8707_v18 }
 0xd8f   :  { %5740 = vmatprep.subr.bf16.mxu0 %v5739_v52  ;;  %v5557_v52 = vpack.c.bf16 %v3502_v51, %v3500_v1  ;;  %v5757_v55 = vpack.c.bf16 %v3702_v25, %v3700_v35  ;;  %v5559_v3 = vpack.c.bf16 %v3507_v59, %v3505_v39  ;;  %v3733_v60 = vld [vmem:[%s9813_s13 + $0xd08] sm:$0xff]  ;;  %v3732_v51 = vld [vmem:[%s9813_s13 + $0xd00] sm:$0xff]  ;;  %v3739_v25 = vld [vmem:[%s9813_s13 + $0xd38] sm:$0xff] }
 0xd90   :  { %v3737_v35 = vld [vmem:[%s9813_s13 + $0xd28] sm:$0xff] }
 0xd91   :  { %5542 = vmatpush1.bf16.msra.mxu1 %v5541_v54  ;;  %v5759_v54 = vpack.c.bf16 %v3707_v33, %v3705_v36  ;;  %v5791_v59 = vpack.c.bf16 %v3739_v25, %v3737_v35  ;;  %v3736_v36 = vld [vmem:[%s9813_s13 + $0xd20] sm:$0xff]  ;;  %v3738_v33 = vld [vmem:[%s9813_s13 + $0xd30] sm:$0xff] }
 0xd92   :  { %5742 = vmatpush1.bf16.msra.mxu0 %v5741_v53  ;;  %5544 = vmatprep.subr.bf16.mxu1 %v5543_v23  ;;  %v3704_v53 = vld [vmem:[%s9813_s13 + $0xc20] sm:$0xff]  ;;  %v3711_v23 = vld [vmem:[%s9813_s13 + $0xc58] sm:$0xff]  ;;  %v5793_v24 = vpack.c.bf16 %v3738_v33, %v3736_v36  ;;  %v3774_v36 = vld [vmem:[%s9813_s13 + $0xe50] sm:$0xff] }
 0xd93   :  { %5744 = vmatprep.subr.bf16.mxu0 %v5743_v46  ;;  %v5761_v7 = vpack.c.bf16 %v3706_v17, %v3704_v53  ;;  %v5763_v46 = vpack.c.bf16 %v3711_v23, %v3709_v0  ;;  %v3747_v53 = vld [vmem:[%s9813_s13 + $0xd78] sm:$0xff]  ;;  %v3744_v23 = vld [vmem:[%s9813_s13 + $0xd60] sm:$0xff]  ;;  %v3777_v33 = vld [vmem:[%s9813_s13 + $0xe68] sm:$0xff] }
 0xd95   :  { %5546 = vmatpush1.bf16.msra.mxu1 %v5545_v45  ;;  %v3712_v45 = vld [vmem:[%s9813_s13 + $0xc60] sm:$0xff] }
 0xd96   :  { %5746 = vmatpush1.bf16.msra.mxu0 %v5745_v2  ;;  %5548 = vmatprep.subr.bf16.mxu1 %v5547_v22  ;;  %v3714_v2 = vld [vmem:[%s9813_s13 + $0xc70] sm:$0xff]  ;;  %v3717_v22 = vld [vmem:[%s9813_s13 + $0xc88] sm:$0xff] }
 0xd97   :  { %5748 = vmatprep.subr.bf16.mxu0 %v5747_v20  ;;  %v5769_v28 = vpack.c.bf16 %v3714_v2, %v3712_v45  ;;  %v5771_v41 = vpack.c.bf16 %v3719_v61, %v3717_v22  ;;  %v3716_v20 = vld [vmem:[%s9813_s13 + $0xc80] sm:$0xff]  ;;  %v3754_v22 = vld [vmem:[%s9813_s13 + $0xdb0] sm:$0xff]  ;;  %v3757_v61 = vld [vmem:[%s9813_s13 + $0xdc8] sm:$0xff] }
 0xd98   :  { %v3752_v2 = vld [vmem:[%s9813_s13 + $0xda0] sm:$0xff] }
 0xd99   :  { %5550 = vmatpush1.bf16.msra.mxu1 %v5549_v21  ;;  %v3722_v21 = vld [vmem:[%s9813_s13 + $0xcb0] sm:$0xff] }
 0xd9a   :  { %5750 = vmatpush1.bf16.msra.mxu0 %v5749_v15  ;;  %5552 = vmatprep.subr.bf16.mxu1 %v5551_v42  ;;  %v3725_v15 = vld [vmem:[%s9813_s13 + $0xcc8] sm:$0xff]  ;;  %v3727_v42 = vld [vmem:[%s9813_s13 + $0xcd8] sm:$0xff]  ;;  %v5777_v37 = vpack.c.bf16 %v3722_v21, %v3720_v50  ;;  %v3760_v21 = vld [vmem:[%s9813_s13 + $0xde0] sm:$0xff] }
 0xd9b   :  { %5752 = vmatprep.subr.bf16.mxu0 %v5751_v19  ;;  %v5779_v11 = vpack.c.bf16 %v3727_v42, %v3725_v15  ;;  %v3726_v19 = vld [vmem:[%s9813_s13 + $0xcd0] sm:$0xff]  ;;  %v9579_v42 = vpop.permute.xlu0 %3289 }
 0xd9c   :  { %v5781_v40 = vpack.c.bf16 %v3726_v19, %v3724_v48  ;;  %v3762_v15 = vld [vmem:[%s9813_s13 + $0xdf0] sm:$0xff] }
 0xd9d   :  { %5554 = vmatpush1.bf16.msra.mxu1 %v5553_v58  ;;  %v3730_v58 = vld [vmem:[%s9813_s13 + $0xcf0] sm:$0xff]  ;;  %v5817_v48 = vpack.c.bf16 %v3762_v15, %v3760_v21  ;;  %v3801_v21 = vld [vmem:[%s9813_s13 + $0xf28] sm:$0xff]  ;;  %v3803_v15 = vld [vmem:[%s9813_s13 + $0xf38] sm:$0xff] }
 0xd9e   :  { %5754 = vmatpush1.bf16.msra.mxu0 %v5753_v56  ;;  %5556 = vmatprep.subr.bf16.mxu1 %v5555_v4  ;;  %v3735_v56 = vld [vmem:[%s9813_s13 + $0xd18] sm:$0xff]  ;;  %v5785_v4 = vpack.c.bf16 %v3730_v58, %v3728_v16  ;;  %v5821_v58 = vpack.c.bf16 %v3766_v5, %v3764_v38 }
 0xd9f   :  { %5756 = vmatprep.subr.bf16.mxu0 %v5755_v30  ;;  %v5787_v1 = vpack.c.bf16 %v3735_v56, %v3733_v60  ;;  %v3734_v30 = vld [vmem:[%s9813_s13 + $0xd10] sm:$0xff]  ;;  %v3300_v16 = vpop.permute.xlu0 %3299  ;;  %v3768_v56 = vld [vmem:[%s9813_s13 + $0xe20] sm:$0xff]  ;;  %v4394_v5 = vld [vmem:[%s9815_s15 + $0x18] sm:$0xff] }
 0xda0   :  { %v5789_v39 = vpack.c.bf16 %v3734_v30, %v3732_v51  ;;  %v3773_v51 = vld [vmem:[%s9813_s13 + $0xe48] sm:$0xff]  ;;  %v3775_v30 = vld [vmem:[%s9813_s13 + $0xe58] sm:$0xff] }
 0xda1   :  { %4241 = vmatmul.mubr.f32.vlgmr.msra.gmra.mrb[62].mxu0 %v8675_v43  ;;  %5558 = vmatpush1.bf16.msra.mxu1 %v5557_v52  ;;  %v3713_v43 = vld [vmem:[%s9813_s13 + $0xc68] sm:$0xff] }
 0xda2   :  { %5758 = vmatpush1.bf16.msra.mxu0 %v5757_v55  ;;  %4311 = vmatprep.mubr.f32.mxu0 %v3314_v62  ;;  %v5767_v13 = vpack.c.bf16 %v3715_v27, %v3713_v43  ;;  %v3741_v52 = vld [vmem:[%s9813_s13 + $0xd48] sm:$0xff]  ;;  %v3743_v55 = vld [vmem:[%s9813_s13 + $0xd58] sm:$0xff]  ;;  %v3746_v62 = vld [vmem:[%s9813_s13 + $0xd70] sm:$0xff] }
 0xda3   :  { %5560 = vmatprep.subr.bf16.mxu1 %v5559_v3  ;;  %5760 = vmatprep.subr.bf16.mxu0 %v5759_v54  ;;  %v5795_v47 = vpack.c.bf16 %v3743_v55, %v3741_v52  ;;  %v3742_v3 = vld [vmem:[%s9813_s13 + $0xd50] sm:$0xff]  ;;  %v3745_v54 = vld [vmem:[%s9813_s13 + $0xd68] sm:$0xff] }
 0xda4   :  { %v5797_v17 = vpack.c.bf16 %v3742_v3, %v3740_v32  ;;  %v5799_v0 = vpack.c.bf16 %v3747_v53, %v3745_v54  ;;  %v3750_v43 = vld [vmem:[%s9813_s13 + $0xd90] sm:$0xff]  ;;  %v3753_v27 = vld [vmem:[%s9813_s13 + $0xda8] sm:$0xff]  ;;  %v3783_v3 = vld [vmem:[%s9813_s13 + $0xe98] sm:$0xff] }
 0xda5   :  { %5562 = vmatpush1.bf16.msra.mxu1 %v5561_v10  ;;  %v3749_v10 = vld [vmem:[%s9813_s13 + $0xd88] sm:$0xff] }
 0xda6   :  { %5762 = vmatpush1.bf16.msra.mxu0 %v5761_v7  ;;  %5859 = vmatprep.subr.bf16.mxu1 %v6076_v34  ;;  %v3751_v7 = vld [vmem:[%s9813_s13 + $0xd98] sm:$0xff]  ;;  %v3781_v32 = vld [vmem:[%s9813_s13 + $0xe88] sm:$0xff] }
 0xda7   :  { %5764 = vmatprep.subr.bf16.mxu0 %v5763_v46  ;;  %v5801_v46 = vpack.c.bf16 %v3746_v62, %v3744_v23  ;;  %v5803_v63 = vpack.c.bf16 %v3751_v7, %v3749_v10  ;;  %v5835_v53 = vpack.c.bf16 %v3783_v3, %v3781_v32  ;;  %v3785_v23 = vld [vmem:[%s9813_s13 + $0xea8] sm:$0xff]  ;;  %v3787_v62 = vld [vmem:[%s9813_s13 + $0xeb8] sm:$0xff]  ;;  %v4405_v3 = vld [vmem:[%s9815_s15 + $0x70] sm:$0xff] }
 0xda8   :  { %4028 = vmatmul.mubr.f32.vlgmr.msra.gmra.mrb[38].mxu1 %v8767_v31  ;;  %v3718_v31 = vld [vmem:[%s9813_s13 + $0xc90] sm:$0xff]  ;;  %v5839_v7 = vpack.c.bf16 %v3787_v62, %v3785_v23 }
 0xda9   :  { %v5773_v29 = vpack.c.bf16 %v3718_v31, %v3716_v20  ;;  %v3756_v31 = vld [vmem:[%s9813_s13 + $0xdc0] sm:$0xff] }
 0xdaa   :  { %5766 = vmatpush1.bf16.msra.mxu0 %v5765_v9  ;;  %v3755_v9 = vld [vmem:[%s9813_s13 + $0xdb8] sm:$0xff] }
 0xdab   :  { %5768 = vmatprep.subr.bf16.mxu0 %v5767_v13  ;;  %v5805_v13 = vpack.c.bf16 %v3750_v43, %v3748_v49  ;;  %v5807_v45 = vpack.c.bf16 %v3755_v9, %v3753_v27  ;;  %v3789_v49 = vld [vmem:[%s9813_s13 + $0xec8] sm:$0xff]  ;;  %v3791_v43 = vld [vmem:[%s9813_s13 + $0xed8] sm:$0xff] }
 0xdac   :  { %v5843_v9 = vpack.c.bf16 %v3791_v43, %v3789_v49 }
 0xdae   :  { %5770 = vmatpush1.bf16.msra.mxu0 %v5769_v28  ;;  %v3759_v28 = vld [vmem:[%s9813_s13 + $0xdd8] sm:$0xff] }
 0xdaf   :  { %5772 = vmatprep.subr.bf16.mxu0 %v5771_v41  ;;  %v5809_v41 = vpack.c.bf16 %v3754_v22, %v3752_v2  ;;  %v5811_v20 = vpack.c.bf16 %v3759_v28, %v3757_v61  ;;  %v3793_v2 = vld [vmem:[%s9813_s13 + $0xee8] sm:$0xff]  ;;  %v3795_v22 = vld [vmem:[%s9813_s13 + $0xef8] sm:$0xff] }
 0xdb0   :  { %v5847_v28 = vpack.c.bf16 %v3795_v22, %v3793_v2  ;;  %v4574_v22 = vld [vmem:[%s9816_s16] ss:$0 sm:$0xff] }
 0xdb2   :  { %5774 = vmatpush1.bf16.msra.mxu0 %v5773_v29  ;;  %v3763_v29 = vld [vmem:[%s9813_s13 + $0xdf8] sm:$0xff] }
 0xdb3   :  { %5776 = vmatprep.subr.bf16.mxu0 %v5775_v57  ;;  %v5813_v57 = vpack.c.bf16 %v3758_v44, %v3756_v31  ;;  %v5815_v50 = vpack.c.bf16 %v3763_v29, %v3761_v12  ;;  %v3797_v31 = vld [vmem:[%s9813_s13 + $0xf08] sm:$0xff]  ;;  %v3799_v44 = vld [vmem:[%s9813_s13 + $0xf18] sm:$0xff] }
 0xdb4   :  { %v5851_v29 = vpack.c.bf16 %v3799_v44, %v3797_v31 }
 0xdb6   :  { %5778 = vmatpush1.bf16.msra.mxu0 %v5777_v37  ;;  %v3765_v37 = vld [vmem:[%s9813_s13 + $0xe08] sm:$0xff] }
 0xdb7   :  { %5780 = vmatprep.subr.bf16.mxu0 %v5779_v11  ;;  %v3767_v11 = vld [vmem:[%s9813_s13 + $0xe18] sm:$0xff] }
 0xdb8   :  { %v5819_v19 = vpack.c.bf16 %v3767_v11, %v3765_v37  ;;  %v4391_v37 = vld [vmem:[%s9815_s15] sm:$0xff]  ;;  %v4392_v11 = vld [vmem:[%s9815_s15 + $0x8] sm:$0xff] }
 0xdb9   :  { %v5860_v38 = vpack.c.bf16 %v4392_v11, %v4391_v37 }
 0xdba   :  { %5782 = vmatpush1.bf16.msra.mxu0 %v5781_v40  ;;  %v3769_v40 = vld [vmem:[%s9813_s13 + $0xe28] sm:$0xff] }
 0xdbb   :  { %5784 = vmatprep.subr.bf16.mxu0 %v5783_v6  ;;  %v3771_v6 = vld [vmem:[%s9813_s13 + $0xe38] sm:$0xff]  ;;  %5861 = vmatpush1.bf16.msra.mxu1 %v5860_v38 }
 0xdbc   :  { %v5823_v60 = vpack.c.bf16 %v3771_v6, %v3769_v40  ;;  %v5855_v40 = vpack.c.bf16 %v3803_v15, %v3801_v21  ;;  %v3800_v6 = vld [vmem:[%s9813_s13 + $0xf20] sm:$0xff]  ;;  %5862 = vmatprep.subr.bf16.mxu1 %v6076_v34 }
 0xdbe   :  { %5786 = vmatpush1.bf16.msra.mxu0 %v5785_v4  ;;  %v3770_v4 = vld [vmem:[%s9813_s13 + $0xe30] sm:$0xff] }
 0xdbf   :  { %5788 = vmatprep.subr.bf16.mxu0 %v5787_v1  ;;  %v9605_v1 = vpop.permute.xlu1 %3297  ;;  %v5825_v25 = vpack.c.bf16 %v3770_v4, %v3768_v56  ;;  %v4396_v56 = vld [vmem:[%s9815_s15 + $0x28] sm:$0xff] }
 0xdc0   :  { %v3301_v35 = vsel %vm361_vm12, %v9605_v1, %v3300_v16  ;;  %v3802_v16 = vld [vmem:[%s9813_s13 + $0xf30] sm:$0xff] }
 0xdc1   :  { %v5857_v4 = vpack.c.bf16 %v3802_v16, %v3800_v6 }
 0xdc2   :  { %5790 = vmatpush1.bf16.msra.mxu0 %v5789_v39  ;;  %v5827_v39 = vpack.c.bf16 %v3775_v30, %v3773_v51  ;;  %v3805_v51 = vld [vmem:[%s9813_s13 + $0xf48] sm:$0xff] }
 0xdc3   :  { %5792 = vmatprep.subr.bf16.mxu0 %v5791_v59  ;;  %v3772_v59 = vld [vmem:[%s9813_s13 + $0xe40] sm:$0xff] }
 0xdc4   :  { %v5829_v52 = vpack.c.bf16 %v3774_v36, %v3772_v59  ;;  %v3804_v59 = vld [vmem:[%s9813_s13 + $0xf40] sm:$0xff] }
 0xdc6   :  { %5794 = vmatpush1.bf16.msra.mxu0 %v5793_v24  ;;  %v3776_v24 = vld [vmem:[%s9813_s13 + $0xe60] sm:$0xff] }
 0xdc7   :  { %5796 = vmatprep.subr.bf16.mxu0 %v5795_v47  ;;  %v3778_v47 = vld [vmem:[%s9813_s13 + $0xe70] sm:$0xff] }
 0xdc8   :  { %v5833_v54 = vpack.c.bf16 %v3778_v47, %v3776_v24  ;;  %v4404_v47 = vld [vmem:[%s9815_s15 + $0x68] sm:$0xff] }
 0xdca   :  { %5798 = vmatpush1.bf16.msra.mxu0 %v5797_v17  ;;  %v3780_v17 = vld [vmem:[%s9813_s13 + $0xe80] sm:$0xff] }
 0xdcb   :  { %5800 = vmatprep.subr.bf16.mxu0 %v5799_v0  ;;  %v3782_v0 = vld [vmem:[%s9813_s13 + $0xe90] sm:$0xff] }
 0xdcc   :  { %v5837_v10 = vpack.c.bf16 %v3782_v0, %v3780_v17  ;;  %v4407_v17 = vld [vmem:[%s9815_s15 + $0x80] sm:$0xff]  ;;  %v4408_v0 = vld [vmem:[%s9815_s15 + $0x88] sm:$0xff] }
 0xdcd   :  { %v5884_v23 = vpack.c.bf16 %v4408_v0, %v4407_v17 }
 0xdce   :  { %5802 = vmatpush1.bf16.msra.mxu0 %v5801_v46  ;;  %v3784_v46 = vld [vmem:[%s9813_s13 + $0xea0] sm:$0xff] }
 0xdcf   :  { %5804 = vmatprep.subr.bf16.mxu0 %v5803_v63  ;;  %v3786_v63 = vld [vmem:[%s9813_s13 + $0xeb0] sm:$0xff] }
 0xdd0   :  { %v5841_v27 = vpack.c.bf16 %v3786_v63, %v3784_v46 }
 0xdd2   :  { %5806 = vmatpush1.bf16.msra.mxu0 %v5805_v13  ;;  %v3788_v13 = vld [vmem:[%s9813_s13 + $0xec0] sm:$0xff] }
 0xdd3   :  { %5808 = vmatprep.subr.bf16.mxu0 %v5807_v45  ;;  %v3790_v45 = vld [vmem:[%s9813_s13 + $0xed0] sm:$0xff] }
 0xdd4   :  { %v5845_v61 = vpack.c.bf16 %v3790_v45, %v3788_v13 }
 0xdd6   :  { %5810 = vmatpush1.bf16.msra.mxu0 %v5809_v41  ;;  %v3792_v41 = vld [vmem:[%s9813_s13 + $0xee0] sm:$0xff] }
 0xdd7   :  { %5812 = vmatprep.subr.bf16.mxu0 %v5811_v20  ;;  %v3794_v20 = vld [vmem:[%s9813_s13 + $0xef0] sm:$0xff] }
 0xdd8   :  { %v5849_v12 = vpack.c.bf16 %v3794_v20, %v3792_v41 }
 0xdda   :  { %5814 = vmatpush1.bf16.msra.mxu0 %v5813_v57  ;;  %v3796_v57 = vld [vmem:[%s9813_s13 + $0xf00] sm:$0xff] }
 0xddb   :  { %5816 = vmatprep.subr.bf16.mxu0 %v5815_v50  ;;  %v3798_v50 = vld [vmem:[%s9813_s13 + $0xf10] sm:$0xff] }
 0xdde   :  { %5818 = vmatpush1.bf16.msra.mxu0 %v5817_v48  ;;  %v4393_v48 = vld [vmem:[%s9815_s15 + $0x10] sm:$0xff] }
 0xddf   :  { %5820 = vmatprep.subr.bf16.mxu0 %v5819_v19  ;;  %v5853_v19 = vpack.c.bf16 %v3798_v50, %v3796_v57 }
 0xde1   :  { %4312 = vmatmul.mubr.f32.vlgmr.msra.gmra.mrb[62].mxu0 %v8740_v8  ;;  %v3779_v8 = vld [vmem:[%s9813_s13 + $0xe78] sm:$0xff] }
 0xde2   :  { %5822 = vmatpush1.bf16.msra.mxu0 %v5821_v58  ;;  %4573 = vmatprep.mubr.msk.f32.mxu0 %vm3818_vm7, %v3301_v35  ;;  %v5831_v55 = vpack.c.bf16 %v3779_v8, %v3777_v33  ;;  %v5863_v58 = vpack.c.bf16 %v4394_v5, %v4393_v48  ;;  %v4397_v35 = vld [vmem:[%s9815_s15 + $0x30] sm:$0xff]  ;;  %v4399_v33 = vld [vmem:[%s9815_s15 + $0x40] sm:$0xff]  ;;  %v4400_v8 = vld [vmem:[%s9815_s15 + $0x48] sm:$0xff] }
 0xde3   :  { %5824 = vmatprep.subr.bf16.mxu0 %v5823_v60  ;;  %v4395_v60 = vld [vmem:[%s9815_s15 + $0x20] sm:$0xff] }
 0xde4   :  { %5864 = vmatpush1.bf16.msra.mxu1 %v5863_v58  ;;  %v5866_v30 = vpack.c.bf16 %v4396_v56, %v4395_v60 }
 0xde5   :  { %5865 = vmatprep.subr.bf16.mxu1 %v6076_v34 }
 0xde6   :  { %5826 = vmatpush1.bf16.msra.mxu0 %v5825_v25  ;;  %v4398_v25 = vld [vmem:[%s9815_s15 + $0x38] sm:$0xff] }
 0xde7   :  { %5828 = vmatprep.subr.bf16.mxu0 %v5827_v39  ;;  %v3292_v39 = vsel %vm3291_vm1, %v8707_v18, %v9579_v42  ;;  %v5869_v36 = vpack.c.bf16 %v4398_v25, %v4397_v35  ;;  %v5872_v42 = vpack.c.bf16 %v4400_v8, %v4399_v33 }
 0xde8   :  { %5867 = vmatpush1.bf16.msra.mxu1 %v5866_v30  ;;  %v3315_v18 = vsel %vm361_vm12, %v3292_v39, %v9605_v1  ;;  %v4403_v1 = vld [vmem:[%s9815_s15 + $0x60] sm:$0xff]  ;;  %vm4490_vm12 = vcmask 287744  }
 0xde9   :  { %5868 = vmatprep.subr.bf16.mxu1 %v6076_v34  ;;  %v5878_v32 = vpack.c.bf16 %v4404_v47, %v4403_v1 }
 0xdea   :  { %5830 = vmatpush1.bf16.msra.mxu0 %v5829_v52  ;;  %v4401_v52 = vld [vmem:[%s9815_s15 + $0x50] sm:$0xff] }
 0xdeb   :  { %5832 = vmatprep.subr.bf16.mxu0 %v5831_v55  ;;  %v4402_v55 = vld [vmem:[%s9815_s15 + $0x58] sm:$0xff] }
 0xdec   :  { %5870 = vmatpush1.bf16.msra.mxu1 %v5869_v36  ;;  %v5875_v24 = vpack.c.bf16 %v4402_v55, %v4401_v52 }
 0xded   :  { %5871 = vmatprep.subr.bf16.mxu1 %v6076_v34 }
 0xdee   :  { %5834 = vmatpush1.bf16.msra.mxu0 %v5833_v54  ;;  %v4406_v54 = vld [vmem:[%s9815_s15 + $0x78] sm:$0xff] }
 0xdef   :  { %5836 = vmatprep.subr.bf16.mxu0 %v5835_v53  ;;  %v5881_v53 = vpack.c.bf16 %v4406_v54, %v4405_v3 }
 0xdf0   :  { %5873 = vmatpush1.bf16.msra.mxu1 %v5872_v42 }
 0xdf1   :  { %5874 = vmatprep.subr.bf16.mxu1 %v6076_v34 }
 0xdf2   :  { %5838 = vmatpush1.bf16.msra.mxu0 %v5837_v10 }
 0xdf3   :  { %5840 = vmatprep.subr.bf16.mxu0 %v5839_v7  ;;  %v3806_v7 = vld [vmem:[%s9814_s14] sm:$0x3]  ;;  %s6093_s14 = smov [#allocation2]  }
 0xdf4   :  { %5876 = vmatpush1.bf16.msra.mxu1 %v5875_v24  ;;  %v3811_v46 = vrot.slane %v3806_v7, %v6590_v26  ;;  %s4498_s28 = sshll.u32 %s6093_s14, 4  ;;  %s4499_s28 = int_to_ptr.vmem [resolvable:$true] %s4498_s28 }
 0xdf5   :  { %5877 = vmatprep.subr.bf16.mxu1 %v6076_v34  ;;  %s6048_s0 = scalar_lea.vmem %s4499_s28, 32  ;;  %p6053_p1 = scmp.lt.s32.totalorder %s4499_s28, %s4499_s28 }
 0xdf6   :  { %5842 = vmatpush1.bf16.msra.mxu0 %v5841_v27  ;;  %p6049_p0 = scmp.ne.s32.totalorder %s4499_s28, %s6048_s0  ;;  %p6054_p2 = scmp.lt.s32.totalorder %s6048_s0, %s6048_s0 }
 0xdf7   :  { %5844 = vmatprep.subr.bf16.mxu0 %v5843_v9 }
 0xdf8   :  { %5879 = vmatpush1.bf16.msra.mxu1 %v5878_v32  ;;  %p6055_p3 = por %p6054_p2, %p6053_p1 }
 0xdf9   :  { %5880 = vmatprep.subr.bf16.mxu1 %v6076_v34 }
 0xdfa   :  { %5846 = vmatpush1.bf16.msra.mxu0 %v5845_v61  ;;  %p6056_p4 = pnand %p6055_p3, %p6049_p0 }
 0xdfb   :  { %5848 = vmatprep.subr.bf16.mxu0 %v5847_v28 }
 0xdfc   :  { %5882 = vmatpush1.bf16.msra.mxu1 %v5881_v53 }
 0xdfd   :  { %5883 = vmatprep.subr.bf16.mxu1 %v6076_v34  ;;  %v3815_v34 = vrot.slane %v3806_v7, %v7516_v14 }
 0xdfe   :  { %5850 = vmatpush1.bf16.msra.mxu0 %v5849_v12 }
 0xdff   :  { %5852 = vmatprep.subr.bf16.mxu0 %v5851_v29 }
 0xe00   :  { %5885 = vmatpush1.bf16.msra.mxu1 %v5884_v23 }
 0xe02   :  { %5854 = vmatpush1.bf16.msra.mxu0 %v5853_v19 }
 0xe03   :  { %5856 = vmatprep.subr.bf16.mxu0 %v5855_v40 }
 0xe06   :  { %5858 = vmatpush1.bf16.msra.mxu0 %v5857_v4 }
 0xe07   :  { %4358 = vmatprep.subr.mxu0 %v3805_v51 }
 0xe0a   :  { %4359 = vmatpush1.msra.mxu0 %v3804_v59 }
 0xe0b   :  { %4383 = vmatmul.mubr.f32.vlgmr.msra.gmra.mrb[62].mxu0 %v3315_v18 }
 0xe7b   :  { %v4029_v62 = vpop.f32.mrb[38].mxu1 }
 0xe7c   :  { %v4031_v10 = vpop.f32.mrb[39].mxu1  ;;  %v5886_v63 = vadd.f32 %v4029_v62, %v3811_v46 }
 0xe7d   :  { %v5888_v49 = vadd.f32 %v4031_v10, %v3815_v34 }
 0xede   :  { %v4384_v43 = vpop.f32.mrb[62].mxu0 }
 0xedf   :  { %v5887_v27 = vadd.f32 %v5886_v63, %v4384_v43  ;;  %v4386_v9 = vpop.f32.mrb[63].mxu0 }
 0xee0   :  { %v5889_v13 = vadd.f32 %v5888_v49, %v4386_v9 }
 0xee1   :  { %v4389_v2 = vmax.f32 %v5887_v27, 0.0 }
 0xee2   :  { %v4390_v45 = vmax.f32 %v5889_v13, 0.0 }
 0xee4   :  { %4575 = vmatprep.mubr.msk.f32.mxu1 %vm3291_vm1, %v4390_v45 }
 0xee5   :  { %4484 = vmatmul.mubr.f32.vlgmr.msra.gmra.mrb[40].mxu1 %v4389_v2 }
 0xfb8   :  { %v4485_v61 = vpop.f32.mrb[40].mxu1 }
 0xfb9   :  { %v4486_v26 = vadd.f32 %v4574_v22, %v4485_v61  ;;  %v4487_v14 = vpop.f32.mrb[41].mxu1 }
 0xfbb   :  { %v4489_v28 = vmax.f32 %v4486_v26, 0.0 }
 0xfbd   :  { %4491 = vst.msk [vmem:[#allocation2] sm:$0x3] %vm4490_vm12, %v4489_v28 }
 0xfbe   :  { %6059 = shalt.err (!%p6056_p4)
}
 0xfbf   :  { %s6060_s16 = scalar_lea.hbm %s9817_s17, 32 }
 0xfc0   :  { %p6061_p5 = scmp.ne.s32.totalorder %s9817_s17, %s6060_s16  ;;  %p6064_p6 = scmp.lt.u32.totalorder %s6060_s16, %s9817_s17 }
 0xfc2   :  { %p6066_p7 = pnand %p6064_p6, %p6061_p5 }
 0xfc4   :  { %6069 = shalt.err (!%p6066_p7)
}
 0xfc5   :  { %4501 = dma.vmem_to_hbm [thread:$0]  %s4499_s28, 32, %s9817_s17, [#allocation3]  }
 0xfc6   :  { %6070 = dma.done.wait [#allocation3], 32  }
 0xfc7   :  { %6071 = vsyncadd [#allocation3], 4294967264 }
 0xfc8   :  { %4505 = vsyncpa [#allocation3], 1 }

</bundles_post_ra>
